<compile_context>
chip_gen: v5e
topology: v5e:2x2
jax: 0.10.0
libtpu: 0.0.40
codegen_flags: <defaults>
</compile_context>

<pallas_src>
import math

import jax
import jax.numpy as jnp
from jax.experimental import pallas as pl
from jax.experimental.pallas import tpu as pltpu

# ----------------------------- hyper-parameters ------------------------------
VOCAB = 7               # vocab_size
K = VOCAB + 1           # number of classes incl. mask token
D = 32                  # n_embed
H = 2                   # n_heads
DH = D // H             # head dim
NBLK = 2                # n_blocks
NCOND = 16              # n_cond (timestep frequency embedding dim)
T_STEPS = 10            # T
LAMBDA_CE = 0.1
B = 2                   # batch
L = 8                   # sequence length
BL = B * L              # fused batch*sequence rows
MODW = NBLK * 6 * D + 2 * D   # stacked adaLN modulation width
EPS = 1e-20


def _fs(shape):
    """Full-array BlockSpec for a single-step grid=(1,)."""
    return pl.BlockSpec(shape, lambda i, _n=len(shape): (0,) * _n)


# =============================================================================
# Kernel 1: q(x_t | x_0) and q(x_{t+1} | x_0) probabilities (for sampling)
# =============================================================================
def qprobs_kernel(x0_ref, qbar_ref, qt1_ref, qxt_ref, qxtp1_ref):
    x0 = x0_ref[...]                                  # (BL, K)
    qxt_parts, qxtp1_parts = [], []
    for bi in range(B):                               # static, B small
        x0_b = x0[bi * L:(bi + 1) * L, :]             # (L, K)
        q_xt_b = jnp.dot(x0_b, qbar_ref[bi], preferred_element_type=jnp.float32)
        qxt_parts.append(q_xt_b)
        qxtp1_parts.append(jnp.dot(q_xt_b, qt1_ref[bi],
                                   preferred_element_type=jnp.float32))
    qxt_ref[...] = jnp.concatenate(qxt_parts, axis=0)
    qxtp1_ref[...] = jnp.concatenate(qxtp1_parts, axis=0)


def qprobs_forward(x0_2d, qbar, qt1):
    return pl.pallas_call(
        qprobs_kernel,
        grid=(1,),
        in_specs=[_fs((BL, K)), _fs((B, K, K)), _fs((B, K, K))],
        out_specs=[_fs((BL, K)), _fs((BL, K))],
        out_shape=[jax.ShapeDtypeStruct((BL, K), jnp.float32)] * 2,
        compiler_params=pltpu.CompilerParams(dimension_semantics=("arbitrary",)),
    )(x0_2d, qbar, qt1)


# =============================================================================
# Kernel 2: time-cond MLP + adaLN DiT + both log-posteriors + per-token losses
# =============================================================================
def _layernorm(x, eps=1e-6):
    mu = jnp.mean(x, axis=-1, keepdims=True)
    var = jnp.mean((x - mu) ** 2, axis=-1, keepdims=True)
    return (x - mu) * jax.lax.rsqrt(var + eps)


def _gelu(x):
    c = math.sqrt(2.0 / math.pi)
    return 0.5 * x * (1.0 + jnp.tanh(c * (x + 0.044715 * x * x * x)))


def _log_softmax(x):
    m = jnp.max(x, axis=-1, keepdims=True)
    s = x - m
    return s - jnp.log(jnp.sum(jnp.exp(s), axis=-1, keepdims=True))


FUSED_WEIGHT_NAMES = ["w_t1", "b_t1", "w_t2", "b_t2",
                      "w_emb", "b_emb", "w_admod", "b_admod",
                      "w_qkv", "b_qkv", "w_prj", "b_prj",
                      "w_m1", "b_m1", "w_m2", "b_m2",
                      "w_out", "b_out"]


def fused_kernel(x0_ref, xtp1_ref, qxt_ref, qbar_ref, qt1_ref, t0_ref, temb_ref,
                 w_t1, b_t1, w_t2, b_t2,
                 w_emb, b_emb, w_admod, b_admod,
                 w_qkv, b_qkv, w_prj, b_prj,
                 w_m1, b_m1, w_m2, b_m2,
                 w_out, b_out,
                 logits_ref, loss_ref):
    f32 = jnp.float32
    x0 = x0_ref[...]                                  # (BL, K) one-hot(data)
    xtp1 = xtp1_ref[...]                              # (BL, K) one-hot sample
    q_xt = qxt_ref[...]                               # (BL, K) from kernel 1
    is_t0 = t0_ref[...] > 0.5                         # (BL, 1) bool mask

    # ---- time conditioning MLP + all adaLN modulations in one matmul ----
    temb = temb_ref[...]                              # (BL, NCOND), rows repeated per batch
    hc = jax.nn.silu(jnp.dot(temb, w_t1[...], preferred_element_type=f32) + b_t1[...])
    cond = jnp.dot(hc, w_t2[...], preferred_element_type=f32) + b_t2[...]      # (BL, D)
    c = jax.nn.silu(cond)
    admod = jnp.dot(c, w_admod[...], preferred_element_type=f32) + b_admod[...]  # (BL, MODW)

    # ---- DiT ----
    h = jnp.dot(xtp1, w_emb[...], preferred_element_type=f32) + b_emb[...]     # (BL, D)

    for blk in range(NBLK):                           # static unrolled
        base = blk * 6 * D
        shift1 = admod[:, base + 0 * D: base + 1 * D]
        scale1 = admod[:, base + 1 * D: base + 2 * D]
        gate1 = admod[:, base + 2 * D: base + 3 * D]
        shift2 = admod[:, base + 3 * D: base + 4 * D]
        scale2 = admod[:, base + 4 * D: base + 5 * D]
        gate2 = admod[:, base + 5 * D: base + 6 * D]

        # --- attention ---
        hn = _layernorm(h) * (1.0 + scale1) + shift1
        qkv = jnp.dot(hn, w_qkv[blk], preferred_element_type=f32) + b_qkv[blk]  # (BL, 3D)
        wp = w_prj[blk]                               # (D, D)
        attn_rows = []
        for bi in range(B):                           # attention is per sequence
            r0 = bi * L
            heads = []
            for hd in range(H):
                qh = qkv[r0:r0 + L, hd * DH:(hd + 1) * DH]
                kh = qkv[r0:r0 + L, D + hd * DH:D + (hd + 1) * DH]
                vh = qkv[r0:r0 + L, 2 * D + hd * DH:2 * D + (hd + 1) * DH]
                s = jax.lax.dot_general(                # q @ k^T, no transpose
                    qh, kh, (((1,), (1,)), ((), ())),
                    preferred_element_type=f32) * (1.0 / math.sqrt(DH))
                p = jax.nn.softmax(s, axis=-1)
                heads.append(jnp.dot(p, vh, preferred_element_type=f32))
            o = jnp.concatenate(heads, axis=-1)       # (L, D) concat(heads)
            attn_rows.append(jnp.dot(o, wp, preferred_element_type=f32))
        attn = jnp.concatenate(attn_rows, axis=0) + b_prj[blk]                  # (BL, D)
        h = h + gate1 * attn

        # --- MLP ---
        hn = _layernorm(h) * (1.0 + scale2) + shift2
        m = _gelu(jnp.dot(hn, w_m1[blk], preferred_element_type=f32) + b_m1[blk])
        m = jnp.dot(m, w_m2[blk], preferred_element_type=f32) + b_m2[blk]
        h = h + gate2 * m

    # --- final adaLN + projection to K logits ---
    fbase = NBLK * 6 * D
    shift = admod[:, fbase:fbase + D]
    scale = admod[:, fbase + D:fbase + 2 * D]
    h = _layernorm(h) * (1.0 + scale) + shift
    logits = jnp.dot(h, w_out[...], preferred_element_type=f32) + b_out[...]    # (BL, K)
    logits_ref[...] = logits

    # ---- log posteriors (q- and p- paths share x_{t+1} @ Q_{t+1}^T) ----
    p0 = jax.nn.softmax(logits, axis=-1)              # (BL, K)
    qtp1_t_parts, qpxt_parts = [], []
    for bi in range(B):
        r0 = bi * L
        qtp1_t_parts.append(jax.lax.dot_general(       # x_{t+1} @ Q^T (no transpose)
            xtp1[r0:r0 + L, :], qt1_ref[bi], (((1,), (1,)), ((), ())),
            preferred_element_type=f32))
        qpxt_parts.append(jnp.dot(p0[r0:r0 + L, :], qbar_ref[bi],
                                  preferred_element_type=f32))
    q_tp1_given_t = jnp.concatenate(qtp1_t_parts, axis=0)   # (BL, K)
    qp_xt = jnp.concatenate(qpxt_parts, axis=0)             # (BL, K)

    log_shared = jnp.log(q_tp1_given_t + EPS)
    log_q = log_shared + jnp.log(q_xt + EPS)
    log_q = jnp.where(is_t0, jnp.log(x0 + EPS), log_q)
    log_p = log_shared + jnp.log(qp_xt + EPS)
    log_p = jnp.where(is_t0, jnp.log(p0 + EPS), log_p)

    # ---- per-token losses (KL + CE), packed into one (BL, 3) slab ----
    lsq = _log_softmax(log_q)
    lsp = _log_softmax(log_p)
    l_kl = jnp.maximum(jnp.sum(jnp.exp(lsq) * (lsq - lsp), axis=-1, keepdims=True), 0.0)

    mx = jnp.max(logits, axis=-1, keepdims=True)
    lse = jnp.log(jnp.sum(jnp.exp(logits - mx), axis=-1, keepdims=True)) + mx
    l_ce = lse - jnp.sum(x0 * logits, axis=-1, keepdims=True)

    loss = jnp.where(is_t0, l_ce, l_kl + LAMBDA_CE * l_ce)
    loss_ref[...] = jnp.concatenate([l_kl, l_ce, loss], axis=-1)   # (BL, 3)


def fused_forward(params, x0_2d, xtp1_2d, q_xt, qbar, qt1, t0_rows, temb_rows):
    weights = [params[n] for n in FUSED_WEIGHT_NAMES]
    ins = [x0_2d, xtp1_2d, q_xt, qbar, qt1, t0_rows, temb_rows] + weights
    return pl.pallas_call(
        fused_kernel,
        grid=(1,),
        in_specs=[_fs(a.shape) for a in ins],
        out_specs=[_fs((BL, K)), _fs((BL, 3))],
        out_shape=[jax.ShapeDtypeStruct((BL, K), jnp.float32),
                   jax.ShapeDtypeStruct((BL, 3), jnp.float32)],
        compiler_params=pltpu.CompilerParams(dimension_semantics=("arbitrary",)),
    )(*ins)


# =============================================================================
# Glue: parameters, noise schedule, time embedding, full forward
# =============================================================================
def init_params(key):
    ks = jax.random.split(key, 12)

    def w(k, shape):
        return (0.02 * jax.random.normal(k, shape)).astype(jnp.float32)

    z = lambda shape: jnp.zeros(shape, jnp.float32)
    return dict(
        w_t1=w(ks[0], (NCOND, D)), b_t1=z((1, D)),
        w_t2=w(ks[1], (D, D)), b_t2=z((1, D)),
        w_emb=w(ks[2], (K, D)), b_emb=z((1, D)),
        w_admod=w(ks[3], (D, MODW)), b_admod=z((1, MODW)),
        w_qkv=w(ks[4], (NBLK, D, 3 * D)), b_qkv=z((NBLK, 1, 3 * D)),
        w_prj=w(ks[5], (NBLK, D, D)), b_prj=z((NBLK, 1, D)),
        w_m1=w(ks[6], (NBLK, D, 4 * D)), b_m1=z((NBLK, 1, 4 * D)),
        w_m2=w(ks[7], (NBLK, 4 * D, D)), b_m2=z((NBLK, 1, D)),
        w_out=w(ks[8], (D, K)), b_out=z((1, K)),
    )


def noise_schedule():
    ar = jnp.arange(T_STEPS + 1, dtype=jnp.float32)
    betas = 1.0 / (T_STEPS - ar + 1.0)
    betas = betas.at[0].set(0.0)
    alpha_bars = jnp.cumprod(1.0 - betas)
    alpha_bars = alpha_bars.at[-1].set(0.0)
    q_mask = jnp.zeros((K, K), jnp.float32).at[:, -1].set(1.0)
    eye = jnp.eye(K, dtype=jnp.float32)
    return betas, alpha_bars, q_mask, eye


def timestep_embedding(t, dim):
    half = dim // 2
    freqs = jnp.exp(-math.log(10000.0) * jnp.arange(half, dtype=jnp.float32) / half)
    args = t[:, None].astype(jnp.float32) * freqs[None, :]
    return jnp.concatenate([jnp.cos(args), jnp.sin(args)], axis=-1)


def d3pm_forward(params, data, t, sample_key):
    betas, alpha_bars, q_mask, eye = noise_schedule()
    x0 = jax.nn.one_hot(data, K, dtype=jnp.float32)                # (B, L, K)
    x0_2d = x0.reshape(BL, K)

    ab = alpha_bars[t]
    qbar = ab[:, None, None] * eye + (1.0 - ab)[:, None, None] * q_mask
    bt1 = betas[t + 1]
    qt1 = (1.0 - bt1)[:, None, None] * eye + bt1[:, None, None] * q_mask

    # --- q path: probs only, then categorical sample (glue RNG) ---
    q_xt, q_xtp1 = qprobs_forward(x0_2d, qbar, qt1)                # (BL, K) each
    x_tp1_idx = jax.random.categorical(sample_key, jnp.log(q_xtp1 + EPS), axis=-1)
    x_tp1_2d = jax.nn.one_hot(x_tp1_idx, K, dtype=jnp.float32)     # (BL, K)

    # --- prepare per-row conditioning / masks for the fused kernel ---
    temb = timestep_embedding((t + 1).astype(jnp.float32), NCOND)  # (B, NCOND)
    temb_rows = jnp.repeat(temb, L, axis=0)                        # (BL, NCOND)
    t0_rows = jnp.repeat((t == 0).astype(jnp.float32), L)[:, None]  # (BL, 1)

    # --- single fused kernel: DiT + posteriors + per-token losses ---
    logits2, losses = fused_forward(params, x0_2d, x_tp1_2d, q_xt,
                                    qbar, qt1, t0_rows, temb_rows)
    logits = logits2.reshape(B, L, K)
    l_kl = losses[:, 0].reshape(B, L)
    l_ce = losses[:, 1].reshape(B, L)
    loss_tok = losses[:, 2].reshape(B, L)

    # --- small scalar reductions (glue) ---
    loss_mean = jnp.mean(loss_tok)
    t_pos = (t > 0).astype(jnp.float32)
    t_zero = (t == 0).astype(jnp.float32)
    n_pos = jnp.sum(t_pos) * L
    n_zero = jnp.sum(t_zero) * L
    kl_mean = jnp.sum(l_kl * t_pos[:, None]) / n_pos
    ce_mean = jnp.mean(l_ce)
    l0_mean = jnp.sum(l_ce * t_zero[:, None]) / n_zero
    l_T = jnp.where(n_zero > 0,
                    kl_mean * (T_STEPS - 1) + l0_mean,
                    kl_mean * T_STEPS)
    metrics = dict(kl=kl_mean, ce=ce_mean, l_T=l_T, bpt=l_T / math.log(2))
    return logits, loss_mean, metrics


# =============================================================================
if __name__ == "__main__":
    key = jax.random.PRNGKey(0)
    k_param, k_data, k_t, k_samp = jax.random.split(key, 4)

    params = init_params(k_param)
    data = jax.random.randint(k_data, (B, L), 0, VOCAB, dtype=jnp.int32)
    t = jax.random.randint(k_t, (B,), 0, T_STEPS, dtype=jnp.int32)

    fwd = jax.jit(d3pm_forward)
    logits, loss, metrics = fwd(params, data, t, k_samp)
    jax.block_until_ready((logits, loss, metrics))

    assert logits.shape == (B, L, K)
    assert loss.shape == ()
    print("KERNEL_OK")
</pallas_src>

<mosaic_0001>
module attributes {stable_mosaic.version = 11 : i64} {
  func.func @qprobs_kernel(%arg0: i32, %arg1: memref<16x8xf32, #tpu.memory_space<vmem>>, %arg2: memref<2x8x8xf32, #tpu.memory_space<vmem>>, %arg3: memref<2x8x8xf32, #tpu.memory_space<vmem>>, %arg4: memref<16x8xf32, #tpu.memory_space<vmem>>, %arg5: memref<16x8xf32, #tpu.memory_space<vmem>>) attributes {dimension_semantics = [#tpu.dimension_semantics<arbitrary>], iteration_bounds = array<i64: 1>, scalar_prefetch = 0 : i64, scratch_operands = 0 : i64, tpu.core_type = #tpu.core_type<tc>, window_params = [{pipeline_mode = #tpu.pipeline_mode<synchronous>, transform_indices = @transform_0, window_bounds = array<i64: 16, 8>}, {pipeline_mode = #tpu.pipeline_mode<synchronous>, transform_indices = @transform_1, window_bounds = array<i64: 2, 8, 8>}, {pipeline_mode = #tpu.pipeline_mode<synchronous>, transform_indices = @transform_2, window_bounds = array<i64: 2, 8, 8>}, {pipeline_mode = #tpu.pipeline_mode<synchronous>, transform_indices = @transform_3, window_bounds = array<i64: 16, 8>}, {pipeline_mode = #tpu.pipeline_mode<synchronous>, transform_indices = @transform_4, window_bounds = array<i64: 16, 8>}]} {
    %c0 = arith.constant 0 : index
    %c0_0 = arith.constant 0 : index
    %0 = vector.load %arg1[%c0, %c0_0] : memref<16x8xf32, #tpu.memory_space<vmem>>, vector<16x8xf32>
    %1 = vector.extract_strided_slice %0 {offsets = [0, 0], sizes = [8, 8], strides = [1, 1]} : vector<16x8xf32> to vector<8x8xf32>
    %c0_1 = arith.constant 0 : index
    %c0_2 = arith.constant 0 : index
    %c0_3 = arith.constant 0 : index
    %2 = vector.load %arg2[%c0_1, %c0_2, %c0_3] : memref<2x8x8xf32, #tpu.memory_space<vmem>>, vector<1x8x8xf32>
    %3 = vector.shape_cast %2 : vector<1x8x8xf32> to vector<8x8xf32>
    %cst = arith.constant dense<0.000000e+00> : vector<8x8xf32>
    %4 = tpu.matmul %1, %3, %cst {dimension_numbers = #tpu.dot_dimension_numbers<[1], [0], [0], [1], [0, 0, 1, 1], [], []>} : vector<8x8xf32>, vector<8x8xf32>, vector<8x8xf32> -> vector<8x8xf32>
    %c0_4 = arith.constant 0 : index
    %c0_5 = arith.constant 0 : index
    %c0_6 = arith.constant 0 : index
    %5 = vector.load %arg3[%c0_4, %c0_5, %c0_6] : memref<2x8x8xf32, #tpu.memory_space<vmem>>, vector<1x8x8xf32>
    %6 = vector.shape_cast %5 : vector<1x8x8xf32> to vector<8x8xf32>
    %cst_7 = arith.constant dense<0.000000e+00> : vector<8x8xf32>
    %7 = tpu.matmul %4, %6, %cst_7 {dimension_numbers = #tpu.dot_dimension_numbers<[1], [0], [0], [1], [0, 0, 1, 1], [], []>} : vector<8x8xf32>, vector<8x8xf32>, vector<8x8xf32> -> vector<8x8xf32>
    %8 = vector.extract_strided_slice %0 {offsets = [8, 0], sizes = [8, 8], strides = [1, 1]} : vector<16x8xf32> to vector<8x8xf32>
    %c1 = arith.constant 1 : index
    %c0_8 = arith.constant 0 : index
    %c0_9 = arith.constant 0 : index
    %9 = vector.load %arg2[%c1, %c0_8, %c0_9] : memref<2x8x8xf32, #tpu.memory_space<vmem>>, vector<1x8x8xf32>
    %10 = vector.shape_cast %9 : vector<1x8x8xf32> to vector<8x8xf32>
    %cst_10 = arith.constant dense<0.000000e+00> : vector<8x8xf32>
    %11 = tpu.matmul %8, %10, %cst_10 {dimension_numbers = #tpu.dot_dimension_numbers<[1], [0], [0], [1], [0, 0, 1, 1], [], []>} : vector<8x8xf32>, vector<8x8xf32>, vector<8x8xf32> -> vector<8x8xf32>
    %c1_11 = arith.constant 1 : index
    %c0_12 = arith.constant 0 : index
    %c0_13 = arith.constant 0 : index
    %12 = vector.load %arg3[%c1_11, %c0_12, %c0_13] : memref<2x8x8xf32, #tpu.memory_space<vmem>>, vector<1x8x8xf32>
    %13 = vector.shape_cast %12 : vector<1x8x8xf32> to vector<8x8xf32>
    %cst_14 = arith.constant dense<0.000000e+00> : vector<8x8xf32>
    %14 = tpu.matmul %11, %13, %cst_14 {dimension_numbers = #tpu.dot_dimension_numbers<[1], [0], [0], [1], [0, 0, 1, 1], [], []>} : vector<8x8xf32>, vector<8x8xf32>, vector<8x8xf32> -> vector<8x8xf32>
    %15 = tpu.concatenate %4, %11 in 0 : vector<8x8xf32>, vector<8x8xf32> -> vector<16x8xf32>
    %c0_15 = arith.constant 0 : index
    %c0_16 = arith.constant 0 : index
    %16 = vector.load %arg4[%c0_15, %c0_16] : memref<16x8xf32, #tpu.memory_space<vmem>>, vector<16x8xf32>
    tpu.vector_store %arg4[%c0_15, %c0_16], %15 {strides = array<i32>} : memref<16x8xf32, #tpu.memory_space<vmem>>, vector<16x8xf32>,
    %17 = tpu.concatenate %7, %14 in 0 : vector<8x8xf32>, vector<8x8xf32> -> vector<16x8xf32>
    %c0_17 = arith.constant 0 : index
    %c0_18 = arith.constant 0 : index
    %18 = vector.load %arg5[%c0_17, %c0_18] : memref<16x8xf32, #tpu.memory_space<vmem>>, vector<16x8xf32>
    tpu.vector_store %arg5[%c0_17, %c0_18], %17 {strides = array<i32>} : memref<16x8xf32, #tpu.memory_space<vmem>>, vector<16x8xf32>,
    return
  }
  func.func @transform_0(%arg0: i32) -> (i32, i32) {
    %c0_i32 = arith.constant 0 : i32
    %c0_i32_0 = arith.constant 0 : i32
    %c0_i32_1 = arith.constant 0 : i32
    return %c0_i32, %c0_i32_0 : i32, i32
  }
  func.func @transform_1(%arg0: i32) -> (i32, i32, i32) {
    %c0_i32 = arith.constant 0 : i32
    %c0_i32_0 = arith.constant 0 : i32
    %c0_i32_1 = arith.constant 0 : i32
    %c0_i32_2 = arith.constant 0 : i32
    return %c0_i32, %c0_i32_0, %c0_i32_1 : i32, i32, i32
  }
  func.func @transform_2(%arg0: i32) -> (i32, i32, i32) {
    %c0_i32 = arith.constant 0 : i32
    %c0_i32_0 = arith.constant 0 : i32
    %c0_i32_1 = arith.constant 0 : i32
    %c0_i32_2 = arith.constant 0 : i32
    return %c0_i32, %c0_i32_0, %c0_i32_1 : i32, i32, i32
  }
  func.func @transform_3(%arg0: i32) -> (i32, i32) {
    %c0_i32 = arith.constant 0 : i32
    %c0_i32_0 = arith.constant 0 : i32
    %c0_i32_1 = arith.constant 0 : i32
    return %c0_i32, %c0_i32_0 : i32, i32
  }
  func.func @transform_4(%arg0: i32) -> (i32, i32) {
    %c0_i32 = arith.constant 0 : i32
    %c0_i32_0 = arith.constant 0 : i32
    %c0_i32_1 = arith.constant 0 : i32
    return %c0_i32, %c0_i32_0 : i32, i32
  }
}

module attributes {stable_mosaic.version = 11 : i64} {
  func.func @fused_kernel(%arg0: i32, %arg1: memref<16x8xf32, #tpu.memory_space<vmem>>, %arg2: memref<16x8xf32, #tpu.memory_space<vmem>>, %arg3: memref<16x8xf32, #tpu.memory_space<vmem>>, %arg4: memref<2x8x8xf32, #tpu.memory_space<vmem>>, %arg5: memref<2x8x8xf32, #tpu.memory_space<vmem>>, %arg6: memref<16x1xf32, #tpu.memory_space<vmem>>, %arg7: memref<16x16xf32, #tpu.memory_space<vmem>>, %arg8: memref<16x32xf32, #tpu.memory_space<vmem>>, %arg9: memref<1x32xf32, #tpu.memory_space<vmem>>, %arg10: memref<32x32xf32, #tpu.memory_space<vmem>>, %arg11: memref<1x32xf32, #tpu.memory_space<vmem>>, %arg12: memref<8x32xf32, #tpu.memory_space<vmem>>, %arg13: memref<1x32xf32, #tpu.memory_space<vmem>>, %arg14: memref<32x448xf32, #tpu.memory_space<vmem>>, %arg15: memref<1x448xf32, #tpu.memory_space<vmem>>, %arg16: memref<2x32x96xf32, #tpu.memory_space<vmem>>, %arg17: memref<2x1x96xf32, #tpu.memory_space<vmem>>, %arg18: memref<2x32x32xf32, #tpu.memory_space<vmem>>, %arg19: memref<2x1x32xf32, #tpu.memory_space<vmem>>, %arg20: memref<2x32x128xf32, #tpu.memory_space<vmem>>, %arg21: memref<2x1x128xf32, #tpu.memory_space<vmem>>, %arg22: memref<2x128x32xf32, #tpu.memory_space<vmem>>, %arg23: memref<2x1x32xf32, #tpu.memory_space<vmem>>, %arg24: memref<32x8xf32, #tpu.memory_space<vmem>>, %arg25: memref<1x8xf32, #tpu.memory_space<vmem>>, %arg26: memref<16x8xf32, #tpu.memory_space<vmem>>, %arg27: memref<16x3xf32, #tpu.memory_space<vmem>>) attributes {dimension_semantics = [#tpu.dimension_semantics<arbitrary>], iteration_bounds = array<i64: 1>, scalar_prefetch = 0 : i64, scratch_operands = 0 : i64, tpu.core_type = #tpu.core_type<tc>, window_params = [{pipeline_mode = #tpu.pipeline_mode<synchronous>, transform_indices = @transform_0, window_bounds = array<i64: 16, 8>}, {pipeline_mode = #tpu.pipeline_mode<synchronous>, transform_indices = @transform_1, window_bounds = array<i64: 16, 8>}, {pipeline_mode = #tpu.pipeline_mode<synchronous>, transform_indices = @transform_2, window_bounds = array<i64: 16, 8>}, {pipeline_mode = #tpu.pipeline_mode<synchronous>, transform_indices = @transform_3, window_bounds = array<i64: 2, 8, 8>}, {pipeline_mode = #tpu.pipeline_mode<synchronous>, transform_indices = @transform_4, window_bounds = array<i64: 2, 8, 8>}, {pipeline_mode = #tpu.pipeline_mode<synchronous>, transform_indices = @transform_5, window_bounds = array<i64: 16, 1>}, {pipeline_mode = #tpu.pipeline_mode<synchronous>, transform_indices = @transform_6, window_bounds = array<i64: 16, 16>}, {pipeline_mode = #tpu.pipeline_mode<synchronous>, transform_indices = @transform_7, window_bounds = array<i64: 16, 32>}, {pipeline_mode = #tpu.pipeline_mode<synchronous>, transform_indices = @transform_8, window_bounds = array<i64: 1, 32>}, {pipeline_mode = #tpu.pipeline_mode<synchronous>, transform_indices = @transform_9, window_bounds = array<i64: 32, 32>}, {pipeline_mode = #tpu.pipeline_mode<synchronous>, transform_indices = @transform_10, window_bounds = array<i64: 1, 32>}, {pipeline_mode = #tpu.pipeline_mode<synchronous>, transform_indices = @transform_11, window_bounds = array<i64: 8, 32>}, {pipeline_mode = #tpu.pipeline_mode<synchronous>, transform_indices = @transform_12, window_bounds = array<i64: 1, 32>}, {pipeline_mode = #tpu.pipeline_mode<synchronous>, transform_indices = @transform_13, window_bounds = array<i64: 32, 448>}, {pipeline_mode = #tpu.pipeline_mode<synchronous>, transform_indices = @transform_14, window_bounds = array<i64: 1, 448>}, {pipeline_mode = #tpu.pipeline_mode<synchronous>, transform_indices = @transform_15, window_bounds = array<i64: 2, 32, 96>}, {pipeline_mode = #tpu.pipeline_mode<synchronous>, transform_indices = @transform_16, window_bounds = array<i64: 2, 1, 96>}, {pipeline_mode = #tpu.pipeline_mode<synchronous>, transform_indices = @transform_17, window_bounds = array<i64: 2, 32, 32>}, {pipeline_mode = #tpu.pipeline_mode<synchronous>, transform_indices = @transform_18, window_bounds = array<i64: 2, 1, 32>}, {pipeline_mode = #tpu.pipeline_mode<synchronous>, transform_indices = @transform_19, window_bounds = array<i64: 2, 32, 128>}, {pipeline_mode = #tpu.pipeline_mode<synchronous>, transform_indices = @transform_20, window_bounds = array<i64: 2, 1, 128>}, {pipeline_mode = #tpu.pipeline_mode<synchronous>, transform_indices = @transform_21, window_bounds = array<i64: 2, 128, 32>}, {pipeline_mode = #tpu.pipeline_mode<synchronous>, transform_indices = @transform_22, window_bounds = array<i64: 2, 1, 32>}, {pipeline_mode = #tpu.pipeline_mode<synchronous>, transform_indices = @transform_23, window_bounds = array<i64: 32, 8>}, {pipeline_mode = #tpu.pipeline_mode<synchronous>, transform_indices = @transform_24, window_bounds = array<i64: 1, 8>}, {pipeline_mode = #tpu.pipeline_mode<synchronous>, transform_indices = @transform_25, window_bounds = array<i64: 16, 8>}, {pipeline_mode = #tpu.pipeline_mode<synchronous>, transform_indices = @transform_26, window_bounds = array<i64: 16, 3>}]} {
    %c0 = arith.constant 0 : index
    %c0_0 = arith.constant 0 : index
    %0 = vector.load %arg1[%c0, %c0_0] : memref<16x8xf32, #tpu.memory_space<vmem>>, vector<16x8xf32>
    %c0_1 = arith.constant 0 : index
    %c0_2 = arith.constant 0 : index
    %1 = vector.load %arg2[%c0_1, %c0_2] : memref<16x8xf32, #tpu.memory_space<vmem>>, vector<16x8xf32>
    %c0_3 = arith.constant 0 : index
    %c0_4 = arith.constant 0 : index
    %2 = vector.load %arg3[%c0_3, %c0_4] : memref<16x8xf32, #tpu.memory_space<vmem>>, vector<16x8xf32>
    %c0_5 = arith.constant 0 : index
    %c0_6 = arith.constant 0 : index
    %3 = vector.load %arg6[%c0_5, %c0_6] : memref<16x1xf32, #tpu.memory_space<vmem>>, vector<16x1xf32>
    %cst = arith.constant 5.000000e-01 : f32
    %4 = vector.broadcast %cst : f32 to vector<16x1xf32>
    %5 = arith.cmpf ogt, %3, %4 : vector<16x1xf32>
    %c0_7 = arith.constant 0 : index
    %c0_8 = arith.constant 0 : index
    %6 = vector.load %arg7[%c0_7, %c0_8] : memref<16x16xf32, #tpu.memory_space<vmem>>, vector<16x16xf32>
    %c0_9 = arith.constant 0 : index
    %c0_10 = arith.constant 0 : index
    %7 = vector.load %arg8[%c0_9, %c0_10] : memref<16x32xf32, #tpu.memory_space<vmem>>, vector<16x32xf32>
    %cst_11 = arith.constant dense<0.000000e+00> : vector<16x32xf32>
    %8 = tpu.matmul %6, %7, %cst_11 {dimension_numbers = #tpu.dot_dimension_numbers<[1], [0], [0], [1], [0, 0, 1, 1], [], []>} : vector<16x16xf32>, vector<16x32xf32>, vector<16x32xf32> -> vector<16x32xf32>
    %c0_12 = arith.constant 0 : index
    %c0_13 = arith.constant 0 : index
    %9 = vector.load %arg9[%c0_12, %c0_13] : memref<1x32xf32, #tpu.memory_space<vmem>>, vector<1x32xf32>
    %10 = vector.broadcast %9 : vector<1x32xf32> to vector<16x32xf32>
    %11 = arith.addf %8, %10 : vector<16x32xf32>
    %12 = arith.negf %11 : vector<16x32xf32>
    %13 = math.exp %12 : vector<16x32xf32>
    %cst_14 = arith.constant 1.000000e+00 : f32
    %14 = vector.broadcast %cst_14 : f32 to vector<16x32xf32>
    %15 = arith.addf %14, %13 : vector<16x32xf32>
    %16 = arith.divf %14, %15 : vector<16x32xf32>
    %17 = arith.mulf %11, %16 : vector<16x32xf32>
    %c0_15 = arith.constant 0 : index
    %c0_16 = arith.constant 0 : index
    %18 = vector.load %arg10[%c0_15, %c0_16] : memref<32x32xf32, #tpu.memory_space<vmem>>, vector<32x32xf32>
    %cst_17 = arith.constant dense<0.000000e+00> : vector<16x32xf32>
    %19 = tpu.matmul %17, %18, %cst_17 {dimension_numbers = #tpu.dot_dimension_numbers<[1], [0], [0], [1], [0, 0, 1, 1], [], []>} : vector<16x32xf32>, vector<32x32xf32>, vector<16x32xf32> -> vector<16x32xf32>
    %c0_18 = arith.constant 0 : index
    %c0_19 = arith.constant 0 : index
    %20 = vector.load %arg11[%c0_18, %c0_19] : memref<1x32xf32, #tpu.memory_space<vmem>>, vector<1x32xf32>
    %21 = vector.broadcast %20 : vector<1x32xf32> to vector<16x32xf32>
    %22 = arith.addf %19, %21 : vector<16x32xf32>
    %23 = arith.negf %22 : vector<16x32xf32>
    %24 = math.exp %23 : vector<16x32xf32>
    %cst_20 = arith.constant 1.000000e+00 : f32
    %25 = vector.broadcast %cst_20 : f32 to vector<16x32xf32>
    %26 = arith.addf %25, %24 : vector<16x32xf32>
    %27 = arith.divf %25, %26 : vector<16x32xf32>
    %28 = arith.mulf %22, %27 : vector<16x32xf32>
    %c0_21 = arith.constant 0 : index
    %c0_22 = arith.constant 0 : index
    %29 = vector.load %arg14[%c0_21, %c0_22] : memref<32x448xf32, #tpu.memory_space<vmem>>, vector<32x448xf32>
    %cst_23 = arith.constant dense<0.000000e+00> : vector<16x448xf32>
    %30 = tpu.matmul %28, %29, %cst_23 {dimension_numbers = #tpu.dot_dimension_numbers<[1], [0], [0], [1], [0, 0, 1, 1], [], []>} : vector<16x32xf32>, vector<32x448xf32>, vector<16x448xf32> -> vector<16x448xf32>
    %c0_24 = arith.constant 0 : index
    %c0_25 = arith.constant 0 : index
    %31 = vector.load %arg15[%c0_24, %c0_25] : memref<1x448xf32, #tpu.memory_space<vmem>>, vector<1x448xf32>
    %32 = vector.broadcast %31 : vector<1x448xf32> to vector<16x448xf32>
    %33 = arith.addf %30, %32 : vector<16x448xf32>
    %c0_26 = arith.constant 0 : index
    %c0_27 = arith.constant 0 : index
    %34 = vector.load %arg12[%c0_26, %c0_27] : memref<8x32xf32, #tpu.memory_space<vmem>>, vector<8x32xf32>
    %cst_28 = arith.constant dense<0.000000e+00> : vector<16x32xf32>
    %35 = tpu.matmul %1, %34, %cst_28 {dimension_numbers = #tpu.dot_dimension_numbers<[1], [0], [0], [1], [0, 0, 1, 1], [], []>} : vector<16x8xf32>, vector<8x32xf32>, vector<16x32xf32> -> vector<16x32xf32>
    %c0_29 = arith.constant 0 : index
    %c0_30 = arith.constant 0 : index
    %36 = vector.load %arg13[%c0_29, %c0_30] : memref<1x32xf32, #tpu.memory_space<vmem>>, vector<1x32xf32>
    %37 = vector.broadcast %36 : vector<1x32xf32> to vector<16x32xf32>
    %38 = arith.addf %35, %37 : vector<16x32xf32>
    %39 = vector.extract_strided_slice %33 {offsets = [0, 0], sizes = [16, 32], strides = [1, 1]} : vector<16x448xf32> to vector<16x32xf32>
    %40 = vector.extract_strided_slice %33 {offsets = [0, 32], sizes = [16, 32], strides = [1, 1]} : vector<16x448xf32> to vector<16x32xf32>
    %41 = vector.extract_strided_slice %33 {offsets = [0, 64], sizes = [16, 32], strides = [1, 1]} : vector<16x448xf32> to vector<16x32xf32>
    %42 = vector.extract_strided_slice %33 {offsets = [0, 96], sizes = [16, 32], strides = [1, 1]} : vector<16x448xf32> to vector<16x32xf32>
    %43 = vector.extract_strided_slice %33 {offsets = [0, 128], sizes = [16, 32], strides = [1, 1]} : vector<16x448xf32> to vector<16x32xf32>
    %44 = vector.extract_strided_slice %33 {offsets = [0, 160], sizes = [16, 32], strides = [1, 1]} : vector<16x448xf32> to vector<16x32xf32>
    %cst_31 = arith.constant dense<0.000000e+00> : vector<16xf32>
    %45 = vector.multi_reduction <add>, %38, %cst_31 [1] : vector<16x32xf32> to vector<16xf32>
    %46 = vector.shape_cast %45 : vector<16xf32> to vector<16x1xf32>
    %cst_32 = arith.constant 3.200000e+01 : f32
    %47 = vector.broadcast %cst_32 : f32 to vector<16x1xf32>
    %48 = arith.divf %46, %47 : vector<16x1xf32>
    %49 = vector.broadcast %48 : vector<16x1xf32> to vector<16x32xf32>
    %50 = arith.subf %38, %49 : vector<16x32xf32>
    %51 = arith.mulf %50, %50 : vector<16x32xf32>
    %cst_33 = arith.constant dense<0.000000e+00> : vector<16xf32>
    %52 = vector.multi_reduction <add>, %51, %cst_33 [1] : vector<16x32xf32> to vector<16xf32>
    %53 = vector.shape_cast %52 : vector<16xf32> to vector<16x1xf32>
    %cst_34 = arith.constant 3.200000e+01 : f32
    %54 = vector.broadcast %cst_34 : f32 to vector<16x1xf32>
    %55 = arith.divf %53, %54 : vector<16x1xf32>
    %56 = vector.broadcast %48 : vector<16x1xf32> to vector<16x32xf32>
    %57 = arith.subf %38, %56 : vector<16x32xf32>
    %cst_35 = arith.constant 9.99999997E-7 : f32
    %58 = vector.broadcast %cst_35 : f32 to vector<16x1xf32>
    %59 = arith.addf %55, %58 : vector<16x1xf32>
    %60 = math.rsqrt %59 : vector<16x1xf32>
    %61 = vector.broadcast %60 : vector<16x1xf32> to vector<16x32xf32>
    %62 = arith.mulf %57, %61 : vector<16x32xf32>
    %cst_36 = arith.constant 1.000000e+00 : f32
    %63 = vector.broadcast %cst_36 : f32 to vector<16x32xf32>
    %64 = arith.addf %63, %40 : vector<16x32xf32>
    %65 = arith.mulf %62, %64 : vector<16x32xf32>
    %66 = arith.addf %65, %39 : vector<16x32xf32>
    %c0_37 = arith.constant 0 : index
    %c0_38 = arith.constant 0 : index
    %c0_39 = arith.constant 0 : index
    %67 = vector.load %arg16[%c0_37, %c0_38, %c0_39] : memref<2x32x96xf32, #tpu.memory_space<vmem>>, vector<1x32x96xf32>
    %68 = vector.shape_cast %67 : vector<1x32x96xf32> to vector<32x96xf32>
    %cst_40 = arith.constant dense<0.000000e+00> : vector<16x96xf32>
    %69 = tpu.matmul %66, %68, %cst_40 {dimension_numbers = #tpu.dot_dimension_numbers<[1], [0], [0], [1], [0, 0, 1, 1], [], []>} : vector<16x32xf32>, vector<32x96xf32>, vector<16x96xf32> -> vector<16x96xf32>
    %c0_41 = arith.constant 0 : index
    %c0_42 = arith.constant 0 : index
    %c0_43 = arith.constant 0 : index
    %70 = vector.load %arg17[%c0_41, %c0_42, %c0_43] : memref<2x1x96xf32, #tpu.memory_space<vmem>>, vector<1x1x96xf32>
    %71 = vector.shape_cast %70 : vector<1x1x96xf32> to vector<1x96xf32>
    %72 = vector.broadcast %71 : vector<1x96xf32> to vector<16x96xf32>
    %73 = arith.addf %69, %72 : vector<16x96xf32>
    %c0_44 = arith.constant 0 : index
    %c0_45 = arith.constant 0 : index
    %c0_46 = arith.constant 0 : index
    %74 = vector.load %arg18[%c0_44, %c0_45, %c0_46] : memref<2x32x32xf32, #tpu.memory_space<vmem>>, vector<1x32x32xf32>
    %75 = vector.shape_cast %74 : vector<1x32x32xf32> to vector<32x32xf32>
    %76 = vector.extract_strided_slice %73 {offsets = [0, 0], sizes = [8, 16], strides = [1, 1]} : vector<16x96xf32> to vector<8x16xf32>
    %77 = vector.extract_strided_slice %73 {offsets = [0, 32], sizes = [8, 16], strides = [1, 1]} : vector<16x96xf32> to vector<8x16xf32>
    %78 = vector.extract_strided_slice %73 {offsets = [0, 64], sizes = [8, 16], strides = [1, 1]} : vector<16x96xf32> to vector<8x16xf32>
    %cst_47 = arith.constant dense<0.000000e+00> : vector<8x8xf32>
    %79 = tpu.matmul %76, %77, %cst_47 {dimension_numbers = #tpu.dot_dimension_numbers<[1], [1], [0], [0], [0, 0, 1, 0], [], []>} : vector<8x16xf32>, vector<8x16xf32>, vector<8x8xf32> -> vector<8x8xf32>
    %cst_48 = arith.constant 2.500000e-01 : f32
    %80 = vector.broadcast %cst_48 : f32 to vector<8x8xf32>
    %81 = arith.mulf %79, %80 : vector<8x8xf32>
    %cst_49 = arith.constant dense<0xFF800000> : vector<8xf32>
    %82 = vector.multi_reduction <maximumf>, %81, %cst_49 [1] : vector<8x8xf32> to vector<8xf32>
    %cst_50 = arith.constant 0xFF800000 : f32
    %83 = vector.broadcast %cst_50 : f32 to vector<8xf32>
    %84 = arith.maximumf %83, %82 : vector<8xf32>
    %85 = vector.shape_cast %84 : vector<8xf32> to vector<8x1xf32>
    %86 = vector.broadcast %85 : vector<8x1xf32> to vector<8x8xf32>
    %87 = arith.subf %81, %86 : vector<8x8xf32>
    %88 = math.exp %87 : vector<8x8xf32>
    %cst_51 = arith.constant dense<0.000000e+00> : vector<8xf32>
    %89 = vector.multi_reduction <add>, %88, %cst_51 [1] : vector<8x8xf32> to vector<8xf32>
    %90 = vector.shape_cast %89 : vector<8xf32> to vector<8x1xf32>
    %91 = vector.broadcast %90 : vector<8x1xf32> to vector<8x8xf32>
    %92 = arith.divf %88, %91 : vector<8x8xf32>
    %cst_52 = arith.constant dense<0.000000e+00> : vector<8x16xf32>
    %93 = tpu.matmul %92, %78, %cst_52 {dimension_numbers = #tpu.dot_dimension_numbers<[1], [0], [0], [1], [0, 0, 1, 1], [], []>} : vector<8x8xf32>, vector<8x16xf32>, vector<8x16xf32> -> vector<8x16xf32>
    %94 = vector.extract_strided_slice %73 {offsets = [0, 16], sizes = [8, 16], strides = [1, 1]} : vector<16x96xf32> to vector<8x16xf32>
    %95 = vector.extract_strided_slice %73 {offsets = [0, 48], sizes = [8, 16], strides = [1, 1]} : vector<16x96xf32> to vector<8x16xf32>
    %96 = vector.extract_strided_slice %73 {offsets = [0, 80], sizes = [8, 16], strides = [1, 1]} : vector<16x96xf32> to vector<8x16xf32>
    %cst_53 = arith.constant dense<0.000000e+00> : vector<8x8xf32>
    %97 = tpu.matmul %94, %95, %cst_53 {dimension_numbers = #tpu.dot_dimension_numbers<[1], [1], [0], [0], [0, 0, 1, 0], [], []>} : vector<8x16xf32>, vector<8x16xf32>, vector<8x8xf32> -> vector<8x8xf32>
    %cst_54 = arith.constant 2.500000e-01 : f32
    %98 = vector.broadcast %cst_54 : f32 to vector<8x8xf32>
    %99 = arith.mulf %97, %98 : vector<8x8xf32>
    %cst_55 = arith.constant dense<0xFF800000> : vector<8xf32>
    %100 = vector.multi_reduction <maximumf>, %99, %cst_55 [1] : vector<8x8xf32> to vector<8xf32>
    %cst_56 = arith.constant 0xFF800000 : f32
    %101 = vector.broadcast %cst_56 : f32 to vector<8xf32>
    %102 = arith.maximumf %101, %100 : vector<8xf32>
    %103 = vector.shape_cast %102 : vector<8xf32> to vector<8x1xf32>
    %104 = vector.broadcast %103 : vector<8x1xf32> to vector<8x8xf32>
    %105 = arith.subf %99, %104 : vector<8x8xf32>
    %106 = math.exp %105 : vector<8x8xf32>
    %cst_57 = arith.constant dense<0.000000e+00> : vector<8xf32>
    %107 = vector.multi_reduction <add>, %106, %cst_57 [1] : vector<8x8xf32> to vector<8xf32>
    %108 = vector.shape_cast %107 : vector<8xf32> to vector<8x1xf32>
    %109 = vector.broadcast %108 : vector<8x1xf32> to vector<8x8xf32>
    %110 = arith.divf %106, %109 : vector<8x8xf32>
    %cst_58 = arith.constant dense<0.000000e+00> : vector<8x16xf32>
    %111 = tpu.matmul %110, %96, %cst_58 {dimension_numbers = #tpu.dot_dimension_numbers<[1], [0], [0], [1], [0, 0, 1, 1], [], []>} : vector<8x8xf32>, vector<8x16xf32>, vector<8x16xf32> -> vector<8x16xf32>
    %112 = tpu.concatenate %93, %111 in 1 : vector<8x16xf32>, vector<8x16xf32> -> vector<8x32xf32>
    %cst_59 = arith.constant dense<0.000000e+00> : vector<8x32xf32>
    %113 = tpu.matmul %112, %75, %cst_59 {dimension_numbers = #tpu.dot_dimension_numbers<[1], [0], [0], [1], [0, 0, 1, 1], [], []>} : vector<8x32xf32>, vector<32x32xf32>, vector<8x32xf32> -> vector<8x32xf32>
    %114 = vector.extract_strided_slice %73 {offsets = [8, 0], sizes = [8, 16], strides = [1, 1]} : vector<16x96xf32> to vector<8x16xf32>
    %115 = vector.extract_strided_slice %73 {offsets = [8, 32], sizes = [8, 16], strides = [1, 1]} : vector<16x96xf32> to vector<8x16xf32>
    %116 = vector.extract_strided_slice %73 {offsets = [8, 64], sizes = [8, 16], strides = [1, 1]} : vector<16x96xf32> to vector<8x16xf32>
    %cst_60 = arith.constant dense<0.000000e+00> : vector<8x8xf32>
    %117 = tpu.matmul %114, %115, %cst_60 {dimension_numbers = #tpu.dot_dimension_numbers<[1], [1], [0], [0], [0, 0, 1, 0], [], []>} : vector<8x16xf32>, vector<8x16xf32>, vector<8x8xf32> -> vector<8x8xf32>
    %cst_61 = arith.constant 2.500000e-01 : f32
    %118 = vector.broadcast %cst_61 : f32 to vector<8x8xf32>
    %119 = arith.mulf %117, %118 : vector<8x8xf32>
    %cst_62 = arith.constant dense<0xFF800000> : vector<8xf32>
    %120 = vector.multi_reduction <maximumf>, %119, %cst_62 [1] : vector<8x8xf32> to vector<8xf32>
    %cst_63 = arith.constant 0xFF800000 : f32
    %121 = vector.broadcast %cst_63 : f32 to vector<8xf32>
    %122 = arith.maximumf %121, %120 : vector<8xf32>
    %123 = vector.shape_cast %122 : vector<8xf32> to vector<8x1xf32>
    %124 = vector.broadcast %123 : vector<8x1xf32> to vector<8x8xf32>
    %125 = arith.subf %119, %124 : vector<8x8xf32>
    %126 = math.exp %125 : vector<8x8xf32>
    %cst_64 = arith.constant dense<0.000000e+00> : vector<8xf32>
    %127 = vector.multi_reduction <add>, %126, %cst_64 [1] : vector<8x8xf32> to vector<8xf32>
    %128 = vector.shape_cast %127 : vector<8xf32> to vector<8x1xf32>
    %129 = vector.broadcast %128 : vector<8x1xf32> to vector<8x8xf32>
    %130 = arith.divf %126, %129 : vector<8x8xf32>
    %cst_65 = arith.constant dense<0.000000e+00> : vector<8x16xf32>
    %131 = tpu.matmul %130, %116, %cst_65 {dimension_numbers = #tpu.dot_dimension_numbers<[1], [0], [0], [1], [0, 0, 1, 1], [], []>} : vector<8x8xf32>, vector<8x16xf32>, vector<8x16xf32> -> vector<8x16xf32>
    %132 = vector.extract_strided_slice %73 {offsets = [8, 16], sizes = [8, 16], strides = [1, 1]} : vector<16x96xf32> to vector<8x16xf32>
    %133 = vector.extract_strided_slice %73 {offsets = [8, 48], sizes = [8, 16], strides = [1, 1]} : vector<16x96xf32> to vector<8x16xf32>
    %134 = vector.extract_strided_slice %73 {offsets = [8, 80], sizes = [8, 16], strides = [1, 1]} : vector<16x96xf32> to vector<8x16xf32>
    %cst_66 = arith.constant dense<0.000000e+00> : vector<8x8xf32>
    %135 = tpu.matmul %132, %133, %cst_66 {dimension_numbers = #tpu.dot_dimension_numbers<[1], [1], [0], [0], [0, 0, 1, 0], [], []>} : vector<8x16xf32>, vector<8x16xf32>, vector<8x8xf32> -> vector<8x8xf32>
    %cst_67 = arith.constant 2.500000e-01 : f32
    %136 = vector.broadcast %cst_67 : f32 to vector<8x8xf32>
    %137 = arith.mulf %135, %136 : vector<8x8xf32>
    %cst_68 = arith.constant dense<0xFF800000> : vector<8xf32>
    %138 = vector.multi_reduction <maximumf>, %137, %cst_68 [1] : vector<8x8xf32> to vector<8xf32>
    %cst_69 = arith.constant 0xFF800000 : f32
    %139 = vector.broadcast %cst_69 : f32 to vector<8xf32>
    %140 = arith.maximumf %139, %138 : vector<8xf32>
    %141 = vector.shape_cast %140 : vector<8xf32> to vector<8x1xf32>
    %142 = vector.broadcast %141 : vector<8x1xf32> to vector<8x8xf32>
    %143 = arith.subf %137, %142 : vector<8x8xf32>
    %144 = math.exp %143 : vector<8x8xf32>
    %cst_70 = arith.constant dense<0.000000e+00> : vector<8xf32>
    %145 = vector.multi_reduction <add>, %144, %cst_70 [1] : vector<8x8xf32> to vector<8xf32>
    %146 = vector.shape_cast %145 : vector<8xf32> to vector<8x1xf32>
    %147 = vector.broadcast %146 : vector<8x1xf32> to vector<8x8xf32>
    %148 = arith.divf %144, %147 : vector<8x8xf32>
    %cst_71 = arith.constant dense<0.000000e+00> : vector<8x16xf32>
    %149 = tpu.matmul %148, %134, %cst_71 {dimension_numbers = #tpu.dot_dimension_numbers<[1], [0], [0], [1], [0, 0, 1, 1], [], []>} : vector<8x8xf32>, vector<8x16xf32>, vector<8x16xf32> -> vector<8x16xf32>
    %150 = tpu.concatenate %131, %149 in 1 : vector<8x16xf32>, vector<8x16xf32> -> vector<8x32xf32>
    %cst_72 = arith.constant dense<0.000000e+00> : vector<8x32xf32>
    %151 = tpu.matmul %150, %75, %cst_72 {dimension_numbers = #tpu.dot_dimension_numbers<[1], [0], [0], [1], [0, 0, 1, 1], [], []>} : vector<8x32xf32>, vector<32x32xf32>, vector<8x32xf32> -> vector<8x32xf32>
    %152 = tpu.concatenate %113, %151 in 0 : vector<8x32xf32>, vector<8x32xf32> -> vector<16x32xf32>
    %c0_73 = arith.constant 0 : index
    %c0_74 = arith.constant 0 : index
    %c0_75 = arith.constant 0 : index
    %153 = vector.load %arg19[%c0_73, %c0_74, %c0_75] : memref<2x1x32xf32, #tpu.memory_space<vmem>>, vector<1x1x32xf32>
    %154 = vector.shape_cast %153 : vector<1x1x32xf32> to vector<1x32xf32>
    %155 = vector.broadcast %154 : vector<1x32xf32> to vector<16x32xf32>
    %156 = arith.addf %152, %155 : vector<16x32xf32>
    %157 = arith.mulf %41, %156 : vector<16x32xf32>
    %158 = arith.addf %38, %157 : vector<16x32xf32>
    %cst_76 = arith.constant dense<0.000000e+00> : vector<16xf32>
    %159 = vector.multi_reduction <add>, %158, %cst_76 [1] : vector<16x32xf32> to vector<16xf32>
    %160 = vector.shape_cast %159 : vector<16xf32> to vector<16x1xf32>
    %cst_77 = arith.constant 3.200000e+01 : f32
    %161 = vector.broadcast %cst_77 : f32 to vector<16x1xf32>
    %162 = arith.divf %160, %161 : vector<16x1xf32>
    %163 = vector.broadcast %162 : vector<16x1xf32> to vector<16x32xf32>
    %164 = arith.subf %158, %163 : vector<16x32xf32>
    %165 = arith.mulf %164, %164 : vector<16x32xf32>
    %cst_78 = arith.constant dense<0.000000e+00> : vector<16xf32>
    %166 = vector.multi_reduction <add>, %165, %cst_78 [1] : vector<16x32xf32> to vector<16xf32>
    %167 = vector.shape_cast %166 : vector<16xf32> to vector<16x1xf32>
    %cst_79 = arith.constant 3.200000e+01 : f32
    %168 = vector.broadcast %cst_79 : f32 to vector<16x1xf32>
    %169 = arith.divf %167, %168 : vector<16x1xf32>
    %170 = vector.broadcast %162 : vector<16x1xf32> to vector<16x32xf32>
    %171 = arith.subf %158, %170 : vector<16x32xf32>
    %cst_80 = arith.constant 9.99999997E-7 : f32
    %172 = vector.broadcast %cst_80 : f32 to vector<16x1xf32>
    %173 = arith.addf %169, %172 : vector<16x1xf32>
    %174 = math.rsqrt %173 : vector<16x1xf32>
    %175 = vector.broadcast %174 : vector<16x1xf32> to vector<16x32xf32>
    %176 = arith.mulf %171, %175 : vector<16x32xf32>
    %cst_81 = arith.constant 1.000000e+00 : f32
    %177 = vector.broadcast %cst_81 : f32 to vector<16x32xf32>
    %178 = arith.addf %177, %43 : vector<16x32xf32>
    %179 = arith.mulf %176, %178 : vector<16x32xf32>
    %180 = arith.addf %179, %42 : vector<16x32xf32>
    %c0_82 = arith.constant 0 : index
    %c0_83 = arith.constant 0 : index
    %c0_84 = arith.constant 0 : index
    %181 = vector.load %arg20[%c0_82, %c0_83, %c0_84] : memref<2x32x128xf32, #tpu.memory_space<vmem>>, vector<1x32x128xf32>
    %182 = vector.shape_cast %181 : vector<1x32x128xf32> to vector<32x128xf32>
    %cst_85 = arith.constant dense<0.000000e+00> : vector<16x128xf32>
    %183 = tpu.matmul %180, %182, %cst_85 {dimension_numbers = #tpu.dot_dimension_numbers<[1], [0], [0], [1], [0, 0, 1, 1], [], []>} : vector<16x32xf32>, vector<32x128xf32>, vector<16x128xf32> -> vector<16x128xf32>
    %c0_86 = arith.constant 0 : index
    %c0_87 = arith.constant 0 : index
    %c0_88 = arith.constant 0 : index
    %184 = vector.load %arg21[%c0_86, %c0_87, %c0_88] : memref<2x1x128xf32, #tpu.memory_space<vmem>>, vector<1x1x128xf32>
    %185 = vector.shape_cast %184 : vector<1x1x128xf32> to vector<1x128xf32>
    %186 = vector.broadcast %185 : vector<1x128xf32> to vector<16x128xf32>
    %187 = arith.addf %183, %186 : vector<16x128xf32>
    %cst_89 = arith.constant 5.000000e-01 : f32
    %188 = vector.broadcast %cst_89 : f32 to vector<16x128xf32>
    %189 = arith.mulf %188, %187 : vector<16x128xf32>
    %cst_90 = arith.constant 4.471500e-02 : f32
    %190 = vector.broadcast %cst_90 : f32 to vector<16x128xf32>
    %191 = arith.mulf %190, %187 : vector<16x128xf32>
    %192 = arith.mulf %191, %187 : vector<16x128xf32>
    %193 = arith.mulf %192, %187 : vector<16x128xf32>
    %194 = arith.addf %187, %193 : vector<16x128xf32>
    %cst_91 = arith.constant 0.797884583 : f32
    %195 = vector.broadcast %cst_91 : f32 to vector<16x128xf32>
    %196 = arith.mulf %195, %194 : vector<16x128xf32>
    %197 = math.tanh %196 : vector<16x128xf32>
    %cst_92 = arith.constant 1.000000e+00 : f32
    %198 = vector.broadcast %cst_92 : f32 to vector<16x128xf32>
    %199 = arith.addf %198, %197 : vector<16x128xf32>
    %200 = arith.mulf %189, %199 : vector<16x128xf32>
    %c0_93 = arith.constant 0 : index
    %c0_94 = arith.constant 0 : index
    %c0_95 = arith.constant 0 : index
    %201 = vector.load %arg22[%c0_93, %c0_94, %c0_95] : memref<2x128x32xf32, #tpu.memory_space<vmem>>, vector<1x128x32xf32>
    %202 = vector.shape_cast %201 : vector<1x128x32xf32> to vector<128x32xf32>
    %cst_96 = arith.constant dense<0.000000e+00> : vector<16x32xf32>
    %203 = tpu.matmul %200, %202, %cst_96 {dimension_numbers = #tpu.dot_dimension_numbers<[1], [0], [0], [1], [0, 0, 1, 1], [], []>} : vector<16x128xf32>, vector<128x32xf32>, vector<16x32xf32> -> vector<16x32xf32>
    %c0_97 = arith.constant 0 : index
    %c0_98 = arith.constant 0 : index
    %c0_99 = arith.constant 0 : index
    %204 = vector.load %arg23[%c0_97, %c0_98, %c0_99] : memref<2x1x32xf32, #tpu.memory_space<vmem>>, vector<1x1x32xf32>
    %205 = vector.shape_cast %204 : vector<1x1x32xf32> to vector<1x32xf32>
    %206 = vector.broadcast %205 : vector<1x32xf32> to vector<16x32xf32>
    %207 = arith.addf %203, %206 : vector<16x32xf32>
    %208 = arith.mulf %44, %207 : vector<16x32xf32>
    %209 = arith.addf %158, %208 : vector<16x32xf32>
    %210 = vector.extract_strided_slice %33 {offsets = [0, 192], sizes = [16, 32], strides = [1, 1]} : vector<16x448xf32> to vector<16x32xf32>
    %211 = vector.extract_strided_slice %33 {offsets = [0, 224], sizes = [16, 32], strides = [1, 1]} : vector<16x448xf32> to vector<16x32xf32>
    %212 = vector.extract_strided_slice %33 {offsets = [0, 256], sizes = [16, 32], strides = [1, 1]} : vector<16x448xf32> to vector<16x32xf32>
    %213 = vector.extract_strided_slice %33 {offsets = [0, 288], sizes = [16, 32], strides = [1, 1]} : vector<16x448xf32> to vector<16x32xf32>
    %214 = vector.extract_strided_slice %33 {offsets = [0, 320], sizes = [16, 32], strides = [1, 1]} : vector<16x448xf32> to vector<16x32xf32>
    %215 = vector.extract_strided_slice %33 {offsets = [0, 352], sizes = [16, 32], strides = [1, 1]} : vector<16x448xf32> to vector<16x32xf32>
    %cst_100 = arith.constant dense<0.000000e+00> : vector<16xf32>
    %216 = vector.multi_reduction <add>, %209, %cst_100 [1] : vector<16x32xf32> to vector<16xf32>
    %217 = vector.shape_cast %216 : vector<16xf32> to vector<16x1xf32>
    %cst_101 = arith.constant 3.200000e+01 : f32
    %218 = vector.broadcast %cst_101 : f32 to vector<16x1xf32>
    %219 = arith.divf %217, %218 : vector<16x1xf32>
    %220 = vector.broadcast %219 : vector<16x1xf32> to vector<16x32xf32>
    %221 = arith.subf %209, %220 : vector<16x32xf32>
    %222 = arith.mulf %221, %221 : vector<16x32xf32>
    %cst_102 = arith.constant dense<0.000000e+00> : vector<16xf32>
    %223 = vector.multi_reduction <add>, %222, %cst_102 [1] : vector<16x32xf32> to vector<16xf32>
    %224 = vector.shape_cast %223 : vector<16xf32> to vector<16x1xf32>
    %cst_103 = arith.constant 3.200000e+01 : f32
    %225 = vector.broadcast %cst_103 : f32 to vector<16x1xf32>
    %226 = arith.divf %224, %225 : vector<16x1xf32>
    %227 = vector.broadcast %219 : vector<16x1xf32> to vector<16x32xf32>
    %228 = arith.subf %209, %227 : vector<16x32xf32>
    %cst_104 = arith.constant 9.99999997E-7 : f32
    %229 = vector.broadcast %cst_104 : f32 to vector<16x1xf32>
    %230 = arith.addf %226, %229 : vector<16x1xf32>
    %231 = math.rsqrt %230 : vector<16x1xf32>
    %232 = vector.broadcast %231 : vector<16x1xf32> to vector<16x32xf32>
    %233 = arith.mulf %228, %232 : vector<16x32xf32>
    %cst_105 = arith.constant 1.000000e+00 : f32
    %234 = vector.broadcast %cst_105 : f32 to vector<16x32xf32>
    %235 = arith.addf %234, %211 : vector<16x32xf32>
    %236 = arith.mulf %233, %235 : vector<16x32xf32>
    %237 = arith.addf %236, %210 : vector<16x32xf32>
    %c1 = arith.constant 1 : index
    %c0_106 = arith.constant 0 : index
    %c0_107 = arith.constant 0 : index
    %238 = vector.load %arg16[%c1, %c0_106, %c0_107] : memref<2x32x96xf32, #tpu.memory_space<vmem>>, vector<1x32x96xf32>
    %239 = vector.shape_cast %238 : vector<1x32x96xf32> to vector<32x96xf32>
    %cst_108 = arith.constant dense<0.000000e+00> : vector<16x96xf32>
    %240 = tpu.matmul %237, %239, %cst_108 {dimension_numbers = #tpu.dot_dimension_numbers<[1], [0], [0], [1], [0, 0, 1, 1], [], []>} : vector<16x32xf32>, vector<32x96xf32>, vector<16x96xf32> -> vector<16x96xf32>
    %c1_109 = arith.constant 1 : index
    %c0_110 = arith.constant 0 : index
    %c0_111 = arith.constant 0 : index
    %241 = vector.load %arg17[%c1_109, %c0_110, %c0_111] : memref<2x1x96xf32, #tpu.memory_space<vmem>>, vector<1x1x96xf32>
    %242 = vector.shape_cast %241 : vector<1x1x96xf32> to vector<1x96xf32>
    %243 = vector.broadcast %242 : vector<1x96xf32> to vector<16x96xf32>
    %244 = arith.addf %240, %243 : vector<16x96xf32>
    %c1_112 = arith.constant 1 : index
    %c0_113 = arith.constant 0 : index
    %c0_114 = arith.constant 0 : index
    %245 = vector.load %arg18[%c1_112, %c0_113, %c0_114] : memref<2x32x32xf32, #tpu.memory_space<vmem>>, vector<1x32x32xf32>
    %246 = vector.shape_cast %245 : vector<1x32x32xf32> to vector<32x32xf32>
    %247 = vector.extract_strided_slice %244 {offsets = [0, 0], sizes = [8, 16], strides = [1, 1]} : vector<16x96xf32> to vector<8x16xf32>
    %248 = vector.extract_strided_slice %244 {offsets = [0, 32], sizes = [8, 16], strides = [1, 1]} : vector<16x96xf32> to vector<8x16xf32>
    %249 = vector.extract_strided_slice %244 {offsets = [0, 64], sizes = [8, 16], strides = [1, 1]} : vector<16x96xf32> to vector<8x16xf32>
    %cst_115 = arith.constant dense<0.000000e+00> : vector<8x8xf32>
    %250 = tpu.matmul %247, %248, %cst_115 {dimension_numbers = #tpu.dot_dimension_numbers<[1], [1], [0], [0], [0, 0, 1, 0], [], []>} : vector<8x16xf32>, vector<8x16xf32>, vector<8x8xf32> -> vector<8x8xf32>
    %cst_116 = arith.constant 2.500000e-01 : f32
    %251 = vector.broadcast %cst_116 : f32 to vector<8x8xf32>
    %252 = arith.mulf %250, %251 : vector<8x8xf32>
    %cst_117 = arith.constant dense<0xFF800000> : vector<8xf32>
    %253 = vector.multi_reduction <maximumf>, %252, %cst_117 [1] : vector<8x8xf32> to vector<8xf32>
    %cst_118 = arith.constant 0xFF800000 : f32
    %254 = vector.broadcast %cst_118 : f32 to vector<8xf32>
    %255 = arith.maximumf %254, %253 : vector<8xf32>
    %256 = vector.shape_cast %255 : vector<8xf32> to vector<8x1xf32>
    %257 = vector.broadcast %256 : vector<8x1xf32> to vector<8x8xf32>
    %258 = arith.subf %252, %257 : vector<8x8xf32>
    %259 = math.exp %258 : vector<8x8xf32>
    %cst_119 = arith.constant dense<0.000000e+00> : vector<8xf32>
    %260 = vector.multi_reduction <add>, %259, %cst_119 [1] : vector<8x8xf32> to vector<8xf32>
    %261 = vector.shape_cast %260 : vector<8xf32> to vector<8x1xf32>
    %262 = vector.broadcast %261 : vector<8x1xf32> to vector<8x8xf32>
    %263 = arith.divf %259, %262 : vector<8x8xf32>
    %cst_120 = arith.constant dense<0.000000e+00> : vector<8x16xf32>
    %264 = tpu.matmul %263, %249, %cst_120 {dimension_numbers = #tpu.dot_dimension_numbers<[1], [0], [0], [1], [0, 0, 1, 1], [], []>} : vector<8x8xf32>, vector<8x16xf32>, vector<8x16xf32> -> vector<8x16xf32>
    %265 = vector.extract_strided_slice %244 {offsets = [0, 16], sizes = [8, 16], strides = [1, 1]} : vector<16x96xf32> to vector<8x16xf32>
    %266 = vector.extract_strided_slice %244 {offsets = [0, 48], sizes = [8, 16], strides = [1, 1]} : vector<16x96xf32> to vector<8x16xf32>
    %267 = vector.extract_strided_slice %244 {offsets = [0, 80], sizes = [8, 16], strides = [1, 1]} : vector<16x96xf32> to vector<8x16xf32>
    %cst_121 = arith.constant dense<0.000000e+00> : vector<8x8xf32>
    %268 = tpu.matmul %265, %266, %cst_121 {dimension_numbers = #tpu.dot_dimension_numbers<[1], [1], [0], [0], [0, 0, 1, 0], [], []>} : vector<8x16xf32>, vector<8x16xf32>, vector<8x8xf32> -> vector<8x8xf32>
    %cst_122 = arith.constant 2.500000e-01 : f32
    %269 = vector.broadcast %cst_122 : f32 to vector<8x8xf32>
    %270 = arith.mulf %268, %269 : vector<8x8xf32>
    %cst_123 = arith.constant dense<0xFF800000> : vector<8xf32>
    %271 = vector.multi_reduction <maximumf>, %270, %cst_123 [1] : vector<8x8xf32> to vector<8xf32>
    %cst_124 = arith.constant 0xFF800000 : f32
    %272 = vector.broadcast %cst_124 : f32 to vector<8xf32>
    %273 = arith.maximumf %272, %271 : vector<8xf32>
    %274 = vector.shape_cast %273 : vector<8xf32> to vector<8x1xf32>
    %275 = vector.broadcast %274 : vector<8x1xf32> to vector<8x8xf32>
    %276 = arith.subf %270, %275 : vector<8x8xf32>
    %277 = math.exp %276 : vector<8x8xf32>
    %cst_125 = arith.constant dense<0.000000e+00> : vector<8xf32>
    %278 = vector.multi_reduction <add>, %277, %cst_125 [1] : vector<8x8xf32> to vector<8xf32>
    %279 = vector.shape_cast %278 : vector<8xf32> to vector<8x1xf32>
    %280 = vector.broadcast %279 : vector<8x1xf32> to vector<8x8xf32>
    %281 = arith.divf %277, %280 : vector<8x8xf32>
    %cst_126 = arith.constant dense<0.000000e+00> : vector<8x16xf32>
    %282 = tpu.matmul %281, %267, %cst_126 {dimension_numbers = #tpu.dot_dimension_numbers<[1], [0], [0], [1], [0, 0, 1, 1], [], []>} : vector<8x8xf32>, vector<8x16xf32>, vector<8x16xf32> -> vector<8x16xf32>
    %283 = tpu.concatenate %264, %282 in 1 : vector<8x16xf32>, vector<8x16xf32> -> vector<8x32xf32>
    %cst_127 = arith.constant dense<0.000000e+00> : vector<8x32xf32>
    %284 = tpu.matmul %283, %246, %cst_127 {dimension_numbers = #tpu.dot_dimension_numbers<[1], [0], [0], [1], [0, 0, 1, 1], [], []>} : vector<8x32xf32>, vector<32x32xf32>, vector<8x32xf32> -> vector<8x32xf32>
    %285 = vector.extract_strided_slice %244 {offsets = [8, 0], sizes = [8, 16], strides = [1, 1]} : vector<16x96xf32> to vector<8x16xf32>
    %286 = vector.extract_strided_slice %244 {offsets = [8, 32], sizes = [8, 16], strides = [1, 1]} : vector<16x96xf32> to vector<8x16xf32>
    %287 = vector.extract_strided_slice %244 {offsets = [8, 64], sizes = [8, 16], strides = [1, 1]} : vector<16x96xf32> to vector<8x16xf32>
    %cst_128 = arith.constant dense<0.000000e+00> : vector<8x8xf32>
    %288 = tpu.matmul %285, %286, %cst_128 {dimension_numbers = #tpu.dot_dimension_numbers<[1], [1], [0], [0], [0, 0, 1, 0], [], []>} : vector<8x16xf32>, vector<8x16xf32>, vector<8x8xf32> -> vector<8x8xf32>
    %cst_129 = arith.constant 2.500000e-01 : f32
    %289 = vector.broadcast %cst_129 : f32 to vector<8x8xf32>
    %290 = arith.mulf %288, %289 : vector<8x8xf32>
    %cst_130 = arith.constant dense<0xFF800000> : vector<8xf32>
    %291 = vector.multi_reduction <maximumf>, %290, %cst_130 [1] : vector<8x8xf32> to vector<8xf32>
    %cst_131 = arith.constant 0xFF800000 : f32
    %292 = vector.broadcast %cst_131 : f32 to vector<8xf32>
    %293 = arith.maximumf %292, %291 : vector<8xf32>
    %294 = vector.shape_cast %293 : vector<8xf32> to vector<8x1xf32>
    %295 = vector.broadcast %294 : vector<8x1xf32> to vector<8x8xf32>
    %296 = arith.subf %290, %295 : vector<8x8xf32>
    %297 = math.exp %296 : vector<8x8xf32>
    %cst_132 = arith.constant dense<0.000000e+00> : vector<8xf32>
    %298 = vector.multi_reduction <add>, %297, %cst_132 [1] : vector<8x8xf32> to vector<8xf32>
    %299 = vector.shape_cast %298 : vector<8xf32> to vector<8x1xf32>
    %300 = vector.broadcast %299 : vector<8x1xf32> to vector<8x8xf32>
    %301 = arith.divf %297, %300 : vector<8x8xf32>
    %cst_133 = arith.constant dense<0.000000e+00> : vector<8x16xf32>
    %302 = tpu.matmul %301, %287, %cst_133 {dimension_numbers = #tpu.dot_dimension_numbers<[1], [0], [0], [1], [0, 0, 1, 1], [], []>} : vector<8x8xf32>, vector<8x16xf32>, vector<8x16xf32> -> vector<8x16xf32>
    %303 = vector.extract_strided_slice %244 {offsets = [8, 16], sizes = [8, 16], strides = [1, 1]} : vector<16x96xf32> to vector<8x16xf32>
    %304 = vector.extract_strided_slice %244 {offsets = [8, 48], sizes = [8, 16], strides = [1, 1]} : vector<16x96xf32> to vector<8x16xf32>
    %305 = vector.extract_strided_slice %244 {offsets = [8, 80], sizes = [8, 16], strides = [1, 1]} : vector<16x96xf32> to vector<8x16xf32>
    %cst_134 = arith.constant dense<0.000000e+00> : vector<8x8xf32>
    %306 = tpu.matmul %303, %304, %cst_134 {dimension_numbers = #tpu.dot_dimension_numbers<[1], [1], [0], [0], [0, 0, 1, 0], [], []>} : vector<8x16xf32>, vector<8x16xf32>, vector<8x8xf32> -> vector<8x8xf32>
    %cst_135 = arith.constant 2.500000e-01 : f32
    %307 = vector.broadcast %cst_135 : f32 to vector<8x8xf32>
    %308 = arith.mulf %306, %307 : vector<8x8xf32>
    %cst_136 = arith.constant dense<0xFF800000> : vector<8xf32>
    %309 = vector.multi_reduction <maximumf>, %308, %cst_136 [1] : vector<8x8xf32> to vector<8xf32>
    %cst_137 = arith.constant 0xFF800000 : f32
    %310 = vector.broadcast %cst_137 : f32 to vector<8xf32>
    %311 = arith.maximumf %310, %309 : vector<8xf32>
    %312 = vector.shape_cast %311 : vector<8xf32> to vector<8x1xf32>
    %313 = vector.broadcast %312 : vector<8x1xf32> to vector<8x8xf32>
    %314 = arith.subf %308, %313 : vector<8x8xf32>
    %315 = math.exp %314 : vector<8x8xf32>
    %cst_138 = arith.constant dense<0.000000e+00> : vector<8xf32>
    %316 = vector.multi_reduction <add>, %315, %cst_138 [1] : vector<8x8xf32> to vector<8xf32>
    %317 = vector.shape_cast %316 : vector<8xf32> to vector<8x1xf32>
    %318 = vector.broadcast %317 : vector<8x1xf32> to vector<8x8xf32>
    %319 = arith.divf %315, %318 : vector<8x8xf32>
    %cst_139 = arith.constant dense<0.000000e+00> : vector<8x16xf32>
    %320 = tpu.matmul %319, %305, %cst_139 {dimension_numbers = #tpu.dot_dimension_numbers<[1], [0], [0], [1], [0, 0, 1, 1], [], []>} : vector<8x8xf32>, vector<8x16xf32>, vector<8x16xf32> -> vector<8x16xf32>
    %321 = tpu.concatenate %302, %320 in 1 : vector<8x16xf32>, vector<8x16xf32> -> vector<8x32xf32>
    %cst_140 = arith.constant dense<0.000000e+00> : vector<8x32xf32>
    %322 = tpu.matmul %321, %246, %cst_140 {dimension_numbers = #tpu.dot_dimension_numbers<[1], [0], [0], [1], [0, 0, 1, 1], [], []>} : vector<8x32xf32>, vector<32x32xf32>, vector<8x32xf32> -> vector<8x32xf32>
    %323 = tpu.concatenate %284, %322 in 0 : vector<8x32xf32>, vector<8x32xf32> -> vector<16x32xf32>
    %c1_141 = arith.constant 1 : index
    %c0_142 = arith.constant 0 : index
    %c0_143 = arith.constant 0 : index
    %324 = vector.load %arg19[%c1_141, %c0_142, %c0_143] : memref<2x1x32xf32, #tpu.memory_space<vmem>>, vector<1x1x32xf32>
    %325 = vector.shape_cast %324 : vector<1x1x32xf32> to vector<1x32xf32>
    %326 = vector.broadcast %325 : vector<1x32xf32> to vector<16x32xf32>
    %327 = arith.addf %323, %326 : vector<16x32xf32>
    %328 = arith.mulf %212, %327 : vector<16x32xf32>
    %329 = arith.addf %209, %328 : vector<16x32xf32>
    %cst_144 = arith.constant dense<0.000000e+00> : vector<16xf32>
    %330 = vector.multi_reduction <add>, %329, %cst_144 [1] : vector<16x32xf32> to vector<16xf32>
    %331 = vector.shape_cast %330 : vector<16xf32> to vector<16x1xf32>
    %cst_145 = arith.constant 3.200000e+01 : f32
    %332 = vector.broadcast %cst_145 : f32 to vector<16x1xf32>
    %333 = arith.divf %331, %332 : vector<16x1xf32>
    %334 = vector.broadcast %333 : vector<16x1xf32> to vector<16x32xf32>
    %335 = arith.subf %329, %334 : vector<16x32xf32>
    %336 = arith.mulf %335, %335 : vector<16x32xf32>
    %cst_146 = arith.constant dense<0.000000e+00> : vector<16xf32>
    %337 = vector.multi_reduction <add>, %336, %cst_146 [1] : vector<16x32xf32> to vector<16xf32>
    %338 = vector.shape_cast %337 : vector<16xf32> to vector<16x1xf32>
    %cst_147 = arith.constant 3.200000e+01 : f32
    %339 = vector.broadcast %cst_147 : f32 to vector<16x1xf32>
    %340 = arith.divf %338, %339 : vector<16x1xf32>
    %341 = vector.broadcast %333 : vector<16x1xf32> to vector<16x32xf32>
    %342 = arith.subf %329, %341 : vector<16x32xf32>
    %cst_148 = arith.constant 9.99999997E-7 : f32
    %343 = vector.broadcast %cst_148 : f32 to vector<16x1xf32>
    %344 = arith.addf %340, %343 : vector<16x1xf32>
    %345 = math.rsqrt %344 : vector<16x1xf32>
    %346 = vector.broadcast %345 : vector<16x1xf32> to vector<16x32xf32>
    %347 = arith.mulf %342, %346 : vector<16x32xf32>
    %cst_149 = arith.constant 1.000000e+00 : f32
    %348 = vector.broadcast %cst_149 : f32 to vector<16x32xf32>
    %349 = arith.addf %348, %214 : vector<16x32xf32>
    %350 = arith.mulf %347, %349 : vector<16x32xf32>
    %351 = arith.addf %350, %213 : vector<16x32xf32>
    %c1_150 = arith.constant 1 : index
    %c0_151 = arith.constant 0 : index
    %c0_152 = arith.constant 0 : index
    %352 = vector.load %arg20[%c1_150, %c0_151, %c0_152] : memref<2x32x128xf32, #tpu.memory_space<vmem>>, vector<1x32x128xf32>
    %353 = vector.shape_cast %352 : vector<1x32x128xf32> to vector<32x128xf32>
    %cst_153 = arith.constant dense<0.000000e+00> : vector<16x128xf32>
    %354 = tpu.matmul %351, %353, %cst_153 {dimension_numbers = #tpu.dot_dimension_numbers<[1], [0], [0], [1], [0, 0, 1, 1], [], []>} : vector<16x32xf32>, vector<32x128xf32>, vector<16x128xf32> -> vector<16x128xf32>
    %c1_154 = arith.constant 1 : index
    %c0_155 = arith.constant 0 : index
    %c0_156 = arith.constant 0 : index
    %355 = vector.load %arg21[%c1_154, %c0_155, %c0_156] : memref<2x1x128xf32, #tpu.memory_space<vmem>>, vector<1x1x128xf32>
    %356 = vector.shape_cast %355 : vector<1x1x128xf32> to vector<1x128xf32>
    %357 = vector.broadcast %356 : vector<1x128xf32> to vector<16x128xf32>
    %358 = arith.addf %354, %357 : vector<16x128xf32>
    %cst_157 = arith.constant 5.000000e-01 : f32
    %359 = vector.broadcast %cst_157 : f32 to vector<16x128xf32>
    %360 = arith.mulf %359, %358 : vector<16x128xf32>
    %cst_158 = arith.constant 4.471500e-02 : f32
    %361 = vector.broadcast %cst_158 : f32 to vector<16x128xf32>
    %362 = arith.mulf %361, %358 : vector<16x128xf32>
    %363 = arith.mulf %362, %358 : vector<16x128xf32>
    %364 = arith.mulf %363, %358 : vector<16x128xf32>
    %365 = arith.addf %358, %364 : vector<16x128xf32>
    %cst_159 = arith.constant 0.797884583 : f32
    %366 = vector.broadcast %cst_159 : f32 to vector<16x128xf32>
    %367 = arith.mulf %366, %365 : vector<16x128xf32>
    %368 = math.tanh %367 : vector<16x128xf32>
    %cst_160 = arith.constant 1.000000e+00 : f32
    %369 = vector.broadcast %cst_160 : f32 to vector<16x128xf32>
    %370 = arith.addf %369, %368 : vector<16x128xf32>
    %371 = arith.mulf %360, %370 : vector<16x128xf32>
    %c1_161 = arith.constant 1 : index
    %c0_162 = arith.constant 0 : index
    %c0_163 = arith.constant 0 : index
    %372 = vector.load %arg22[%c1_161, %c0_162, %c0_163] : memref<2x128x32xf32, #tpu.memory_space<vmem>>, vector<1x128x32xf32>
    %373 = vector.shape_cast %372 : vector<1x128x32xf32> to vector<128x32xf32>
    %cst_164 = arith.constant dense<0.000000e+00> : vector<16x32xf32>
    %374 = tpu.matmul %371, %373, %cst_164 {dimension_numbers = #tpu.dot_dimension_numbers<[1], [0], [0], [1], [0, 0, 1, 1], [], []>} : vector<16x128xf32>, vector<128x32xf32>, vector<16x32xf32> -> vector<16x32xf32>
    %c1_165 = arith.constant 1 : index
    %c0_166 = arith.constant 0 : index
    %c0_167 = arith.constant 0 : index
    %375 = vector.load %arg23[%c1_165, %c0_166, %c0_167] : memref<2x1x32xf32, #tpu.memory_space<vmem>>, vector<1x1x32xf32>
    %376 = vector.shape_cast %375 : vector<1x1x32xf32> to vector<1x32xf32>
    %377 = vector.broadcast %376 : vector<1x32xf32> to vector<16x32xf32>
    %378 = arith.addf %374, %377 : vector<16x32xf32>
    %379 = arith.mulf %215, %378 : vector<16x32xf32>
    %380 = arith.addf %329, %379 : vector<16x32xf32>
    %381 = vector.extract_strided_slice %33 {offsets = [0, 384], sizes = [16, 32], strides = [1, 1]} : vector<16x448xf32> to vector<16x32xf32>
    %382 = vector.extract_strided_slice %33 {offsets = [0, 416], sizes = [16, 32], strides = [1, 1]} : vector<16x448xf32> to vector<16x32xf32>
    %cst_168 = arith.constant dense<0.000000e+00> : vector<16xf32>
    %383 = vector.multi_reduction <add>, %380, %cst_168 [1] : vector<16x32xf32> to vector<16xf32>
    %384 = vector.shape_cast %383 : vector<16xf32> to vector<16x1xf32>
    %cst_169 = arith.constant 3.200000e+01 : f32
    %385 = vector.broadcast %cst_169 : f32 to vector<16x1xf32>
    %386 = arith.divf %384, %385 : vector<16x1xf32>
    %387 = vector.broadcast %386 : vector<16x1xf32> to vector<16x32xf32>
    %388 = arith.subf %380, %387 : vector<16x32xf32>
    %389 = arith.mulf %388, %388 : vector<16x32xf32>
    %cst_170 = arith.constant dense<0.000000e+00> : vector<16xf32>
    %390 = vector.multi_reduction <add>, %389, %cst_170 [1] : vector<16x32xf32> to vector<16xf32>
    %391 = vector.shape_cast %390 : vector<16xf32> to vector<16x1xf32>
    %cst_171 = arith.constant 3.200000e+01 : f32
    %392 = vector.broadcast %cst_171 : f32 to vector<16x1xf32>
    %393 = arith.divf %391, %392 : vector<16x1xf32>
    %394 = vector.broadcast %386 : vector<16x1xf32> to vector<16x32xf32>
    %395 = arith.subf %380, %394 : vector<16x32xf32>
    %cst_172 = arith.constant 9.99999997E-7 : f32
    %396 = vector.broadcast %cst_172 : f32 to vector<16x1xf32>
    %397 = arith.addf %393, %396 : vector<16x1xf32>
    %398 = math.rsqrt %397 : vector<16x1xf32>
    %399 = vector.broadcast %398 : vector<16x1xf32> to vector<16x32xf32>
    %400 = arith.mulf %395, %399 : vector<16x32xf32>
    %cst_173 = arith.constant 1.000000e+00 : f32
    %401 = vector.broadcast %cst_173 : f32 to vector<16x32xf32>
    %402 = arith.addf %401, %382 : vector<16x32xf32>
    %403 = arith.mulf %400, %402 : vector<16x32xf32>
    %404 = arith.addf %403, %381 : vector<16x32xf32>
    %c0_174 = arith.constant 0 : index
    %c0_175 = arith.constant 0 : index
    %405 = vector.load %arg24[%c0_174, %c0_175] : memref<32x8xf32, #tpu.memory_space<vmem>>, vector<32x8xf32>
    %cst_176 = arith.constant dense<0.000000e+00> : vector<16x8xf32>
    %406 = tpu.matmul %404, %405, %cst_176 {dimension_numbers = #tpu.dot_dimension_numbers<[1], [0], [0], [1], [0, 0, 1, 1], [], []>} : vector<16x32xf32>, vector<32x8xf32>, vector<16x8xf32> -> vector<16x8xf32>
    %c0_177 = arith.constant 0 : index
    %c0_178 = arith.constant 0 : index
    %407 = vector.load %arg25[%c0_177, %c0_178] : memref<1x8xf32, #tpu.memory_space<vmem>>, vector<1x8xf32>
    %408 = vector.broadcast %407 : vector<1x8xf32> to vector<16x8xf32>
    %409 = arith.addf %406, %408 : vector<16x8xf32>
    %c0_179 = arith.constant 0 : index
    %c0_180 = arith.constant 0 : index
    %410 = vector.load %arg26[%c0_179, %c0_180] : memref<16x8xf32, #tpu.memory_space<vmem>>, vector<16x8xf32>
    tpu.vector_store %arg26[%c0_179, %c0_180], %409 {strides = array<i32>} : memref<16x8xf32, #tpu.memory_space<vmem>>, vector<16x8xf32>,
    %cst_181 = arith.constant dense<0xFF800000> : vector<16xf32>
    %411 = vector.multi_reduction <maximumf>, %409, %cst_181 [1] : vector<16x8xf32> to vector<16xf32>
    %cst_182 = arith.constant 0xFF800000 : f32
    %412 = vector.broadcast %cst_182 : f32 to vector<16xf32>
    %413 = arith.maximumf %412, %411 : vector<16xf32>
    %414 = vector.shape_cast %413 : vector<16xf32> to vector<16x1xf32>
    %415 = vector.broadcast %414 : vector<16x1xf32> to vector<16x8xf32>
    %416 = arith.subf %409, %415 : vector<16x8xf32>
    %417 = math.exp %416 : vector<16x8xf32>
    %cst_183 = arith.constant dense<0.000000e+00> : vector<16xf32>
    %418 = vector.multi_reduction <add>, %417, %cst_183 [1] : vector<16x8xf32> to vector<16xf32>
    %419 = vector.shape_cast %418 : vector<16xf32> to vector<16x1xf32>
    %420 = vector.broadcast %419 : vector<16x1xf32> to vector<16x8xf32>
    %421 = arith.divf %417, %420 : vector<16x8xf32>
    %422 = vector.extract_strided_slice %1 {offsets = [0, 0], sizes = [8, 8], strides = [1, 1]} : vector<16x8xf32> to vector<8x8xf32>
    %c0_184 = arith.constant 0 : index
    %c0_185 = arith.constant 0 : index
    %c0_186 = arith.constant 0 : index
    %423 = vector.load %arg5[%c0_184, %c0_185, %c0_186] : memref<2x8x8xf32, #tpu.memory_space<vmem>>, vector<1x8x8xf32>
    %424 = vector.shape_cast %423 : vector<1x8x8xf32> to vector<8x8xf32>
    %cst_187 = arith.constant dense<0.000000e+00> : vector<8x8xf32>
    %425 = tpu.matmul %422, %424, %cst_187 {dimension_numbers = #tpu.dot_dimension_numbers<[1], [1], [0], [0], [0, 0, 1, 0], [], []>} : vector<8x8xf32>, vector<8x8xf32>, vector<8x8xf32> -> vector<8x8xf32>
    %426 = vector.extract_strided_slice %421 {offsets = [0, 0], sizes = [8, 8], strides = [1, 1]} : vector<16x8xf32> to vector<8x8xf32>
    %c0_188 = arith.constant 0 : index
    %c0_189 = arith.constant 0 : index
    %c0_190 = arith.constant 0 : index
    %427 = vector.load %arg4[%c0_188, %c0_189, %c0_190] : memref<2x8x8xf32, #tpu.memory_space<vmem>>, vector<1x8x8xf32>
    %428 = vector.shape_cast %427 : vector<1x8x8xf32> to vector<8x8xf32>
    %cst_191 = arith.constant dense<0.000000e+00> : vector<8x8xf32>
    %429 = tpu.matmul %426, %428, %cst_191 {dimension_numbers = #tpu.dot_dimension_numbers<[1], [0], [0], [1], [0, 0, 1, 1], [], []>} : vector<8x8xf32>, vector<8x8xf32>, vector<8x8xf32> -> vector<8x8xf32>
    %430 = vector.extract_strided_slice %1 {offsets = [8, 0], sizes = [8, 8], strides = [1, 1]} : vector<16x8xf32> to vector<8x8xf32>
    %c1_192 = arith.constant 1 : index
    %c0_193 = arith.constant 0 : index
    %c0_194 = arith.constant 0 : index
    %431 = vector.load %arg5[%c1_192, %c0_193, %c0_194] : memref<2x8x8xf32, #tpu.memory_space<vmem>>, vector<1x8x8xf32>
    %432 = vector.shape_cast %431 : vector<1x8x8xf32> to vector<8x8xf32>
    %cst_195 = arith.constant dense<0.000000e+00> : vector<8x8xf32>
    %433 = tpu.matmul %430, %432, %cst_195 {dimension_numbers = #tpu.dot_dimension_numbers<[1], [1], [0], [0], [0, 0, 1, 0], [], []>} : vector<8x8xf32>, vector<8x8xf32>, vector<8x8xf32> -> vector<8x8xf32>
    %434 = vector.extract_strided_slice %421 {offsets = [8, 0], sizes = [8, 8], strides = [1, 1]} : vector<16x8xf32> to vector<8x8xf32>
    %c1_196 = arith.constant 1 : index
    %c0_197 = arith.constant 0 : index
    %c0_198 = arith.constant 0 : index
    %435 = vector.load %arg4[%c1_196, %c0_197, %c0_198] : memref<2x8x8xf32, #tpu.memory_space<vmem>>, vector<1x8x8xf32>
    %436 = vector.shape_cast %435 : vector<1x8x8xf32> to vector<8x8xf32>
    %cst_199 = arith.constant dense<0.000000e+00> : vector<8x8xf32>
    %437 = tpu.matmul %434, %436, %cst_199 {dimension_numbers = #tpu.dot_dimension_numbers<[1], [0], [0], [1], [0, 0, 1, 1], [], []>} : vector<8x8xf32>, vector<8x8xf32>, vector<8x8xf32> -> vector<8x8xf32>
    %438 = tpu.concatenate %425, %433 in 0 : vector<8x8xf32>, vector<8x8xf32> -> vector<16x8xf32>
    %439 = tpu.concatenate %429, %437 in 0 : vector<8x8xf32>, vector<8x8xf32> -> vector<16x8xf32>
    %cst_200 = arith.constant 9.99999968E-21 : f32
    %440 = vector.broadcast %cst_200 : f32 to vector<16x8xf32>
    %441 = arith.addf %438, %440 : vector<16x8xf32>
    %442 = math.log %441 : vector<16x8xf32>
    %cst_201 = arith.constant 9.99999968E-21 : f32
    %443 = vector.broadcast %cst_201 : f32 to vector<16x8xf32>
    %444 = arith.addf %2, %443 : vector<16x8xf32>
    %445 = math.log %444 : vector<16x8xf32>
    %446 = arith.addf %442, %445 : vector<16x8xf32>
    %cst_202 = arith.constant 9.99999968E-21 : f32
    %447 = vector.broadcast %cst_202 : f32 to vector<16x8xf32>
    %448 = arith.addf %0, %447 : vector<16x8xf32>
    %449 = math.log %448 : vector<16x8xf32>
    %450 = vector.shape_cast %5 : vector<16x1xi1> to vector<16x1xi1>
    %451 = vector.broadcast %450 : vector<16x1xi1> to vector<16x8xi1>
    %452 = arith.select %451, %449, %446 : vector<16x8xi1>, vector<16x8xf32>
    %cst_203 = arith.constant 9.99999968E-21 : f32
    %453 = vector.broadcast %cst_203 : f32 to vector<16x8xf32>
    %454 = arith.addf %439, %453 : vector<16x8xf32>
    %455 = math.log %454 : vector<16x8xf32>
    %456 = arith.addf %442, %455 : vector<16x8xf32>
    %cst_204 = arith.constant 9.99999968E-21 : f32
    %457 = vector.broadcast %cst_204 : f32 to vector<16x8xf32>
    %458 = arith.addf %421, %457 : vector<16x8xf32>
    %459 = math.log %458 : vector<16x8xf32>
    %460 = vector.shape_cast %5 : vector<16x1xi1> to vector<16x1xi1>
    %461 = vector.broadcast %460 : vector<16x1xi1> to vector<16x8xi1>
    %462 = arith.select %461, %459, %456 : vector<16x8xi1>, vector<16x8xf32>
    %cst_205 = arith.constant dense<0xFF800000> : vector<16xf32>
    %463 = vector.multi_reduction <maximumf>, %452, %cst_205 [1] : vector<16x8xf32> to vector<16xf32>
    %464 = vector.shape_cast %463 : vector<16xf32> to vector<16x1xf32>
    %465 = vector.broadcast %464 : vector<16x1xf32> to vector<16x8xf32>
    %466 = arith.subf %452, %465 : vector<16x8xf32>
    %467 = math.exp %466 : vector<16x8xf32>
    %cst_206 = arith.constant dense<0.000000e+00> : vector<16xf32>
    %468 = vector.multi_reduction <add>, %467, %cst_206 [1] : vector<16x8xf32> to vector<16xf32>
    %469 = vector.shape_cast %468 : vector<16xf32> to vector<16x1xf32>
    %470 = math.log %469 : vector<16x1xf32>
    %471 = vector.broadcast %470 : vector<16x1xf32> to vector<16x8xf32>
    %472 = arith.subf %466, %471 : vector<16x8xf32>
    %cst_207 = arith.constant dense<0xFF800000> : vector<16xf32>
    %473 = vector.multi_reduction <maximumf>, %462, %cst_207 [1] : vector<16x8xf32> to vector<16xf32>
    %474 = vector.shape_cast %473 : vector<16xf32> to vector<16x1xf32>
    %475 = vector.broadcast %474 : vector<16x1xf32> to vector<16x8xf32>
    %476 = arith.subf %462, %475 : vector<16x8xf32>
    %477 = math.exp %476 : vector<16x8xf32>
    %cst_208 = arith.constant dense<0.000000e+00> : vector<16xf32>
    %478 = vector.multi_reduction <add>, %477, %cst_208 [1] : vector<16x8xf32> to vector<16xf32>
    %479 = vector.shape_cast %478 : vector<16xf32> to vector<16x1xf32>
    %480 = math.log %479 : vector<16x1xf32>
    %481 = vector.broadcast %480 : vector<16x1xf32> to vector<16x8xf32>
    %482 = arith.subf %476, %481 : vector<16x8xf32>
    %483 = math.exp %472 : vector<16x8xf32>
    %484 = arith.subf %472, %482 : vector<16x8xf32>
    %485 = arith.mulf %483, %484 : vector<16x8xf32>
    %cst_209 = arith.constant dense<0.000000e+00> : vector<16xf32>
    %486 = vector.multi_reduction <add>, %485, %cst_209 [1] : vector<16x8xf32> to vector<16xf32>
    %487 = vector.shape_cast %486 : vector<16xf32> to vector<16x1xf32>
    %cst_210 = arith.constant 0.000000e+00 : f32
    %488 = vector.broadcast %cst_210 : f32 to vector<16x1xf32>
    %489 = arith.maximumf %487, %488 : vector<16x1xf32>
    %cst_211 = arith.constant dense<0xFF800000> : vector<16xf32>
    %490 = vector.multi_reduction <maximumf>, %409, %cst_211 [1] : vector<16x8xf32> to vector<16xf32>
    %491 = vector.shape_cast %490 : vector<16xf32> to vector<16x1xf32>
    %492 = vector.broadcast %491 : vector<16x1xf32> to vector<16x8xf32>
    %493 = arith.subf %409, %492 : vector<16x8xf32>
    %494 = math.exp %493 : vector<16x8xf32>
    %cst_212 = arith.constant dense<0.000000e+00> : vector<16xf32>
    %495 = vector.multi_reduction <add>, %494, %cst_212 [1] : vector<16x8xf32> to vector<16xf32>
    %496 = vector.shape_cast %495 : vector<16xf32> to vector<16x1xf32>
    %497 = math.log %496 : vector<16x1xf32>
    %498 = arith.addf %497, %491 : vector<16x1xf32>
    %499 = arith.mulf %0, %409 : vector<16x8xf32>
    %cst_213 = arith.constant dense<0.000000e+00> : vector<16xf32>
    %500 = vector.multi_reduction <add>, %499, %cst_213 [1] : vector<16x8xf32> to vector<16xf32>
    %501 = vector.shape_cast %500 : vector<16xf32> to vector<16x1xf32>
    %502 = arith.subf %498, %501 : vector<16x1xf32>
    %cst_214 = arith.constant 1.000000e-01 : f32
    %503 = vector.broadcast %cst_214 : f32 to vector<16x1xf32>
    %504 = arith.mulf %503, %502 : vector<16x1xf32>
    %505 = arith.addf %489, %504 : vector<16x1xf32>
    %506 = arith.select %5, %502, %505 : vector<16x1xi1>, vector<16x1xf32>
    %507 = tpu.concatenate %489, %502, %506 in 1 : vector<16x1xf32>, vector<16x1xf32>, vector<16x1xf32> -> vector<16x3xf32>
    %c0_215 = arith.constant 0 : index
    %c0_216 = arith.constant 0 : index
    %508 = vector.load %arg27[%c0_215, %c0_216] : memref<16x3xf32, #tpu.memory_space<vmem>>, vector<16x3xf32>
    tpu.vector_store %arg27[%c0_215, %c0_216], %507 {strides = array<i32>} : memref<16x3xf32, #tpu.memory_space<vmem>>, vector<16x3xf32>,
    return
  }
  func.func @transform_0(%arg0: i32) -> (i32, i32) {
    %c0_i32 = arith.constant 0 : i32
    %c0_i32_0 = arith.constant 0 : i32
    %c0_i32_1 = arith.constant 0 : i32
    return %c0_i32, %c0_i32_0 : i32, i32
  }
  func.func @transform_1(%arg0: i32) -> (i32, i32) {
    %c0_i32 = arith.constant 0 : i32
    %c0_i32_0 = arith.constant 0 : i32
    %c0_i32_1 = arith.constant 0 : i32
    return %c0_i32, %c0_i32_0 : i32, i32
  }
  func.func @transform_2(%arg0: i32) -> (i32, i32) {
    %c0_i32 = arith.constant 0 : i32
    %c0_i32_0 = arith.constant 0 : i32
    %c0_i32_1 = arith.constant 0 : i32
    return %c0_i32, %c0_i32_0 : i32, i32
  }
  func.func @transform_3(%arg0: i32) -> (i32, i32, i32) {
    %c0_i32 = arith.constant 0 : i32
    %c0_i32_0 = arith.constant 0 : i32
    %c0_i32_1 = arith.constant 0 : i32
    %c0_i32_2 = arith.constant 0 : i32
    return %c0_i32, %c0_i32_0, %c0_i32_1 : i32, i32, i32
  }
  func.func @transform_4(%arg0: i32) -> (i32, i32, i32) {
    %c0_i32 = arith.constant 0 : i32
    %c0_i32_0 = arith.constant 0 : i32
    %c0_i32_1 = arith.constant 0 : i32
    %c0_i32_2 = arith.constant 0 : i32
    return %c0_i32, %c0_i32_0, %c0_i32_1 : i32, i32, i32
  }
  func.func @transform_5(%arg0: i32) -> (i32, i32) {
    %c0_i32 = arith.constant 0 : i32
    %c0_i32_0 = arith.constant 0 : i32
    %c0_i32_1 = arith.constant 0 : i32
    return %c0_i32, %c0_i32_0 : i32, i32
  }
  func.func @transform_6(%arg0: i32) -> (i32, i32) {
    %c0_i32 = arith.constant 0 : i32
    %c0_i32_0 = arith.constant 0 : i32
    %c0_i32_1 = arith.constant 0 : i32
    return %c0_i32, %c0_i32_0 : i32, i32
  }
  func.func @transform_7(%arg0: i32) -> (i32, i32) {
    %c0_i32 = arith.constant 0 : i32
    %c0_i32_0 = arith.constant 0 : i32
    %c0_i32_1 = arith.constant 0 : i32
    return %c0_i32, %c0_i32_0 : i32, i32
  }
  func.func @transform_8(%arg0: i32) -> (i32, i32) {
    %c0_i32 = arith.constant 0 : i32
    %c0_i32_0 = arith.constant 0 : i32
    %c0_i32_1 = arith.constant 0 : i32
    return %c0_i32, %c0_i32_0 : i32, i32
  }
  func.func @transform_9(%arg0: i32) -> (i32, i32) {
    %c0_i32 = arith.constant 0 : i32
    %c0_i32_0 = arith.constant 0 : i32
    %c0_i32_1 = arith.constant 0 : i32
    return %c0_i32, %c0_i32_0 : i32, i32
  }
  func.func @transform_10(%arg0: i32) -> (i32, i32) {
    %c0_i32 = arith.constant 0 : i32
    %c0_i32_0 = arith.constant 0 : i32
    %c0_i32_1 = arith.constant 0 : i32
    return %c0_i32, %c0_i32_0 : i32, i32
  }
  func.func @transform_11(%arg0: i32) -> (i32, i32) {
    %c0_i32 = arith.constant 0 : i32
    %c0_i32_0 = arith.constant 0 : i32
    %c0_i32_1 = arith.constant 0 : i32
    return %c0_i32, %c0_i32_0 : i32, i32
  }
  func.func @transform_12(%arg0: i32) -> (i32, i32) {
    %c0_i32 = arith.constant 0 : i32
    %c0_i32_0 = arith.constant 0 : i32
    %c0_i32_1 = arith.constant 0 : i32
    return %c0_i32, %c0_i32_0 : i32, i32
  }
  func.func @transform_13(%arg0: i32) -> (i32, i32) {
    %c0_i32 = arith.constant 0 : i32
    %c0_i32_0 = arith.constant 0 : i32
    %c0_i32_1 = arith.constant 0 : i32
    return %c0_i32, %c0_i32_0 : i32, i32
  }
  func.func @transform_14(%arg0: i32) -> (i32, i32) {
    %c0_i32 = arith.constant 0 : i32
    %c0_i32_0 = arith.constant 0 : i32
    %c0_i32_1 = arith.constant 0 : i32
    return %c0_i32, %c0_i32_0 : i32, i32
  }
  func.func @transform_15(%arg0: i32) -> (i32, i32, i32) {
    %c0_i32 = arith.constant 0 : i32
    %c0_i32_0 = arith.constant 0 : i32
    %c0_i32_1 = arith.constant 0 : i32
    %c0_i32_2 = arith.constant 0 : i32
    return %c0_i32, %c0_i32_0, %c0_i32_1 : i32, i32, i32
  }
  func.func @transform_16(%arg0: i32) -> (i32, i32, i32) {
    %c0_i32 = arith.constant 0 : i32
    %c0_i32_0 = arith.constant 0 : i32
    %c0_i32_1 = arith.constant 0 : i32
    %c0_i32_2 = arith.constant 0 : i32
    return %c0_i32, %c0_i32_0, %c0_i32_1 : i32, i32, i32
  }
  func.func @transform_17(%arg0: i32) -> (i32, i32, i32) {
    %c0_i32 = arith.constant 0 : i32
    %c0_i32_0 = arith.constant 0 : i32
    %c0_i32_1 = arith.constant 0 : i32
    %c0_i32_2 = arith.constant 0 : i32
    return %c0_i32, %c0_i32_0, %c0_i32_1 : i32, i32, i32
  }
  func.func @transform_18(%arg0: i32) -> (i32, i32, i32) {
    %c0_i32 = arith.constant 0 : i32
    %c0_i32_0 = arith.constant 0 : i32
    %c0_i32_1 = arith.constant 0 : i32
    %c0_i32_2 = arith.constant 0 : i32
    return %c0_i32, %c0_i32_0, %c0_i32_1 : i32, i32, i32
  }
  func.func @transform_19(%arg0: i32) -> (i32, i32, i32) {
    %c0_i32 = arith.constant 0 : i32
    %c0_i32_0 = arith.constant 0 : i32
    %c0_i32_1 = arith.constant 0 : i32
    %c0_i32_2 = arith.constant 0 : i32
    return %c0_i32, %c0_i32_0, %c0_i32_1 : i32, i32, i32
  }
  func.func @transform_20(%arg0: i32) -> (i32, i32, i32) {
    %c0_i32 = arith.constant 0 : i32
    %c0_i32_0 = arith.constant 0 : i32
    %c0_i32_1 = arith.constant 0 : i32
    %c0_i32_2 = arith.constant 0 : i32
    return %c0_i32, %c0_i32_0, %c0_i32_1 : i32, i32, i32
  }
  func.func @transform_21(%arg0: i32) -> (i32, i32, i32) {
    %c0_i32 = arith.constant 0 : i32
    %c0_i32_0 = arith.constant 0 : i32
    %c0_i32_1 = arith.constant 0 : i32
    %c0_i32_2 = arith.constant 0 : i32
    return %c0_i32, %c0_i32_0, %c0_i32_1 : i32, i32, i32
  }
  func.func @transform_22(%arg0: i32) -> (i32, i32, i32) {
    %c0_i32 = arith.constant 0 : i32
    %c0_i32_0 = arith.constant 0 : i32
    %c0_i32_1 = arith.constant 0 : i32
    %c0_i32_2 = arith.constant 0 : i32
    return %c0_i32, %c0_i32_0, %c0_i32_1 : i32, i32, i32
  }
  func.func @transform_23(%arg0: i32) -> (i32, i32) {
    %c0_i32 = arith.constant 0 : i32
    %c0_i32_0 = arith.constant 0 : i32
    %c0_i32_1 = arith.constant 0 : i32
    return %c0_i32, %c0_i32_0 : i32, i32
  }
  func.func @transform_24(%arg0: i32) -> (i32, i32) {
    %c0_i32 = arith.constant 0 : i32
    %c0_i32_0 = arith.constant 0 : i32
    %c0_i32_1 = arith.constant 0 : i32
    return %c0_i32, %c0_i32_0 : i32, i32
  }
  func.func @transform_25(%arg0: i32) -> (i32, i32) {
    %c0_i32 = arith.constant 0 : i32
    %c0_i32_0 = arith.constant 0 : i32
    %c0_i32_1 = arith.constant 0 : i32
    return %c0_i32, %c0_i32_0 : i32, i32
  }
  func.func @transform_26(%arg0: i32) -> (i32, i32) {
    %c0_i32 = arith.constant 0 : i32
    %c0_i32_0 = arith.constant 0 : i32
    %c0_i32_1 = arith.constant 0 : i32
    return %c0_i32, %c0_i32_0 : i32, i32
  }
}

</mosaic_0001>

<bundles_post_ra>
// kernel: d3pm_forward.2
= control target key start
LH: loop header
LB: loop body
LE: loop exit
PB: predicated region body
PF: predicated region fallthrough
CT: control target
= control target key end

     0   :  { %vm19_vm0 = vcmask 64512   ;;  %s198_s1 = inlined_call_operand.vmem [shape: f32[2,8,8], index: 1, kind: input, shape index: {}]   ;;  %s199_s0 = inlined_call_operand.vmem [shape: f32[16,8], index: 0, kind: input, shape index: {}]   ;;  %s200_s2 = inlined_call_operand.vmem [shape: f32[2,8,8], index: 2, kind: input, shape index: {}]   ;;  %s201_s3 = inlined_call_operand.vmem [shape: f32[16,8], index: 3, kind: output, shape index: {0}]   ;;  %s202_s4 = inlined_call_operand.vmem [shape: f32[16,8], index: 4, kind: output, shape index: {1}]  }
   0x1   :  { %v131_v0 = vld [vmem:[%s198_s1 + $0x8] sm:$0xff]  ;;  %v18_v2 = vld [vmem:[%s198_s1] sm:$0xff] }
   0x2   :  { %v17_v1 = vld [vmem:[%s199_s0 + $0x8] sm:$0xff]  ;;  %87 = vmatpush.msra.mxu2 %v131_v0  ;;  %38 = vmatpush.msra.mxu0 %v18_v2  ;;  %v16_v3 = vld [vmem:[%s199_s0] sm:$0xff] }
   0x3   :  { %132 = vmatmul.msk.f32.vlgmr.msra.gmra.mxu2 %vm19_vm0, %v17_v1  ;;  %129 = vmatmul.msk.f32.vlgmr.msra.gmra.mxu0 %vm19_vm0, %v16_v3  ;;  %v133_v4 = vld [vmem:[%s200_s2 + $0x8] sm:$0xff]  ;;  %v43_v5 = vld [vmem:[%s200_s2] sm:$0xff] }
   0x4   :  { %112 = vmatpush.msra.mxu3 %v133_v4  ;;  %62 = vmatpush.msra.mxu1 %v43_v5 }
  0x80   :  { %v40_v6 = vpop.f32.mrf.mxu0 }
  0x81   :  { %117 = vst.msk [vmem:[%s201_s3] sm:$0xff] %vm19_vm0, %v40_v6  ;;  %130 = vmatmul.msk.f32.vlgmr.msra.gmra.mxu1 %vm19_vm0, %v40_v6 }
  0x86   :  { %v89_v7 = vpop.f32.mrf.mxu2 }
  0x87   :  { %118 = vst.msk [vmem:[%s201_s3 + $0x8] sm:$0xff] %vm19_vm0, %v89_v7  ;;  %134 = vmatmul.msk.f32.vlgmr.msra.gmra.mxu3 %vm19_vm0, %v89_v7 }
  0xfe   :  { %v64_v8 = vpop.f32.mrf.mxu1 }
  0xff   :  { %119 = vst.msk [vmem:[%s202_s4] sm:$0xff] %vm19_vm0, %v64_v8 }
 0x10a   :  { %v114_v9 = vpop.f32.mrf.mxu3 }
 0x10b   :  { %120 = vst.msk [vmem:[%s202_s4 + $0x8] sm:$0xff] %vm19_vm0, %v114_v9 }

// kernel: d3pm_forward.3
= control target key start
LH: loop header
LB: loop body
LE: loop exit
PB: predicated region body
PF: predicated region fallthrough
CT: control target
= control target key end

     0   :  { %s3406_s0 = inlined_call_operand.vmem [shape: f32[16,8], index: 0, kind: input, shape index: {}]   ;;  %s3407_s1 = inlined_call_operand.vmem [shape: f32[16,8], index: 1, kind: input, shape index: {}]   ;;  %s3408_s2 = inlined_call_operand.vmem [shape: f32[16,8], index: 2, kind: input, shape index: {}]   ;;  %s3409_s3 = inlined_call_operand.vmem [shape: f32[2,8,8], index: 3, kind: input, shape index: {}]   ;;  %s3410_s4 = inlined_call_operand.vmem [shape: f32[2,8,8], index: 4, kind: input, shape index: {}]   ;;  %s3411_s5 = inlined_call_operand.vmem [shape: f32[16,1], index: 5, kind: input, shape index: {}]   ;;  %s3412_s6 = inlined_call_operand.vmem [shape: f32[16,16], index: 6, kind: input, shape index: {}]   ;;  %s3413_s7 = inlined_call_operand.vmem [shape: f32[16,32], index: 7, kind: input, shape index: {}]   ;;  %s3414_s8 = inlined_call_operand.vmem [shape: f32[1,32], index: 8, kind: input, shape index: {}]   ;;  %s3415_s9 = inlined_call_operand.vmem [shape: f32[32,32], index: 9, kind: input, shape index: {}]   ;;  %s3416_s10 = inlined_call_operand.vmem [shape: f32[1,32], index: 10, kind: input, shape index: {}]   ;;  %s3417_s11 = inlined_call_operand.vmem [shape: f32[8,32], index: 11, kind: input, shape index: {}]   ;;  %s3418_s12 = inlined_call_operand.vmem [shape: f32[1,32], index: 12, kind: input, shape index: {}]   ;;  %s3419_s13 = inlined_call_operand.vmem [shape: f32[32,448], index: 13, kind: input, shape index: {}]   ;;  %s3420_s14 = inlined_call_operand.vmem [shape: f32[1,448], index: 14, kind: input, shape index: {}]   ;;  %s3421_s15 = inlined_call_operand.vmem [shape: f32[2,32,96], index: 15, kind: input, shape index: {}]   ;;  %s3422_s16 = inlined_call_operand.vmem [shape: f32[2,1,96], index: 16, kind: input, shape index: {}]   ;;  %s3423_s17 = inlined_call_operand.vmem [shape: f32[2,32,32], index: 17, kind: input, shape index: {}]   ;;  %s3424_s18 = inlined_call_operand.vmem [shape: f32[2,1,32], index: 18, kind: input, shape index: {}]   ;;  %s3425_s19 = inlined_call_operand.vmem [shape: f32[2,32,128], index: 19, kind: input, shape index: {}]   ;;  %s3426_s20 = inlined_call_operand.vmem [shape: f32[2,1,128], index: 20, kind: input, shape index: {}]   ;;  %s3427_s21 = inlined_call_operand.vmem [shape: f32[2,128,32], index: 21, kind: input, shape index: {}]   ;;  %s3428_s22 = inlined_call_operand.vmem [shape: f32[2,1,32], index: 22, kind: input, shape index: {}]   ;;  %s3429_s23 = inlined_call_operand.vmem [shape: f32[32,8], index: 23, kind: input, shape index: {}]   ;;  %s3430_s24 = inlined_call_operand.vmem [shape: f32[1,8], index: 24, kind: input, shape index: {}]   ;;  %s3431_s25 = inlined_call_operand.hbm [shape: f32[16,8], index: 25, kind: output, shape index: {0}]   ;;  %s3432_s26 = inlined_call_operand.vmem [shape: f32[16,3], index: 26, kind: output, shape index: {1}]  }
   0x1   :  { %3442 = sst [smem:[#allocation5_spill]] %s3406_s0 }
   0x2   :  { %3443 = sst [smem:[#allocation6_spill]] %s3407_s1 }
   0x3   :  { %3444 = sst [smem:[#allocation7_spill]] %s3408_s2 }
   0x4   :  { %3445 = sst [smem:[#allocation8_spill]] %s3409_s3 }
   0x5   :  { %3446 = sst [smem:[#allocation9_spill]] %s3410_s4 }
   0x6   :  { %3447 = sst [smem:[#allocation10_spill]] %s3411_s5 }
   0x7   :  { %3448 = sst [smem:[#allocation11_spill]] %s3412_s6 }
   0x8   :  { %3449 = sst [smem:[#allocation12_spill]] %s3413_s7 }
   0x9   :  { %3450 = sst [smem:[#allocation13_spill]] %s3414_s8 }
   0xa   :  { %3451 = sst [smem:[#allocation14_spill]] %s3415_s9 }
   0xb   :  { %3452 = sst [smem:[#allocation15_spill]] %s3416_s10 }
   0xc   :  { %s3453_s7 = sld [smem:[#allocation12_spill]]  ;;  %vm101_vm0 = vcmask 130048  }
   0xd   :  { %s3454_s0 = sld [smem:[#allocation11_spill]] }
  0x12   :  { %v96_v0 = vld [vmem:[%s3453_s7 + $0x8] sm:$0xff]  ;;  %v95_v1 = vld [vmem:[%s3453_s7] sm:$0xff] }
  0x13   :  { %122 = vmatpush.msra.mxu0 %v96_v0  ;;  %v93_v2 = vld [vmem:[%s3454_s0] sm:$0xff] }
  0x15   :  { %123 = vmatpush.msra.mxu0 %v95_v1 }
  0x16   :  { %2179 = vmatmul.msk.f32.vlgmr.msra.gmra.mxu0 %vm101_vm0, %v93_v2 }
  0x17   :  { %32 = vsyncpa [#allocation3], 0  ;;  %v94_v3 = vld [vmem:[%s3454_s0 + $0x8] sm:$0xff]  ;;  %s3455_s10 = sld [smem:[#allocation14_spill]]  ;;  %vm179_vm5 = vcmask 261120   ;;  %v261_v41 = vld [vmem:[%s3419_s13 + $0x60] sm:$0xff] }
  0x18   :  { %s3456_s7 = sld [smem:[#allocation13_spill]]  ;;  %v262_v42 = vld [vmem:[%s3419_s13 + $0x68] sm:$0xff]  ;;  %v264_v43 = vld [vmem:[%s3419_s13 + $0x78] sm:$0xff]  ;;  %293 = vmatpush.msra.mxu2 %v261_v41  ;;  %v257_v44 = vld [vmem:[%s3419_s13 + $0x40] sm:$0xff]  ;;  %s2467_s27 = smov 112  }
  0x19   :  { %316 = vmatpush.msrb.mxu0 %v262_v42  ;;  %v258_v45 = vld [vmem:[%s3419_s13 + $0x48] sm:$0xff]  ;;  %v260_v46 = vld [vmem:[%s3419_s13 + $0x58] sm:$0xff]  ;;  %2275 = vmatpush.msra.mxu3 %v262_v42  ;;  %s3457_s29 = sld [smem:[#allocation15_spill]]  ;;  %v253_v48 = vld [vmem:[%s3419_s13 + $0x20] sm:$0xff]  ;;  %s2468_s3 = smov 80  }
  0x1a   :  { %294 = vmatpush.msra.mxu2 %v257_v44  ;;  %v254_v49 = vld [vmem:[%s3419_s13 + $0x28] sm:$0xff]  ;;  %v256_v50 = vld [vmem:[%s3419_s13 + $0x38] sm:$0xff]  ;;  %v249_v51 = vld [vmem:[%s3419_s13] sm:$0xff]  ;;  %s3458_s1 = sld [smem:[#allocation6_spill]]  ;;  %s2469_s28 = smov 48  }
  0x1b   :  { %317 = vmatpush.msrb.mxu0 %v258_v45  ;;  %2276 = vmatpush.msra.mxu3 %v258_v45  ;;  %v250_v52 = vld [vmem:[%s3419_s13 + $0x8] sm:$0xff]  ;;  %v252_v53 = vld [vmem:[%s3419_s13 + $0x18] sm:$0xff]  ;;  %v263_v56 = vld [vmem:[%s3419_s13 + $0x70] sm:$0xff]  ;;  %s2470_s8 = smov 64   ;;  %s2471_s4 = smov 16  }
  0x1c   :  { %295 = vmatpush.msra.mxu2 %v253_v48  ;;  %v259_v58 = vld [vmem:[%s3419_s13 + $0x50] sm:$0xff]  ;;  %v373_v63 = vld [vmem:[%s3417_s11] sm:$0xff]  ;;  %s3460_s9 = sld [smem:[#allocation10_spill]]  ;;  %s2163_s30 = sshll.u32 %s3431_s25, 4  ;;  %s2164_s30 = int_to_ptr.hbm [resolvable:$true] %s2163_s30 }
  0x1d   :  { %v174_v4 = vld [vmem:[%s3455_s10 + $0x18] sm:$0xff]  ;;  %v173_v5 = vld [vmem:[%s3455_s10 + $0x10] sm:$0xff]  ;;  %v172_v7 = vld [vmem:[%s3455_s10 + $0x8] sm:$0xff]  ;;  %318 = vmatpush.msrb.mxu0 %v254_v49  ;;  %2277 = vmatpush.msra.mxu3 %v254_v49  ;;  %s2475_s2 = smov 128   ;;  %s2476_s5 = smov 8  }
  0x1e   :  { %2180 = vmatmul.msk.f32.gmra.mxu0 %vm101_vm0, %v94_v3  ;;  %198 = vmatpush.msra.mxu1 %v174_v4  ;;  %v2294_v6 = vld [vmem:[%s3456_s7] ss:$0 sm:$0xff]  ;;  %v255_v59 = vld [vmem:[%s3419_s13 + $0x30] sm:$0xff]  ;;  %s2465_s7 = smov 96   ;;  %s2477_s25 = smov 2  }
  0x1f   :  { %v171_v8 = vld [vmem:[%s3455_s10] sm:$0xff]  ;;  %296 = vmatpush.msra.mxu2 %v249_v51  ;;  %319 = vmatpush.msrb.mxu0 %v250_v52  ;;  %v251_v60 = vld [vmem:[%s3419_s13 + $0x10] sm:$0xff]  ;;  %s2472_s13 = smov 32  }
  0x20   :  { %199 = vmatpush.msra.mxu1 %v173_v5  ;;  %v2295_v47 = vld [vmem:[%s3457_s29] ss:$0 sm:$0xff]  ;;  %2278 = vmatpush.msra.mxu3 %v250_v52  ;;  %v476_v52 = vld [vmem:[%s3421_s15 + $0x18] sm:$0xff]  ;;  %s3462_s29 = sld [smem:[#allocation7_spill]] }
  0x21   :  { %339 = vmatpush.msra.mxu0 %v263_v56  ;;  %400 = vmatpush.msrb.mxu2 %v373_v63 }
  0x22   :  { %200 = vmatpush.msra.mxu1 %v172_v7  ;;  %499 = vmatpush.msrb.mxu3 %v476_v52 }
  0x23   :  { %340 = vmatpush.msra.mxu0 %v259_v58 }
  0x24   :  { %201 = vmatpush.msra.mxu1 %v171_v8 }
  0x25   :  { %341 = vmatpush.msra.mxu0 %v255_v59 }
  0x26   :  { %362 = vmatpush.msrb.mxu1 %v264_v43 }
  0x27   :  { %342 = vmatpush.msra.mxu0 %v251_v60 }
  0x28   :  { %363 = vmatpush.msrb.mxu1 %v260_v46 }
  0x2a   :  { %364 = vmatpush.msrb.mxu1 %v256_v50 }
  0x2c   :  { %365 = vmatpush.msrb.mxu1 %v252_v53  ;;  %v475_v53 = vld [vmem:[%s3421_s15 + $0x10] sm:$0xff] }
  0x2d   :  { %500 = vmatpush.msrb.mxu3 %v475_v53 }
  0x93   :  { %v125_v9 = vpop.f32.mrf.mxu0 }
  0x94   :  { %v126_v10 = vadd.f32 %v2294_v6, %v125_v9 }
  0x96   :  { %v2181_v11 = vmul.f32 -1.442695, %v126_v10 }
  0x98   :  { %2306 = vpow2.f32 %v2181_v11 }
  0x9b   :  { %v128_v12 = vpop.f32.mrf.mxu0 }
  0x9c   :  { %v129_v13 = vadd.f32 %v2294_v6, %v128_v12 }
  0x9e   :  { %v2307_v14 = vpop.eup %2306  ;;  %v2182_v15 = vmul.f32 -1.442695, %v129_v13 }
  0x9f   :  { %v137_v16 = vadd.f32 1.0, %v2307_v14 }
  0xa0   :  { %2308 = vpow2.f32 %v2182_v15 }
  0xa1   :  { %2310 = vrcp.f32 %v137_v16  ;;  %v150_v22 = vand.u32 2147483648, %v137_v16  ;;  %v148_v24 = vand.u32 2147483647, %v137_v16  ;;  %vm144_vm2 = vweird.f32 %v137_v16 }
  0xa3   :  { %v151_v27 = vor.u32 1.1754944e-38, %v150_v22  ;;  %vm149_vm4 = vcmp.eq.f32.partialorder %v148_v24, 8.507059e+37 }
  0xa6   :  { %v2309_v17 = vpop.eup %2308 }
  0xa7   :  { %v2311_v18 = vpop.eup %2310  ;;  %v138_v19 = vadd.f32 1.0, %v2309_v17 }
  0xa8   :  { %v140_v20 = vmul.f32 %v2311_v18, %v137_v16  ;;  %vm145_vm1 = vweird.f32 %v2311_v18 }
  0xa9   :  { %2312 = vrcp.f32 %v138_v19  ;;  %vm146_vm3 = vmor %vm144_vm2, %vm145_vm1  ;;  %v165_v33 = vand.u32 2147483648, %v138_v19  ;;  %v163_v35 = vand.u32 2147483647, %v138_v19  ;;  %vm159_vm7 = vweird.f32 %v138_v19 }
  0xaa   :  { %v141_v21 = vsub.f32 1.0, %v140_v20 }
  0xab   :  { %v166_v37 = vor.u32 1.1754944e-38, %v165_v33  ;;  %vm164_vm9 = vcmp.eq.f32.partialorder %v163_v35, 8.507059e+37  ;;  %v2296_v35 = vld [vmem:[%s3418_s12] ss:$0 sm:$0xff] }
  0xac   :  { %v142_v23 = vmul.f32 %v2311_v18, %v141_v21 }
  0xae   :  { %v143_v25 = vadd.f32 %v2311_v18, %v142_v23 }
  0xaf   :  { %v2313_v26 = vpop.eup %2312 }
  0xb0   :  { %v147_v28 = vsel %vm146_vm3, %v2311_v18, %v143_v25  ;;  %v155_v29 = vmul.f32 %v2313_v26, %v138_v19  ;;  %vm160_vm6 = vweird.f32 %v2313_v26  ;;  %vm378_vm3 = vcmask 64512  }
  0xb1   :  { %v152_v30 = vsel %vm149_vm4, %v151_v27, %v147_v28  ;;  %vm161_vm8 = vmor %vm159_vm7, %vm160_vm6  ;;  %v85_v27 = vld [vmem:[%s3458_s1] sm:$0xff] }
  0xb2   :  { %v169_v31 = vmul.f32 %v152_v30, %v126_v10  ;;  %v156_v32 = vsub.f32 1.0, %v155_v29  ;;  %v2713_v28 = vld [vmem:[%s3420_s14] sm:$0xf] }
  0xb3   :  { %v267_v29 = vperm.slane %v2713_v28, 0 }
  0xb4   :  { %v157_v34 = vmul.f32 %v2313_v26, %v156_v32  ;;  %2183 = vmatmul.msk.f32.vlgmr.msra.gmra.mxu1 %vm179_vm5, %v169_v31 }
  0xb6   :  { %v158_v36 = vadd.f32 %v2313_v26, %v157_v34 }
  0xb8   :  { %v162_v38 = vsel %vm161_vm8, %v2313_v26, %v158_v36 }
  0xb9   :  { %v167_v39 = vsel %vm164_vm9, %v166_v37, %v162_v38 }
  0xba   :  { %v170_v40 = vmul.f32 %v167_v39, %v129_v13  ;;  %v2466_v39 = vmov 32.0  }
  0xbc   :  { %2184 = vmatmul.msk.f32.gmra.mxu1 %vm179_vm5, %v170_v40  ;;  %v86_v40 = vld [vmem:[%s3458_s1 + $0x8] sm:$0xff] }
 0x131   :  { %v203_v54 = vpop.f32.mrf.mxu1 }
 0x132   :  { %v204_v55 = vadd.f32 %v2295_v47, %v203_v54  ;;  %v474_v54 = vld [vmem:[%s3421_s15 + $0x8] sm:$0xff] }
 0x133   :  { %501 = vmatpush.msrb.mxu3 %v474_v54 }
 0x134   :  { %v2185_v57 = vmul.f32 -1.442695, %v204_v55 }
 0x136   :  { %2314 = vpow2.f32 %v2185_v57 }
 0x139   :  { %v206_v61 = vpop.f32.mrf.mxu1 }
 0x13a   :  { %v207_v62 = vadd.f32 %v2295_v47, %v206_v61 }
 0x13c   :  { %v2315_v0 = vpop.eup %2314  ;;  %v2186_v1 = vmul.f32 -1.442695, %v207_v62 }
 0x13d   :  { %v215_v2 = vadd.f32 1.0, %v2315_v0 }
 0x13e   :  { %2316 = vpow2.f32 %v2186_v1 }
 0x13f   :  { %2318 = vrcp.f32 %v215_v2  ;;  %v228_v8 = vand.u32 2147483648, %v215_v2  ;;  %v226_v10 = vand.u32 2147483647, %v215_v2  ;;  %vm222_vm11 = vweird.f32 %v215_v2 }
 0x141   :  { %v229_v13 = vor.u32 1.1754944e-38, %v228_v8  ;;  %vm227_vm13 = vcmp.eq.f32.partialorder %v226_v10, 8.507059e+37  ;;  %v2762_v10 = vld [vmem:[%s3422_s16] ss:$0 sm:$0xff] }
 0x144   :  { %v2317_v3 = vpop.eup %2316 }
 0x145   :  { %v2319_v4 = vpop.eup %2318  ;;  %v216_v5 = vadd.f32 1.0, %v2317_v3 }
 0x146   :  { %v218_v6 = vmul.f32 %v2319_v4, %v215_v2  ;;  %vm223_vm10 = vweird.f32 %v2319_v4 }
 0x147   :  { %2320 = vrcp.f32 %v216_v5  ;;  %vm224_vm12 = vmor %vm222_vm11, %vm223_vm10  ;;  %v243_v19 = vand.u32 2147483648, %v216_v5  ;;  %v241_v21 = vand.u32 2147483647, %v216_v5  ;;  %vm237_vm15 = vweird.f32 %v216_v5 }
 0x148   :  { %v219_v7 = vsub.f32 1.0, %v218_v6  ;;  %2322 = vrcp.f32 %v2466_v39 }
 0x149   :  { %v244_v23 = vor.u32 1.1754944e-38, %v243_v19  ;;  %vm242_vm2 = vcmp.eq.f32.partialorder %v241_v21, 8.507059e+37 }
 0x14a   :  { %v220_v9 = vmul.f32 %v2319_v4, %v219_v7 }
 0x14c   :  { %v221_v11 = vadd.f32 %v2319_v4, %v220_v9 }
 0x14d   :  { %v2321_v12 = vpop.eup %2320 }
 0x14e   :  { %v225_v14 = vsel %vm224_vm12, %v2319_v4, %v221_v11  ;;  %v233_v15 = vmul.f32 %v2321_v12, %v216_v5  ;;  %vm238_vm14 = vweird.f32 %v2321_v12  ;;  %v2323_v41 = vpop.eup %2322 }
 0x14f   :  { %v230_v16 = vsel %vm227_vm13, %v229_v13, %v225_v14  ;;  %vm239_vm1 = vmor %vm237_vm15, %vm238_vm14  ;;  %v415_v42 = vmul.f32 32.0, %v2323_v41  ;;  %vm419_vm4 = vweird.f32 %v2323_v41 }
 0x150   :  { %v247_v17 = vmul.f32 %v230_v16, %v204_v55  ;;  %v234_v18 = vsub.f32 1.0, %v233_v15  ;;  %v473_v55 = vld [vmem:[%s3421_s15] sm:$0xff] }
 0x151   :  { %v416_v43 = vsub.f32 1.0, %v415_v42  ;;  %502 = vmatpush.msrb.mxu3 %v473_v55 }
 0x152   :  { %v235_v20 = vmul.f32 %v2321_v12, %v234_v18  ;;  %2187 = vmatmul.msk.f32.vlgmr.msra.gmra.mxu2 %vm179_vm5, %v247_v17  ;;  %2189 = vmatmul.msk.f32.vlgmr.msrb.gmra.mxu0 %vm179_vm5, %v247_v17 }
 0x153   :  { %2193 = vmatmul.msk.f32.vlgmr.msrb.gmra.mxu1 %vm179_vm5, %v247_v17  ;;  %v417_v44 = vmul.f32 %v2323_v41, %v416_v43 }
 0x154   :  { %v236_v22 = vadd.f32 %v2321_v12, %v235_v20 }
 0x155   :  { %v418_v45 = vadd.f32 %v2323_v41, %v417_v44 }
 0x156   :  { %v240_v24 = vsel %vm239_vm1, %v2321_v12, %v236_v22 }
 0x157   :  { %v245_v25 = vsel %vm242_vm2, %v244_v23, %v240_v24  ;;  %v2733_v46 = vsel %vm419_vm4, %v2323_v41, %v418_v45 }
 0x158   :  { %v248_v26 = vmul.f32 %v245_v25, %v207_v62 }
 0x15a   :  { %2188 = vmatmul.msk.f32.gmra.mxu2 %vm179_vm5, %v248_v26  ;;  %2190 = vmatmul.msk.f32.vlgmr.msra.gmra.mxu3 %vm179_vm5, %v248_v26 }
 0x15b   :  { %2191 = vmatmul.msk.f32.vlgmr.msra.gmra.mxu0 %vm179_vm5, %v247_v17  ;;  %2194 = vmatmul.msk.f32.gmra.mxu1 %vm179_vm5, %v248_v26 }
 0x162   :  { %2195 = vmatmul.msk.f32.vlgmr.msrb.gmra.mxu2 %vm378_vm3, %v85_v27 }
 0x163   :  { %2192 = vmatmul.msk.f32.gmra.mxu0 %vm179_vm5, %v248_v26 }
 0x16a   :  { %2196 = vmatmul.msk.f32.gmra.mxu2 %vm378_vm3, %v86_v40 }
 0x1cf   :  { %v2780_v23 = vpop.f32.mrf.mxu0 }
 0x1d5   :  { %v298_v30 = vpop.f32.mrf.mxu2 }
 0x1d6   :  { %v2716_v31 = vadd.f32 %v298_v30, %v267_v29 }
 0x1d8   :  { %v459_v32 = vadd.f32 1.0, %v2716_v31  ;;  %v2782_v24 = vpop.f32.mrf.mxu0 }
 0x1da   :  { %463 = vrot.lane.b32.xlu1 %v459_v32, %s2465_s7 }
 0x1dd   :  { %v301_v33 = vpop.f32.mrf.mxu2  ;;  %v2757_v9 = vpop.f32.mrf.mxu3 }
 0x1de   :  { %v2720_v34 = vadd.f32 %v301_v33, %v267_v29 }
 0x1e0   :  { %v2784_v25 = vpop.f32.mrf.mxu0 }
 0x1e5   :  { %v402_v36 = vpop.f32.mrf.mxu2 }
 0x1e6   :  { %v2725_v37 = vadd.f32 %v2296_v35, %v402_v36 }
 0x1e8   :  { %v408_v38 = vsel %vm179_vm5, %v2725_v37, 0.0 }
 0x1e9   :  { %409 = vadd.xlane.f32.xlu0 %v408_v38 }
 0x1ed   :  { %v405_v56 = vpop.f32.mrf.mxu2 }
 0x1ee   :  { %v2750_v57 = vadd.f32 %v2296_v35, %v405_v56 }
 0x1f0   :  { %v411_v59 = vsel %vm179_vm5, %v2750_v57, 0.0 }
 0x24c   :  { %v464_v6 = vpop.permute.xlu1 %463 }
 0x25c   :  { %v410_v47 = vpop.xlane.xlu0 %409 }
 0x25d   :  { %v421_v48 = vmul.f32 %v2733_v46, %v410_v47  ;;  %v460_v47 = vadd.f32 1.0, %v2720_v34 }
 0x25f   :  { %v423_v49 = vsub.f32 %v2725_v37, %v421_v48 }
 0x261   :  { %v425_v50 = vmul.f32 %v423_v49, %v423_v49 }
 0x263   :  { %v427_v51 = vsel %vm179_vm5, %v425_v50, 0.0 }
 0x264   :  { %428 = vadd.xlane.f32.xlu0 %v427_v51 }
 0x26c   :  { %412 = vadd.xlane.f32.xlu0 %v411_v59 }
 0x2d7   :  { %v429_v58 = vpop.xlane.xlu0 %428 }
 0x2d8   :  { %v433_v60 = vmul.f32 %v429_v58, %v2733_v46 }
 0x2da   :  { %v435_v61 = vadd.f32 1e-06, %v433_v60 }
 0x2dc   :  { %2324 = vrsqrt.f32 %v435_v61  ;;  %vm443_vm7 = vweird.f32 %v435_v61 }
 0x2df   :  { %v413_v13 = vpop.xlane.xlu0 %412 }
 0x2e0   :  { %v422_v14 = vmul.f32 %v2733_v46, %v413_v13 }
 0x2e2   :  { %v2325_v62 = vpop.eup %2324  ;;  %v2770_v15 = vsub.f32 %v2750_v57, %v422_v14 }
 0x2e3   :  { %v438_v63 = vmul.f32 %v2325_v62, %v435_v61  ;;  %vm444_vm6 = vweird.f32 %v2325_v62 }
 0x2e4   :  { %vm445_vm8 = vmor %vm443_vm7, %vm444_vm6  ;;  %v426_v16 = vmul.f32 %v2770_v15, %v2770_v15 }
 0x2e5   :  { %v439_v0 = vmul.f32 %v2325_v62, %v438_v63 }
 0x2e6   :  { %v430_v17 = vsel %vm179_vm5, %v426_v16, 0.0 }
 0x2e7   :  { %v440_v1 = vmul.f32 0.5, %v439_v0 }
 0x2e9   :  { %v441_v2 = vsub.f32 1.5, %v440_v1 }
 0x2eb   :  { %v442_v3 = vmul.f32 %v2325_v62, %v441_v2 }
 0x2ed   :  { %v446_v4 = vsel %vm445_vm8, %v2325_v62, %v442_v3 }
 0x2ee   :  { %v457_v5 = vmul.f32 %v446_v4, %v423_v49 }
 0x2f0   :  { %v469_v7 = vmul.f32 %v464_v6, %v457_v5 }
 0x2f2   :  { %v471_v8 = vadd.f32 %v469_v7, %v2716_v31 }
 0x2f4   :  { %2197 = vmatmul.msk.f32.vlgmr.msrb.gmra.mxu3 %vm179_vm5, %v471_v8 }
 0x377   :  { %v504_v11 = vpop.f32.mrf.mxu3 }
 0x378   :  { %v505_v12 = vadd.f32 %v2762_v10, %v504_v11 }
 0x37a   :  { %592 = vrot.lane.b32.xlu2 %v505_v12, %s2467_s27  ;;  %594 = vrot.lane.b32.xlu1 %v505_v12, %s2468_s3 }
 0x382   :  { %515 = vrot.lane.b32.xlu2 %v505_v12, %s2465_s7 }
 0x3ab   :  { %431 = vadd.xlane.f32.xlu2 %v430_v17 }
 0x3c3   :  { %645 = vrot.lane.b32.xlu2 %v505_v12, %s2469_s28 }
 0x3d4   :  { %v593_v18 = vpop.permute.xlu2 %592 }
 0x3dc   :  { %v516_v19 = vpop.permute.xlu2 %515 }
 0x3dd   :  { %2199 = vmatpush.xpose.msk.msrb.mxu0 %vm101_vm0, %v516_v19 }
 0x3e0   :  { %2200 = vmatmul.msk.f32.vlgmr.msrb.gmra.mxu0 %vm101_vm0, %v505_v12 }
 0x3ec   :  { %v595_v20 = vpop.permute.xlu1 %594 }
 0x3ed   :  { %2202 = vmatpush.xpose.msk.msra.mxu2 %vm101_vm0, %v595_v20 }
 0x3f0   :  { %2203 = vmatmul.msk.f32.vlgmr.msra.gmra.mxu2 %vm101_vm0, %v593_v18 }
 0x41e   :  { %v432_v21 = vpop.xlane.xlu2 %431 }
 0x41f   :  { %v434_v48 = vmul.f32 %v432_v21, %v2733_v46 }
 0x421   :  { %v436_v49 = vadd.f32 1e-06, %v434_v48 }
 0x423   :  { %vm453_vm9 = vweird.f32 %v436_v49 }
 0x426   :  { %v646_v22 = vpop.permute.xlu2 %645 }
 0x427   :  { %666 = vmatpush.msra.mxu3 %v646_v22 }
 0x45d   :  { %v538_v26 = vpop.f32.mrf.mxu0 }
 0x45e   :  { %v541_v27 = vmul.f32 0.25, %v538_v26 }
 0x460   :  { %v542_v29 = vsel %vm378_vm3, %v541_v27, -inf }
 0x461   :  { %543 = vmax.xlane.f32.xlu0 %v542_v29 }
 0x473   :  { %v617_v30 = vpop.f32.mrf.mxu2 }
 0x474   :  { %v620_v32 = vmul.f32 0.25, %v617_v30 }
 0x476   :  { %v621_v33 = vsel %vm378_vm3, %v620_v32, -inf }
 0x477   :  { %622 = vmax.xlane.f32.xlu1 %v621_v33  ;;  %v513_v33 = vld [vmem:[%s3423_s17 + $0x18] sm:$0xff] }
 0x478   :  { %691 = vmatpush.msra.mxu0 %v513_v33 }
 0x4d4   :  { %v544_v35 = vpop.xlane.xlu0 %543 }
 0x4d5   :  { %v545_v36 = vsub.f32 %v541_v27, %v544_v35  ;;  %v512_v35 = vld [vmem:[%s3423_s17 + $0x10] sm:$0xff] }
 0x4d6   :  { %692 = vmatpush.msra.mxu0 %v512_v35 }
 0x4d7   :  { %v546_v38 = vmul.f32 1.442695, %v545_v36 }
 0x4d9   :  { %2326 = vpow2.f32 %v546_v38  ;;  %v510_v38 = vld [vmem:[%s3423_s17] sm:$0xff] }
 0x4df   :  { %v2788_v39 = vpop.eup %2326 }
 0x4e0   :  { %v548_v40 = vsel %vm378_vm3, %v2788_v39, 0.0 }
 0x4e1   :  { %549 = vadd.xlane.f32.xlu1 %v548_v40 }
 0x4ea   :  { %v623_v41 = vpop.xlane.xlu1 %622 }
 0x4eb   :  { %v624_v42 = vsub.f32 %v620_v32, %v623_v41 }
 0x4ed   :  { %v625_v43 = vmul.f32 1.442695, %v624_v42 }
 0x4ef   :  { %2328 = vpow2.f32 %v625_v43 }
 0x4f0   :  { %2330 = vrsqrt.f32 %v436_v49 }
 0x4f5   :  { %v2329_v44 = vpop.eup %2328 }
 0x4f6   :  { %v627_v45 = vsel %vm378_vm3, %v2329_v44, 0.0  ;;  %v2331_v50 = vpop.eup %2330 }
 0x4f7   :  { %628 = vadd.xlane.f32.xlu0 %v627_v45  ;;  %v448_v52 = vmul.f32 %v2331_v50, %v436_v49  ;;  %vm454_vm10 = vweird.f32 %v2331_v50 }
 0x4f8   :  { %vm455_vm11 = vmor %vm453_vm9, %vm454_vm10 }
 0x4f9   :  { %v449_v53 = vmul.f32 %v2331_v50, %v448_v52 }
 0x4fb   :  { %v450_v56 = vmul.f32 0.5, %v449_v53 }
 0x4fd   :  { %v451_v60 = vsub.f32 1.5, %v450_v56 }
 0x4ff   :  { %v452_v63 = vmul.f32 %v2331_v50, %v451_v60 }
 0x501   :  { %v456_v2 = vsel %vm455_vm11, %v2331_v50, %v452_v63  ;;  %v2834_v50 = vld [vmem:[%s3424_s18] ss:$0 sm:$0xff] }
 0x502   :  { %v458_v6 = vmul.f32 %v456_v2, %v2770_v15 }
 0x50b   :  { %465 = vrot.lane.b32.xlu0 %v460_v47, %s2465_s7 }
 0x513   :  { %566 = vrot.lane.b32.xlu0 %v505_v12, %s2470_s8 }
 0x554   :  { %v550_v51 = vpop.xlane.xlu1 %549 }
 0x555   :  { %2332 = vrcp.f32 %v550_v51  ;;  %v562_v5 = vand.u32 2147483648, %v550_v51  ;;  %vm556_vm13 = vweird.f32 %v550_v51  ;;  %v560_v7 = vand.u32 2147483647, %v550_v51 }
 0x557   :  { %v563_v16 = vor.u32 1.1754944e-38, %v562_v5  ;;  %vm561_vm2 = vcmp.eq.f32.partialorder %v560_v7, 8.507059e+37 }
 0x55b   :  { %v2333_v55 = vpop.eup %2332 }
 0x55c   :  { %v552_v58 = vmul.f32 %v2333_v55, %v550_v51  ;;  %vm557_vm12 = vweird.f32 %v2333_v55 }
 0x55d   :  { %vm558_vm14 = vmor %vm556_vm13, %vm557_vm12 }
 0x55e   :  { %v553_v62 = vsub.f32 1.0, %v552_v58 }
 0x560   :  { %v554_v1 = vmul.f32 %v2333_v55, %v553_v62 }
 0x562   :  { %v555_v4 = vadd.f32 %v2333_v55, %v554_v1 }
 0x564   :  { %v559_v13 = vsel %vm558_vm14, %v2333_v55, %v555_v4 }
 0x565   :  { %v564_v19 = vsel %vm561_vm2, %v563_v16, %v559_v13 }
 0x566   :  { %v565_v26 = vmul.f32 %v2788_v39, %v564_v19  ;;  %v2822_v39 = vpop.f32.mrf.mxu1 }
 0x56a   :  { %v629_v54 = vpop.xlane.xlu0 %628 }
 0x56b   :  { %2334 = vrcp.f32 %v629_v54  ;;  %v641_v14 = vand.u32 2147483648, %v629_v54  ;;  %vm635_vm1 = vweird.f32 %v629_v54  ;;  %v639_v17 = vand.u32 2147483647, %v629_v54 }
 0x56d   :  { %v642_v15 = vor.u32 1.1754944e-38, %v641_v14  ;;  %vm640_vm6 = vcmp.eq.f32.partialorder %v639_v17, 8.507059e+37 }
 0x56e   :  { %v2824_v40 = vpop.f32.mrf.mxu1 }
 0x571   :  { %v2335_v59 = vpop.eup %2334 }
 0x572   :  { %v631_v61 = vmul.f32 %v2335_v59, %v629_v54  ;;  %vm636_vm15 = vweird.f32 %v2335_v59 }
 0x573   :  { %vm637_vm4 = vmor %vm635_vm1, %vm636_vm15 }
 0x574   :  { %v632_v0 = vsub.f32 1.0, %v631_v61 }
 0x576   :  { %v633_v3 = vmul.f32 %v2335_v59, %v632_v0 }
 0x578   :  { %v634_v11 = vadd.f32 %v2335_v59, %v633_v3 }
 0x57a   :  { %v638_v20 = vsel %vm637_vm4, %v2335_v59, %v634_v11 }
 0x57b   :  { %v643_v21 = vsel %vm640_vm6, %v642_v15, %v638_v20 }
 0x57c   :  { %v644_v27 = vmul.f32 %v2329_v44, %v643_v21 }
 0x57d   :  { %v466_v8 = vpop.permute.xlu0 %465 }
 0x57e   :  { %v470_v12 = vmul.f32 %v466_v8, %v458_v6 }
 0x580   :  { %v472_v18 = vadd.f32 %v470_v12, %v2720_v34 }
 0x582   :  { %2198 = vmatmul.msk.f32.gmra.mxu3 %vm179_vm5, %v472_v18 }
 0x585   :  { %v567_v22 = vpop.permute.xlu0 %566 }
 0x586   :  { %587 = vmatpush.msra.mxu1 %v567_v22 }
 0x587   :  { %2201 = vmatmul.msk.f32.vlgmr.msra.gmra.mxu1 %vm378_vm3, %v565_v26 }
 0x58a   :  { %2204 = vmatmul.msk.f32.vlgmr.msra.gmra.mxu3 %vm378_vm3, %v644_v27 }
 0x604   :  { %v589_v43 = vpop.f32.mrf.mxu1 }
 0x605   :  { %v507_v29 = vpop.f32.mrf.mxu3 }
 0x606   :  { %v508_v30 = vadd.f32 %v2762_v10, %v507_v29  ;;  %v511_v10 = vld [vmem:[%s3423_s17 + $0x8] sm:$0xff] }
 0x607   :  { %693 = vmatpush.msra.mxu0 %v511_v10 }
 0x608   :  { %700 = vrot.lane.b32.xlu2 %v508_v30, %s2465_s7  ;;  %777 = vrot.lane.b32.xlu0 %v508_v30, %s2467_s27 }
 0x609   :  { %779 = vrot.lane.b32.xlu1 %v508_v30, %s2468_s3  ;;  %694 = vmatpush.msra.mxu0 %v510_v38 }
 0x60d   :  { %v668_v32 = vpop.f32.mrf.mxu3 }
 0x610   :  { %672 = vrot.lane.b32.xlu0 %v668_v32, %s2471_s4 }
 0x662   :  { %v701_v36 = vpop.permute.xlu2 %700 }
 0x663   :  { %2206 = vmatpush.xpose.msk.msrb.mxu1 %vm101_vm0, %v701_v36 }
 0x666   :  { %2207 = vmatmul.msk.f32.vlgmr.msrb.gmra.mxu1 %vm101_vm0, %v508_v30 }
 0x667   :  { %876 = vmatpush.msra.mxu1 %v513_v33 }
 0x669   :  { %877 = vmatpush.msra.mxu1 %v512_v35 }
 0x66b   :  { %878 = vmatpush.msra.mxu1 %v511_v10 }
 0x66d   :  { %879 = vmatpush.msra.mxu1 %v510_v38 }
 0x67a   :  { %v778_v41 = vpop.permute.xlu0 %777 }
 0x67b   :  { %v780_v42 = vpop.permute.xlu1 %779 }
 0x67c   :  { %2209 = vmatpush.xpose.msk.msrb.mxu3 %vm101_vm0, %v780_v42 }
 0x67f   :  { %2210 = vmatmul.msk.f32.vlgmr.msrb.gmra.mxu3 %vm101_vm0, %v778_v41 }
 0x682   :  { %v673_v44 = vpop.permute.xlu0 %672 }
 0x683   :  { %v675_v45 = vsel %vm101_vm0, %v589_v43, %v673_v44 }
 0x684   :  { %2205 = vmatmul.msk.f32.vlgmr.msra.gmra.mxu0 %vm179_vm5, %v675_v45 }
 0x6e3   :  { %v723_v47 = vpop.f32.mrf.mxu1 }
 0x6e4   :  { %v726_v48 = vmul.f32 0.25, %v723_v47 }
 0x6e6   :  { %v727_v49 = vsel %vm378_vm3, %v726_v48, -inf }
 0x6e7   :  { %728 = vmax.xlane.f32.xlu1 %v727_v49  ;;  %v971_v49 = vld [vmem:[%s3425_s19 + $0x18] sm:$0xff] }
 0x701   :  { %v696_v51 = vpop.f32.mrf.mxu0 }
 0x702   :  { %v888_v52 = vadd.f32 %v2834_v50, %v696_v51  ;;  %v802_v53 = vpop.f32.mrf.mxu3  ;;  %v970_v51 = vld [vmem:[%s3425_s19 + $0x10] sm:$0xff] }
 0x703   :  { %v805_v54 = vmul.f32 0.25, %v802_v53  ;;  %v968_v53 = vld [vmem:[%s3425_s19] sm:$0xff] }
 0x704   :  { %892 = vrot.lane.b32.xlu0 %v888_v52, %s2470_s8  ;;  %v969_v52 = vld [vmem:[%s3425_s19 + $0x8] sm:$0xff] }
 0x705   :  { %v806_v55 = vsel %vm378_vm3, %v805_v54, -inf }
 0x706   :  { %807 = vmax.xlane.f32.xlu2 %v806_v55 }
 0x71e   :  { %830 = vrot.lane.b32.xlu2 %v508_v30, %s2469_s28 }
 0x726   :  { %960 = vrot.lane.b32.xlu2 %v2716_v31, %s2472_s13 }
 0x75a   :  { %v729_v1 = vpop.xlane.xlu1 %728 }
 0x75b   :  { %v730_v2 = vsub.f32 %v726_v48, %v729_v1 }
 0x75d   :  { %v731_v3 = vmul.f32 1.442695, %v730_v2 }
 0x776   :  { %v893_v56 = vpop.permute.xlu0 %892 }
 0x777   :  { %v898_v58 = vmul.f32 %v893_v56, %v2716_v31 }
 0x779   :  { %v808_v59 = vpop.xlane.xlu2 %807  ;;  %902 = vrot.lane.b32.xlu0 %v898_v58, %s2470_s8 }
 0x77a   :  { %v809_v61 = vsub.f32 %v805_v54, %v808_v59 }
 0x77c   :  { %v810_v62 = vmul.f32 1.442695, %v809_v61  ;;  %v268_v61 = vperm.slane %v2713_v28, 1 }
 0x77e   :  { %2336 = vpow2.f32 %v810_v62 }
 0x77f   :  { %2338 = vpow2.f32 %v731_v3 }
 0x781   :  { %v831_v60 = vpop.permute.xlu2 %830 }
 0x782   :  { %851 = vmatpush.msrb.mxu0 %v831_v60 }
 0x784   :  { %v2337_v63 = vpop.eup %2336 }
 0x785   :  { %v812_v0 = vsel %vm378_vm3, %v2337_v63, 0.0  ;;  %v2339_v6 = vpop.eup %2338 }
 0x786   :  { %v733_v7 = vsel %vm378_vm3, %v2339_v6, 0.0 }
 0x7a3   :  { %813 = vadd.xlane.f32.xlu0 %v812_v0  ;;  %v2875_v0 = vadd.f32 %v2780_v23, %v268_v61  ;;  %v1037_v23 = vld [vmem:[%s3427_s21 + $0x70] sm:$0xff] }
 0x7a5   :  { %v2878_v3 = vadd.f32 1.0, %v2875_v0 }
 0x7b7   :  { %751 = vrot.lane.b32.xlu0 %v508_v30, %s2470_s8 }
 0x7eb   :  { %v903_v4 = vpop.permute.xlu0 %902 }
 0x7ec   :  { %v2847_v31 = vadd.f32 %v903_v4, %v2725_v37 }
 0x7ee   :  { %v910_v5 = vsel %vm179_vm5, %v2847_v31, 0.0 }
 0x7ef   :  { %911 = vadd.xlane.f32.xlu1 %v910_v5 }
 0x7f7   :  { %734 = vadd.xlane.f32.xlu1 %v733_v7 }
 0x816   :  { %v814_v8 = vpop.xlane.xlu0 %813 }
 0x817   :  { %2340 = vrcp.f32 %v814_v8  ;;  %v826_v14 = vand.u32 2147483648, %v814_v8  ;;  %v824_v17 = vand.u32 2147483647, %v814_v8  ;;  %vm820_vm8 = vweird.f32 %v814_v8 }
 0x819   :  { %v827_v18 = vor.u32 1.1754944e-38, %v826_v14  ;;  %vm825_vm10 = vcmp.eq.f32.partialorder %v824_v17, 8.507059e+37  ;;  %v1034_v17 = vld [vmem:[%s3427_s21 + $0x58] sm:$0xff] }
 0x81d   :  { %v2341_v11 = vpop.eup %2340 }
 0x81e   :  { %v816_v12 = vmul.f32 %v2341_v11, %v814_v8  ;;  %vm821_vm7 = vweird.f32 %v2341_v11  ;;  %v1038_v8 = vld [vmem:[%s3427_s21 + $0x78] sm:$0xff] }
 0x81f   :  { %vm822_vm9 = vmor %vm820_vm8, %vm821_vm7  ;;  %1043 = vmatpush.msra.mxu3 %v1038_v8 }
 0x820   :  { %v817_v13 = vsub.f32 1.0, %v816_v12  ;;  %v1035_v12 = vld [vmem:[%s3427_s21 + $0x60] sm:$0xff] }
 0x821   :  { %1044 = vmatpush.msra.mxu3 %v1037_v23 }
 0x822   :  { %v818_v16 = vmul.f32 %v2341_v11, %v817_v13 }
 0x824   :  { %v819_v37 = vadd.f32 %v2341_v11, %v818_v16 }
 0x826   :  { %v823_v19 = vsel %vm822_vm9, %v2341_v11, %v819_v37  ;;  %v1036_v11 = vld [vmem:[%s3427_s21 + $0x68] sm:$0xff]  ;;  %v1033_v37 = vld [vmem:[%s3427_s21 + $0x50] sm:$0xff] }
 0x827   :  { %v828_v20 = vsel %vm825_vm10, %v827_v18, %v823_v19  ;;  %1045 = vmatpush.msra.mxu3 %v1036_v11  ;;  %v1032_v18 = vld [vmem:[%s3427_s21 + $0x48] sm:$0xff]  ;;  %v1031_v19 = vld [vmem:[%s3427_s21 + $0x40] sm:$0xff] }
 0x828   :  { %v829_v15 = vmul.f32 %v2337_v63, %v828_v20  ;;  %v1030_v20 = vld [vmem:[%s3427_s21 + $0x38] sm:$0xff] }
 0x829   :  { %v752_v21 = vpop.permute.xlu0 %751  ;;  %1046 = vmatpush.msra.mxu3 %v1035_v12 }
 0x82a   :  { %772 = vmatpush.msrb.mxu2 %v752_v21  ;;  %2211 = vmatmul.msk.f32.vlgmr.msrb.gmra.mxu0 %vm378_vm3, %v829_v15  ;;  %v1029_v15 = vld [vmem:[%s3427_s21 + $0x30] sm:$0xff]  ;;  %v1028_v21 = vld [vmem:[%s3427_s21 + $0x28] sm:$0xff] }
 0x82b   :  { %1047 = vmatpush.msra.mxu3 %v1034_v17 }
 0x82c   :  { %994 = vmatpush.msra.mxu2 %v971_v49 }
 0x82d   :  { %1048 = vmatpush.msra.mxu3 %v1033_v37 }
 0x82e   :  { %995 = vmatpush.msra.mxu2 %v970_v51 }
 0x82f   :  { %1049 = vmatpush.msra.mxu3 %v1032_v18 }
 0x830   :  { %996 = vmatpush.msra.mxu2 %v969_v52 }
 0x831   :  { %1050 = vmatpush.msra.mxu3 %v1031_v19 }
 0x832   :  { %997 = vmatpush.msra.mxu2 %v968_v53  ;;  %v2945_v53 = vld [vmem:[%s3428_s22] ss:$0 sm:$0xff] }
 0x833   :  { %1051 = vmatpush.msra.mxu3 %v1030_v20 }
 0x835   :  { %1052 = vmatpush.msra.mxu3 %v1029_v15 }
 0x837   :  { %1053 = vmatpush.msra.mxu3 %v1028_v21 }
 0x862   :  { %v912_v22 = vpop.xlane.xlu1 %911 }
 0x863   :  { %v916_v26 = vmul.f32 %v912_v22, %v2733_v46  ;;  %v1027_v22 = vld [vmem:[%s3427_s21 + $0x20] sm:$0xff] }
 0x864   :  { %1054 = vmatpush.msra.mxu3 %v1027_v22  ;;  %v2218_v22 = vld [vmem:[%s3421_s15 + $0x38] sm:$0xff] }
 0x865   :  { %v918_v27 = vsub.f32 %v2847_v31, %v916_v26  ;;  %v1026_v26 = vld [vmem:[%s3427_s21 + $0x18] sm:$0xff]  ;;  %1178 = vmatpush.msra.mxu0 %v2218_v22 }
 0x866   :  { %1055 = vmatpush.msra.mxu3 %v1026_v26  ;;  %v2217_v26 = vld [vmem:[%s3421_s15 + $0x30] sm:$0xff] }
 0x867   :  { %v920_v29 = vmul.f32 %v918_v27, %v918_v27  ;;  %1179 = vmatpush.msra.mxu0 %v2217_v26 }
 0x869   :  { %v922_v30 = vsel %vm179_vm5, %v920_v29, 0.0  ;;  %v1024_v29 = vld [vmem:[%s3427_s21 + $0x8] sm:$0xff] }
 0x86a   :  { %923 = vadd.xlane.f32.xlu1 %v922_v30  ;;  %v735_v32 = vpop.xlane.xlu1 %734  ;;  %v1023_v30 = vld [vmem:[%s3427_s21] sm:$0xff] }
 0x86b   :  { %2342 = vrcp.f32 %v735_v32  ;;  %v747_v36 = vand.u32 2147483648, %v735_v32  ;;  %v745_v41 = vand.u32 2147483647, %v735_v32  ;;  %vm741_vm12 = vweird.f32 %v735_v32 }
 0x86d   :  { %v748_v43 = vor.u32 1.1754944e-38, %v747_v36  ;;  %vm746_vm14 = vcmp.eq.f32.partialorder %v745_v41, 8.507059e+37 }
 0x871   :  { %v2343_v33 = vpop.eup %2342 }
 0x872   :  { %v737_v35 = vmul.f32 %v2343_v33, %v735_v32  ;;  %vm742_vm11 = vweird.f32 %v2343_v33  ;;  %v2935_v32 = vld [vmem:[%s3426_s20] ss:$0 sm:$0xff] }
 0x873   :  { %vm743_vm13 = vmor %vm741_vm12, %vm742_vm11 }
 0x874   :  { %v738_v10 = vsub.f32 1.0, %v737_v35 }
 0x876   :  { %v739_v38 = vmul.f32 %v2343_v33, %v738_v10 }
 0x878   :  { %v740_v42 = vadd.f32 %v2343_v33, %v739_v38 }
 0x87a   :  { %v744_v44 = vsel %vm743_vm13, %v2343_v33, %v740_v42 }
 0x87b   :  { %v749_v45 = vsel %vm746_vm14, %v748_v43, %v744_v44 }
 0x87c   :  { %v750_v47 = vmul.f32 %v2339_v6, %v749_v45  ;;  %v961_v6 = vpop.permute.xlu2 %960 }
 0x87e   :  { %2208 = vmatmul.msk.f32.vlgmr.msrb.gmra.mxu2 %vm378_vm3, %v750_v47 }
 0x8a7   :  { %v853_v48 = vpop.f32.mrf.mxu0 }
 0x8a8   :  { %857 = vrot.lane.b32.xlu1 %v853_v48, %s2471_s4 }
 0x8dd   :  { %v924_v54 = vpop.xlane.xlu1 %923 }
 0x8de   :  { %v928_v55 = vmul.f32 %v924_v54, %v2733_v46 }
 0x8e0   :  { %v930_v56 = vadd.f32 1e-06, %v928_v55 }
 0x8e2   :  { %2344 = vrsqrt.f32 %v930_v56  ;;  %vm938_vm1 = vweird.f32 %v930_v56 }
 0x8e8   :  { %v2345_v58 = vpop.eup %2344 }
 0x8e9   :  { %v933_v59 = vmul.f32 %v2345_v58, %v930_v56  ;;  %vm939_vm15 = vweird.f32 %v2345_v58 }
 0x8ea   :  { %vm940_vm2 = vmor %vm938_vm1, %vm939_vm15 }
 0x8eb   :  { %v934_v60 = vmul.f32 %v2345_v58, %v933_v59 }
 0x8ed   :  { %v935_v62 = vmul.f32 0.5, %v934_v60 }
 0x8ef   :  { %v936_v63 = vsub.f32 1.5, %v935_v62 }
 0x8f1   :  { %v937_v1 = vmul.f32 %v2345_v58, %v936_v63 }
 0x8f3   :  { %v941_v2 = vsel %vm940_vm2, %v2345_v58, %v937_v1 }
 0x8f4   :  { %v952_v4 = vmul.f32 %v941_v2, %v918_v27  ;;  %v1025_v27 = vld [vmem:[%s3427_s21 + $0x10] sm:$0xff] }
 0x8f5   :  { %1056 = vmatpush.msra.mxu3 %v1025_v27  ;;  %v2216_v27 = vld [vmem:[%s3421_s15 + $0x28] sm:$0xff] }
 0x8f6   :  { %v956_v5 = vmul.f32 %v2878_v3, %v952_v4  ;;  %1180 = vmatpush.msra.mxu0 %v2216_v27 }
 0x8f7   :  { %1057 = vmatpush.msra.mxu3 %v1024_v29  ;;  %v2215_v29 = vld [vmem:[%s3421_s15 + $0x20] sm:$0xff]  ;;  %s3459_s15 = sld [smem:[#allocation9_spill]] }
 0x8f8   :  { %v966_v7 = vadd.f32 %v961_v6, %v956_v5  ;;  %1181 = vmatpush.msra.mxu0 %v2215_v29 }
 0x8f9   :  { %1058 = vmatpush.msra.mxu3 %v1023_v30 }
 0x8fa   :  { %2213 = vmatmul.msk.f32.vlgmr.msra.gmra.mxu2 %vm179_vm5, %v966_v7 }
 0x901   :  { %v774_v13 = vpop.f32.mrf.mxu2 }
 0x91a   :  { %v858_v14 = vpop.permute.xlu1 %857 }
 0x91b   :  { %v860_v16 = vsel %vm101_vm0, %v774_v13, %v858_v14 }
 0x91c   :  { %2212 = vmatmul.msk.f32.vlgmr.msra.gmra.mxu1 %vm179_vm5, %v860_v16 }
 0x97d   :  { %v999_v33 = vpop.f32.mrf.mxu2 }
 0x97e   :  { %v1000_v35 = vadd.f32 %v2935_v32, %v999_v33 }
 0x980   :  { %v1007_v10 = vmul.f32 0.044715, %v1000_v35  ;;  %v1005_v44 = vmul.f32 0.5, %v1000_v35 }
 0x982   :  { %v1009_v36 = vmul.f32 %v1007_v10, %v1000_v35 }
 0x984   :  { %v1011_v38 = vmul.f32 %v1009_v36, %v1000_v35 }
 0x986   :  { %v1013_v41 = vadd.f32 %v1011_v38, %v1000_v35 }
 0x988   :  { %v1015_v42 = vmul.f32 0.7978846, %v1013_v41 }
 0x98a   :  { %2346 = vtanh.f32 %v1015_v42 }
 0x990   :  { %v2347_v43 = vpop.eup %2346 }
 0x991   :  { %v1019_v45 = vadd.f32 1.0, %v2347_v43 }
 0x993   :  { %v1021_v47 = vmul.f32 %v1019_v45, %v1005_v44 }
 0x995   :  { %1059 = vmatmul.f32.vlgmr.msra.gmra.mxu3 %v1021_v47 }
 0x999   :  { %v881_v48 = vpop.f32.mrf.mxu1 }
 0x99a   :  { %v889_v49 = vadd.f32 %v2834_v50, %v881_v48 }
 0x99c   :  { %894 = vrot.lane.b32.xlu0 %v889_v49, %s2470_s8 }
 0xa0e   :  { %v895_v51 = vpop.permute.xlu0 %894 }
 0xa0f   :  { %v899_v52 = vmul.f32 %v895_v51, %v2720_v34 }
 0xa11   :  { %904 = vrot.lane.b32.xlu2 %v899_v52, %s2470_s8 }
 0xa18   :  { %v1060_v54 = vpop.f32.mrf.mxu3 }
 0xa19   :  { %v1061_v55 = vadd.f32 %v2945_v53, %v1060_v54 }
 0xa1b   :  { %1068 = vrot.lane.b32.xlu0 %v1061_v55, %s2472_s13 }
 0xa6b   :  { %v905_v56 = vpop.permute.xlu2 %904 }
 0xa6c   :  { %v2950_v50 = vadd.f32 %v905_v56, %v2750_v57 }
 0xa6e   :  { %v913_v58 = vsel %vm179_vm5, %v2950_v50, 0.0 }
 0xa6f   :  { %914 = vadd.xlane.f32.xlu2 %v913_v58 }
 0xa8d   :  { %v1069_v59 = vpop.permute.xlu0 %1068 }
 0xa8e   :  { %v1074_v60 = vmul.f32 %v1069_v59, %v2875_v0 }
 0xa90   :  { %1078 = vrot.lane.b32.xlu0 %v1074_v60, %s2465_s7 }
 0xa98   :  { %962 = vrot.lane.b32.xlu0 %v2720_v34, %s2472_s13 }
 0xae2   :  { %v915_v62 = vpop.xlane.xlu2 %914 }
 0xae3   :  { %v917_v63 = vmul.f32 %v915_v62, %v2733_v46 }
 0xae5   :  { %v919_v1 = vsub.f32 %v2950_v50, %v917_v63 }
 0xae7   :  { %v921_v2 = vmul.f32 %v919_v1, %v919_v1 }
 0xae9   :  { %v925_v57 = vsel %vm179_vm5, %v921_v2, 0.0 }
 0xaea   :  { %926 = vadd.xlane.f32.xlu1 %v925_v57 }
 0xb02   :  { %v1079_v4 = vpop.permute.xlu0 %1078 }
 0xb03   :  { %v2962_v5 = vadd.f32 %v1079_v4, %v2847_v31  ;;  %1142 = vrot.lane.b32.xlu1 %v2875_v0, %s2470_s8  ;;  %v2972_v31 = vadd.f32 %v2757_v9, %v268_v61 }
 0xb05   :  { %v1086_v6 = vsel %vm179_vm5, %v2962_v5, 0.0  ;;  %v2975_v37 = vadd.f32 1.0, %v2972_v31 }
 0xb06   :  { %1087 = vadd.xlane.f32.xlu0 %v1086_v6 }
 0xb0a   :  { %v963_v0 = vpop.permute.xlu0 %962 }
 0xb5d   :  { %v927_v34 = vpop.xlane.xlu1 %926 }
 0xb5e   :  { %v929_v7 = vmul.f32 %v927_v34, %v2733_v46 }
 0xb60   :  { %v931_v8 = vadd.f32 1e-06, %v929_v7 }
 0xb62   :  { %2348 = vrsqrt.f32 %v931_v8  ;;  %vm948_vm6 = vweird.f32 %v931_v8 }
 0xb68   :  { %v2349_v23 = vpop.eup %2348 }
 0xb69   :  { %v943_v11 = vmul.f32 %v2349_v23, %v931_v8  ;;  %vm949_vm4 = vweird.f32 %v2349_v23 }
 0xb6a   :  { %vm950_vm7 = vmor %vm948_vm6, %vm949_vm4 }
 0xb6b   :  { %v944_v12 = vmul.f32 %v2349_v23, %v943_v11 }
 0xb6d   :  { %v945_v13 = vmul.f32 0.5, %v944_v12 }
 0xb6f   :  { %v946_v14 = vsub.f32 1.5, %v945_v13 }
 0xb71   :  { %v947_v16 = vmul.f32 %v2349_v23, %v946_v14 }
 0xb73   :  { %v951_v17 = vsel %vm950_vm7, %v2349_v23, %v947_v16 }
 0xb74   :  { %v953_v18 = vmul.f32 %v951_v17, %v919_v1  ;;  %v3002_v1 = vld [vmem:[%s3422_s16 + $0x1] ss:$0 sm:$0xff] }
 0xb76   :  { %v957_v19 = vmul.f32 %v2975_v37, %v953_v18 }
 0xb78   :  { %v967_v20 = vadd.f32 %v963_v0, %v957_v19 }
 0xb79   :  { %v1088_v15 = vpop.xlane.xlu0 %1087 }
 0xb7a   :  { %v1092_v21 = vmul.f32 %v1088_v15, %v2733_v46  ;;  %2214 = vmatmul.msk.f32.gmra.mxu2 %vm179_vm5, %v967_v20 }
 0xb7c   :  { %v1094_v28 = vsub.f32 %v2962_v5, %v1092_v21 }
 0xb7e   :  { %v1096_v9 = vmul.f32 %v1094_v28, %v1094_v28 }
 0xb80   :  { %v1098_v61 = vsel %vm179_vm5, %v1096_v9, 0.0 }
 0xb81   :  { %1099 = vadd.xlane.f32.xlu2 %v1098_v61 }
 0xb99   :  { %1132 = vrot.lane.b32.xlu2 %v2878_v3, %s2472_s13 }
 0xbf4   :  { %v1100_v3 = vpop.xlane.xlu2 %1099 }
 0xbf5   :  { %v1104_v30 = vmul.f32 %v1100_v3, %v2733_v46 }
 0xbf7   :  { %v1106_v33 = vadd.f32 1e-06, %v1104_v30 }
 0xbf9   :  { %2350 = vrsqrt.f32 %v1106_v33  ;;  %vm1114_vm9 = vweird.f32 %v1106_v33 }
 0xbfc   :  { %v1133_v55 = vpop.permute.xlu2 %1132 }
 0xbfd   :  { %v1002_v35 = vpop.f32.mrf.mxu2 }
 0xbfe   :  { %v1003_v10 = vadd.f32 %v2935_v32, %v1002_v35  ;;  %v1143_v32 = vpop.permute.xlu1 %1142 }
 0xbff   :  { %v2351_v36 = vpop.eup %2350 }
 0xc00   :  { %v1109_v38 = vmul.f32 %v2351_v36, %v1106_v33  ;;  %v1008_v41 = vmul.f32 0.044715, %v1003_v10  ;;  %vm1115_vm8 = vweird.f32 %v2351_v36  ;;  %v1006_v60 = vmul.f32 0.5, %v1003_v10 }
 0xc01   :  { %vm1116_vm10 = vmor %vm1114_vm9, %vm1115_vm8 }
 0xc02   :  { %v1110_v42 = vmul.f32 %v2351_v36, %v1109_v38  ;;  %v1010_v43 = vmul.f32 %v1008_v41, %v1003_v10 }
 0xc04   :  { %v1111_v44 = vmul.f32 0.5, %v1110_v42  ;;  %v1012_v45 = vmul.f32 %v1010_v43, %v1003_v10 }
 0xc06   :  { %v1112_v47 = vsub.f32 1.5, %v1111_v44  ;;  %v1014_v48 = vadd.f32 %v1012_v45, %v1003_v10 }
 0xc08   :  { %v1113_v49 = vmul.f32 %v2351_v36, %v1112_v47  ;;  %v1016_v51 = vmul.f32 0.7978846, %v1014_v48 }
 0xc0a   :  { %v1117_v52 = vsel %vm1116_vm10, %v2351_v36, %v1113_v49  ;;  %2352 = vtanh.f32 %v1016_v51 }
 0xc0b   :  { %v1128_v54 = vmul.f32 %v1117_v52, %v1094_v28 }
 0xc0d   :  { %v1138_v56 = vmul.f32 %v1133_v55, %v1128_v54 }
 0xc0f   :  { %v1148_v58 = vadd.f32 %v1143_v32, %v1138_v56 }
 0xc10   :  { %v2353_v59 = vpop.eup %2352 }
 0xc11   :  { %2220 = vmatmul.msk.f32.vlgmr.msra.gmra.mxu0 %vm179_vm5, %v1148_v58  ;;  %v1020_v62 = vadd.f32 1.0, %v2353_v59 }
 0xc13   :  { %v1022_v63 = vmul.f32 %v1020_v62, %v1006_v60 }
 0xc15   :  { %1062 = vmatmul.f32.gmra.mxu3 %v1022_v63 }
 0xc8e   :  { %v1183_v2 = vpop.f32.mrf.mxu0 }
 0xc8f   :  { %v1184_v57 = vadd.f32 %v3002_v1, %v1183_v2 }
 0xc91   :  { %1195 = vrot.lane.b32.xlu1 %v1184_v57, %s2465_s7  ;;  %1272 = vrot.lane.b32.xlu2 %v1184_v57, %s2467_s27 }
 0xc92   :  { %1274 = vrot.lane.b32.xlu0 %v1184_v57, %s2468_s3 }
 0xc98   :  { %v1063_v4 = vpop.f32.mrf.mxu3 }
 0xc99   :  { %v1064_v6 = vadd.f32 %v2945_v53, %v1063_v4 }
 0xc9b   :  { %1070 = vrot.lane.b32.xlu2 %v1064_v6, %s2472_s13 }
 0xceb   :  { %v1273_v34 = vpop.permute.xlu2 %1272 }
 0xcf5   :  { %v1071_v7 = vpop.permute.xlu2 %1070 }
 0xcf6   :  { %v1075_v8 = vmul.f32 %v1071_v7, %v2972_v31 }
 0xcf8   :  { %1080 = vrot.lane.b32.xlu0 %v1075_v8, %s2465_s7 }
 0xd03   :  { %v1196_v23 = vpop.permute.xlu1 %1195 }
 0xd04   :  { %v1275_v11 = vpop.permute.xlu0 %1274  ;;  %2226 = vmatpush.xpose.msk.msrb.mxu1 %vm101_vm0, %v1196_v23 }
 0xd05   :  { %2229 = vmatpush.xpose.msk.msrb.mxu2 %vm101_vm0, %v1275_v11 }
 0xd07   :  { %2227 = vmatmul.msk.f32.vlgmr.msrb.gmra.mxu1 %vm101_vm0, %v1184_v57 }
 0xd08   :  { %2230 = vmatmul.msk.f32.vlgmr.msrb.gmra.mxu2 %vm101_vm0, %v1273_v34 }
 0xd6a   :  { %v1081_v12 = vpop.permute.xlu0 %1080 }
 0xd6b   :  { %v3017_v53 = vadd.f32 %v1081_v12, %v2950_v50 }
 0xd6d   :  { %v1089_v13 = vsel %vm179_vm5, %v3017_v53, 0.0 }
 0xd6e   :  { %1090 = vadd.xlane.f32.xlu1 %v1089_v13 }
 0xd84   :  { %v1218_v14 = vpop.f32.mrf.mxu1 }
 0xd85   :  { %v1221_v0 = vmul.f32 0.25, %v1218_v14 }
 0xd87   :  { %v1222_v16 = vsel %vm378_vm3, %v1221_v0, -inf }
 0xd88   :  { %1223 = vmax.xlane.f32.xlu1 %v1222_v16 }
 0xd8b   :  { %v1297_v17 = vpop.f32.mrf.mxu2 }
 0xd8c   :  { %v1300_v18 = vmul.f32 0.25, %v1297_v17 }
 0xd8e   :  { %v1301_v19 = vsel %vm378_vm3, %v1300_v18, -inf }
 0xd8f   :  { %1302 = vmax.xlane.f32.xlu2 %v1301_v19 }
 0xda1   :  { %1144 = vrot.lane.b32.xlu1 %v2972_v31, %s2470_s8 }
 0xda9   :  { %1246 = vrot.lane.b32.xlu1 %v1184_v57, %s2470_s8 }
 0xde1   :  { %v1091_v50 = vpop.xlane.xlu1 %1090 }
 0xde2   :  { %v1093_v20 = vmul.f32 %v1091_v50, %v2733_v46 }
 0xde4   :  { %v1095_v15 = vsub.f32 %v3017_v53, %v1093_v20 }
 0xde6   :  { %v1097_v21 = vmul.f32 %v1095_v15, %v1095_v15 }
 0xde8   :  { %v1101_v28 = vsel %vm179_vm5, %v1097_v21, 0.0  ;;  %v3053_v21 = vld [vmem:[%s3423_s17 + $0x30] sm:$0xff] }
 0xde9   :  { %1102 = vadd.xlane.f32.xlu0 %v1101_v28  ;;  %v3065_v28 = vld [vmem:[%s3423_s17 + $0x20] sm:$0xff] }
 0xdfb   :  { %v1224_v26 = vpop.xlane.xlu1 %1223 }
 0xdfc   :  { %v1225_v3 = vsub.f32 %v1221_v0, %v1224_v26 }
 0xdfd   :  { %1134 = vrot.lane.b32.xlu0 %v2975_v37, %s2472_s13 }
 0xdfe   :  { %v1226_v30 = vmul.f32 1.442695, %v1225_v3 }
 0xe02   :  { %v1303_v9 = vpop.xlane.xlu2 %1302 }
 0xe03   :  { %v1304_v61 = vsub.f32 %v1300_v18, %v1303_v9 }
 0xe05   :  { %v1305_v22 = vmul.f32 1.442695, %v1304_v61 }
 0xe07   :  { %2354 = vpow2.f32 %v1305_v22 }
 0xe08   :  { %2356 = vpow2.f32 %v1226_v30  ;;  %v3082_v30 = vld [vmem:[%s3424_s18 + $0x1] ss:$0 sm:$0xff]  ;;  %s3463_s18 = sld [smem:[#allocation8_spill]] }
 0xe0d   :  { %v2355_v31 = vpop.eup %2354 }
 0xe0e   :  { %v1307_v27 = vsel %vm378_vm3, %v2355_v31, 0.0  ;;  %v2357_v35 = vpop.eup %2356 }
 0xe0f   :  { %1308 = vadd.xlane.f32.xlu2 %v1307_v27  ;;  %v1228_v10 = vsel %vm378_vm3, %v2357_v35, 0.0 }
 0xe13   :  { %v1145_v29 = vpop.permute.xlu1 %1144 }
 0xe1b   :  { %v1247_v33 = vpop.permute.xlu1 %1246 }
 0xe1c   :  { %1267 = vmatpush.msra.mxu1 %v1247_v33 }
 0xe27   :  { %1325 = vrot.lane.b32.xlu2 %v1184_v57, %s2469_s28  ;;  %1229 = vadd.xlane.f32.xlu0 %v1228_v10  ;;  %v3087_v10 = vld [vmem:[%s3420_s14] sm:$0xf] }
 0xe5c   :  { %v1103_v37 = vpop.xlane.xlu0 %1102 }
 0xe5d   :  { %v1105_v36 = vmul.f32 %v1103_v37, %v2733_v46  ;;  %v269_v37 = vperm.slane %v3087_v10, 2 }
 0xe5f   :  { %v1107_v38 = vadd.f32 1e-06, %v1105_v36 }
 0xe61   :  { %2358 = vrsqrt.f32 %v1107_v38  ;;  %vm1124_vm12 = vweird.f32 %v1107_v38 }
 0xe67   :  { %v2359_v41 = vpop.eup %2358 }
 0xe68   :  { %v1119_v42 = vmul.f32 %v2359_v41, %v1107_v38  ;;  %vm1125_vm11 = vweird.f32 %v2359_v41 }
 0xe69   :  { %vm1126_vm13 = vmor %vm1124_vm12, %vm1125_vm11 }
 0xe6a   :  { %v1120_v43 = vmul.f32 %v2359_v41, %v1119_v42  ;;  %v3095_v42 = vadd.f32 %v2782_v24, %v269_v37 }
 0xe6c   :  { %v1121_v44 = vmul.f32 0.5, %v1120_v43 }
 0xe6e   :  { %v1122_v45 = vsub.f32 1.5, %v1121_v44 }
 0xe6f   :  { %v1135_v51 = vpop.permute.xlu0 %1134 }
 0xe70   :  { %v1123_v47 = vmul.f32 %v2359_v41, %v1122_v45 }
 0xe72   :  { %v1127_v48 = vsel %vm1126_vm13, %v2359_v41, %v1123_v47 }
 0xe73   :  { %v1129_v49 = vmul.f32 %v1127_v48, %v1095_v15  ;;  %v3048_v15 = vld [vmem:[%s3423_s17 + $0x38] sm:$0xff] }
 0xe74   :  { %1371 = vmatpush.msrb.mxu1 %v3048_v15 }
 0xe75   :  { %v1139_v52 = vmul.f32 %v1135_v51, %v1129_v49 }
 0xe76   :  { %1372 = vmatpush.msrb.mxu1 %v3053_v21 }
 0xe77   :  { %v1149_v54 = vadd.f32 %v1145_v29, %v1139_v52 }
 0xe79   :  { %2221 = vmatmul.msk.f32.gmra.mxu0 %vm179_vm5, %v1149_v54 }
 0xe82   :  { %v1309_v55 = vpop.xlane.xlu2 %1308 }
 0xe83   :  { %2360 = vrcp.f32 %v1309_v55  ;;  %v1321_v60 = vand.u32 2147483648, %v1309_v55  ;;  %v1319_v63 = vand.u32 2147483647, %v1309_v55  ;;  %vm1315_vm15 = vweird.f32 %v1309_v55 }
 0xe85   :  { %v1322_v57 = vor.u32 1.1754944e-38, %v1321_v60  ;;  %vm1320_vm2 = vcmp.eq.f32.partialorder %v1319_v63, 8.507059e+37 }
 0xe89   :  { %v2361_v56 = vpop.eup %2360 }
 0xe8a   :  { %v1311_v32 = vmul.f32 %v2361_v56, %v1309_v55  ;;  %v1326_v58 = vpop.permute.xlu2 %1325  ;;  %vm1316_vm14 = vweird.f32 %v2361_v56 }
 0xe8b   :  { %1346 = vmatpush.msrb.mxu0 %v1326_v58  ;;  %vm1317_vm1 = vmor %vm1315_vm15, %vm1316_vm14 }
 0xe8c   :  { %v1312_v59 = vsub.f32 1.0, %v1311_v32 }
 0xe8e   :  { %v1313_v62 = vmul.f32 %v2361_v56, %v1312_v59 }
 0xe90   :  { %v1314_v2 = vadd.f32 %v2361_v56, %v1313_v62 }
 0xe92   :  { %v1318_v4 = vsel %vm1317_vm1, %v2361_v56, %v1314_v2 }
 0xe93   :  { %v1323_v6 = vsel %vm1320_vm2, %v1322_v57, %v1318_v4 }
 0xe94   :  { %v1324_v34 = vmul.f32 %v2355_v31, %v1323_v6 }
 0xe96   :  { %2231 = vmatmul.msk.f32.vlgmr.msrb.gmra.mxu0 %vm378_vm3, %v1324_v34 }
 0xe9a   :  { %v1230_v7 = vpop.xlane.xlu0 %1229 }
 0xe9b   :  { %2362 = vrcp.f32 %v1230_v7  ;;  %v1242_v12 = vand.u32 2147483648, %v1230_v7  ;;  %v1240_v14 = vand.u32 2147483647, %v1230_v7  ;;  %vm1236_vm6 = vweird.f32 %v1230_v7 }
 0xe9d   :  { %v1243_v16 = vor.u32 1.1754944e-38, %v1242_v12  ;;  %vm1241_vm8 = vcmp.eq.f32.partialorder %v1240_v14, 8.507059e+37 }
 0xea1   :  { %v2363_v8 = vpop.eup %2362 }
 0xea2   :  { %v1232_v23 = vmul.f32 %v2363_v8, %v1230_v7  ;;  %vm1237_vm4 = vweird.f32 %v2363_v8 }
 0xea3   :  { %vm1238_vm7 = vmor %vm1236_vm6, %vm1237_vm4 }
 0xea4   :  { %v1233_v11 = vsub.f32 1.0, %v1232_v23 }
 0xea6   :  { %v1234_v13 = vmul.f32 %v2363_v8, %v1233_v11 }
 0xea8   :  { %v1235_v0 = vadd.f32 %v2363_v8, %v1234_v13 }
 0xeaa   :  { %v1239_v17 = vsel %vm1238_vm7, %v2363_v8, %v1235_v0 }
 0xeab   :  { %v1244_v18 = vsel %vm1241_vm8, %v1243_v16, %v1239_v17 }
 0xeac   :  { %v1245_v19 = vmul.f32 %v2357_v35, %v1244_v18 }
 0xeae   :  { %2228 = vmatmul.msk.f32.vlgmr.msra.gmra.mxu1 %vm378_vm3, %v1245_v19 }
 0xef6   :  { %v1186_v50 = vpop.f32.mrf.mxu0 }
 0xef7   :  { %v3039_v20 = vadd.f32 %v3002_v1, %v1186_v50  ;;  %v3059_v1 = vld [vmem:[%s3423_s17 + $0x28] sm:$0xff] }
 0xef8   :  { %1373 = vmatpush.msrb.mxu1 %v3059_v1 }
 0xef9   :  { %1459 = vrot.lane.b32.xlu1 %v3039_v20, %s2468_s3  ;;  %s3461_s3 = sld [smem:[#allocation5_spill]] }
 0xefa   :  { %1374 = vmatpush.msrb.mxu1 %v3065_v28 }
 0xf01   :  { %1380 = vrot.lane.b32.xlu1 %v3039_v20, %s2465_s7 }
 0xf13   :  { %v1348_v9 = vpop.f32.mrf.mxu0 }
 0xf14   :  { %1352 = vrot.lane.b32.xlu2 %v1348_v9, %s2471_s4 }
 0xf1c   :  { %1457 = vrot.lane.b32.xlu2 %v3039_v20, %s2467_s27 }
 0xf2b   :  { %v1269_v22 = vpop.f32.mrf.mxu1 }
 0xf6b   :  { %v1460_v61 = vpop.permute.xlu1 %1459 }
 0xf6c   :  { %2236 = vmatpush.xpose.msk.msra.mxu1 %vm101_vm0, %v1460_v61 }
 0xf6e   :  { %v1353_v26 = vpop.permute.xlu2 %1352 }
 0xf6f   :  { %v1355_v31 = vsel %vm101_vm0, %v1269_v22, %v1353_v26 }
 0xf70   :  { %2232 = vmatmul.msk.f32.vlgmr.msrb.gmra.mxu1 %vm179_vm5, %v1355_v31 }
 0xf73   :  { %v1381_v27 = vpop.permute.xlu1 %1380 }
 0xf74   :  { %2233 = vmatpush.xpose.msk.msra.mxu2 %vm101_vm0, %v1381_v27 }
 0xf76   :  { %v1458_v29 = vpop.permute.xlu2 %1457 }
 0xf77   :  { %2234 = vmatmul.msk.f32.vlgmr.msra.gmra.mxu2 %vm101_vm0, %v3039_v20 }
 0xf78   :  { %2237 = vmatmul.msk.f32.vlgmr.msra.gmra.mxu1 %vm101_vm0, %v1458_v29 }
 0xfed   :  { %v1376_v3 = vpop.f32.mrf.mxu1 }
 0xfee   :  { %v1569_v38 = vadd.f32 %v3082_v30, %v1376_v3 }
 0xff0   :  { %v1571_v44 = vmul.f32 %v1569_v38, %v3095_v42 }
 0xff2   :  { %v3100_v47 = vadd.f32 %v1571_v44, %v2962_v5 }
 0xff4   :  { %v1575_v48 = vsel %vm179_vm5, %v3100_v47, 0.0 }
 0xff5   :  { %v1482_v33 = vpop.f32.mrf.mxu1 }
 0xff6   :  { %v1485_v35 = vmul.f32 0.25, %v1482_v33 }
 0xff8   :  { %v1486_v36 = vsel %vm378_vm3, %v1485_v35, -inf }
 0xff9   :  { %1487 = vmax.xlane.f32.xlu2 %v1486_v36  ;;  %v3129_v36 = vadd.f32 %v2784_v25, %v269_v37 }
 0xffa   :  { %v1403_v41 = vpop.f32.mrf.mxu2 }
 0xffb   :  { %v1406_v43 = vmul.f32 0.25, %v1403_v41 }
 0xffd   :  { %v1407_v45 = vsel %vm378_vm3, %v1406_v43, -inf }
 0xffe   :  { %1408 = vmax.xlane.f32.xlu1 %v1407_v45 }
0x1006   :  { %1576 = vadd.xlane.f32.xlu1 %v1575_v48 }
0x106c   :  { %v1488_v49 = vpop.xlane.xlu2 %1487 }
0x106d   :  { %v1489_v51 = vsub.f32 %v1485_v35, %v1488_v49  ;;  %v1619_v35 = vadd.f32 1.0, %v3095_v42 }
0x106f   :  { %v1490_v52 = vmul.f32 1.442695, %v1489_v51 }
0x1071   :  { %2364 = vpow2.f32 %v1490_v52  ;;  %v1409_v54 = vpop.xlane.xlu1 %1408 }
0x1072   :  { %v1410_v24 = vsub.f32 %v1406_v43, %v1409_v54  ;;  %v2244_v54 = vld [vmem:[%s3425_s19 + $0x38] sm:$0xff] }
0x1073   :  { %1669 = vmatpush.msrb.mxu1 %v2244_v54 }
0x1074   :  { %v1411_v55 = vmul.f32 1.442695, %v1410_v24  ;;  %v2243_v24 = vld [vmem:[%s3425_s19 + $0x30] sm:$0xff] }
0x1075   :  { %1670 = vmatpush.msrb.mxu1 %v2243_v24 }
0x1076   :  { %2366 = vpow2.f32 %v1411_v55  ;;  %v2242_v55 = vld [vmem:[%s3425_s19 + $0x28] sm:$0xff] }
0x1077   :  { %v2365_v56 = vpop.eup %2364  ;;  %1671 = vmatpush.msrb.mxu1 %v2242_v55 }
0x1078   :  { %v1492_v32 = vsel %vm378_vm3, %v2365_v56, 0.0 }
0x1079   :  { %1493 = vadd.xlane.f32.xlu0 %v1492_v32  ;;  %v1577_v58 = vpop.xlane.xlu1 %1576 }
0x107a   :  { %v1581_v5 = vmul.f32 %v1577_v58, %v2733_v46 }
0x107c   :  { %v2367_v59 = vpop.eup %2366  ;;  %v3107_v60 = vsub.f32 %v3100_v47, %v1581_v5 }
0x107d   :  { %v1413_v62 = vsel %vm378_vm3, %v2367_v59, 0.0 }
0x107e   :  { %1414 = vadd.xlane.f32.xlu2 %v1413_v62  ;;  %v1585_v63 = vmul.f32 %v3107_v60, %v3107_v60 }
0x1080   :  { %v1587_v2 = vsel %vm179_vm5, %v1585_v63, 0.0 }
0x1081   :  { %1588 = vadd.xlane.f32.xlu1 %v1587_v2  ;;  %v2263_v2 = vld [vmem:[%s3427_s21 + $0xf8] sm:$0xff] }
0x1082   :  { %1720 = vmatpush.msrb.mxu3 %v2263_v2 }
0x108d   :  { %1510 = vrot.lane.b32.xlu0 %v3039_v20, %s2469_s28 }
0x1095   :  { %1431 = vrot.lane.b32.xlu0 %v3039_v20, %s2470_s8 }
0x10ec   :  { %v1494_v57 = vpop.xlane.xlu0 %1493 }
0x10ed   :  { %2368 = vrcp.f32 %v1494_v57  ;;  %v1506_v8 = vand.u32 2147483648, %v1494_v57  ;;  %v1504_v12 = vand.u32 2147483647, %v1494_v57  ;;  %vm1500_vm10 = vweird.f32 %v1494_v57 }
0x10ef   :  { %v1507_v0 = vor.u32 1.1754944e-38, %v1506_v8  ;;  %vm1505_vm12 = vcmp.eq.f32.partialorder %v1504_v12, 8.507059e+37 }
0x10f1   :  { %v1415_v4 = vpop.xlane.xlu2 %1414 }
0x10f2   :  { %2370 = vrcp.f32 %v1415_v4  ;;  %v1427_v50 = vand.u32 2147483648, %v1415_v4  ;;  %vm1421_vm14 = vweird.f32 %v1415_v4  ;;  %v1425_v61 = vand.u32 2147483647, %v1415_v4 }
0x10f3   :  { %v2369_v6 = vpop.eup %2368 }
0x10f4   :  { %v1496_v34 = vmul.f32 %v2369_v6, %v1494_v57  ;;  %vm1501_vm9 = vweird.f32 %v2369_v6  ;;  %v1428_v31 = vor.u32 1.1754944e-38, %v1427_v50  ;;  %vm1426_vm1 = vcmp.eq.f32.partialorder %v1425_v61, 8.507059e+37  ;;  %v2262_v57 = vld [vmem:[%s3427_s21 + $0xf0] sm:$0xff] }
0x10f5   :  { %vm1502_vm11 = vmor %vm1500_vm10, %vm1501_vm9  ;;  %1721 = vmatpush.msrb.mxu3 %v2262_v57 }
0x10f6   :  { %v1497_v7 = vsub.f32 1.0, %v1496_v34  ;;  %v2260_v34 = vld [vmem:[%s3427_s21 + $0xe0] sm:$0xff] }
0x10f8   :  { %v2371_v23 = vpop.eup %2370  ;;  %v1498_v11 = vmul.f32 %v2369_v6, %v1497_v7 }
0x10f9   :  { %v1417_v13 = vmul.f32 %v2371_v23, %v1415_v4  ;;  %vm1422_vm13 = vweird.f32 %v2371_v23  ;;  %v2261_v4 = vld [vmem:[%s3427_s21 + $0xe8] sm:$0xff] }
0x10fa   :  { %v1499_v14 = vadd.f32 %v2369_v6, %v1498_v11  ;;  %vm1423_vm15 = vmor %vm1421_vm14, %vm1422_vm13  ;;  %1722 = vmatpush.msrb.mxu3 %v2261_v4 }
0x10fb   :  { %v1418_v16 = vsub.f32 1.0, %v1417_v13 }
0x10fc   :  { %v1503_v17 = vsel %vm1502_vm11, %v2369_v6, %v1499_v14  ;;  %1723 = vmatpush.msrb.mxu3 %v2260_v34  ;;  %v2304_v34 = vld [vmem:[%s3428_s22 + $0x1] ss:$0 sm:$0xff] }
0x10fd   :  { %v1508_v18 = vsel %vm1505_vm12, %v1507_v0, %v1503_v17  ;;  %v1419_v19 = vmul.f32 %v2371_v23, %v1418_v16 }
0x10fe   :  { %v1509_v20 = vmul.f32 %v2365_v56, %v1508_v18  ;;  %v2241_v56 = vld [vmem:[%s3425_s19 + $0x20] sm:$0xff] }
0x10ff   :  { %v1420_v9 = vadd.f32 %v2371_v23, %v1419_v19  ;;  %v1511_v22 = vpop.permute.xlu0 %1510  ;;  %1672 = vmatpush.msrb.mxu1 %v2241_v56 }
0x1100   :  { %1531 = vmatpush.msrb.mxu2 %v1511_v22 }
0x1101   :  { %v1424_v26 = vsel %vm1423_vm15, %v2371_v23, %v1420_v9  ;;  %2238 = vmatmul.msk.f32.vlgmr.msrb.gmra.mxu2 %vm378_vm3, %v1509_v20 }
0x1102   :  { %v1429_v27 = vsel %vm1426_vm1, %v1428_v31, %v1424_v26 }
0x1103   :  { %v1430_v3 = vmul.f32 %v2367_v59, %v1429_v27 }
0x1107   :  { %v1432_v29 = vpop.permute.xlu0 %1431 }
0x1108   :  { %1452 = vmatpush.msra.mxu0 %v1432_v29  ;;  %v2259_v29 = vld [vmem:[%s3427_s21 + $0xd8] sm:$0xff] }
0x1109   :  { %2235 = vmatmul.msk.f32.vlgmr.msra.gmra.mxu0 %vm378_vm3, %v1430_v3  ;;  %1724 = vmatpush.msrb.mxu3 %v2259_v29  ;;  %v2257_v3 = vld [vmem:[%s3427_s21 + $0xc8] sm:$0xff] }
0x110a   :  { %1556 = vmatpush.msrb.mxu0 %v3048_v15  ;;  %v1620_v15 = vadd.f32 1.0, %v3129_v36 }
0x110c   :  { %1557 = vmatpush.msrb.mxu0 %v3053_v21 }
0x110e   :  { %1558 = vmatpush.msrb.mxu0 %v3059_v1 }
0x1110   :  { %1559 = vmatpush.msrb.mxu0 %v3065_v28 }
0x1184   :  { %v1533_v33 = vpop.f32.mrf.mxu2 }
0x1185   :  { %1537 = vrot.lane.b32.xlu2 %v1533_v33, %s2471_s4  ;;  %v2256_v33 = vld [vmem:[%s3427_s21 + $0xc0] sm:$0xff] }
0x1186   :  { %v1454_v21 = vpop.f32.mrf.mxu0 }
0x118d   :  { %1623 = vrot.lane.b32.xlu2 %v1619_v35, %s2470_s8  ;;  %v2255_v35 = vld [vmem:[%s3427_s21 + $0xb8] sm:$0xff] }
0x1195   :  { %1625 = vrot.lane.b32.xlu2 %v1620_v15, %s2470_s8  ;;  %v2254_v15 = vld [vmem:[%s3427_s21 + $0xb0] sm:$0xff] }
0x119d   :  { %1635 = vrot.lane.b32.xlu2 %v3129_v36, %s2465_s7 }
0x11df   :  { %v1538_v1 = vpop.permute.xlu2 %1537 }
0x11e0   :  { %v1540_v28 = vsel %vm101_vm0, %v1454_v21, %v1538_v1  ;;  %v2253_v21 = vld [vmem:[%s3427_s21 + $0xa8] sm:$0xff]  ;;  %v2252_v1 = vld [vmem:[%s3427_s21 + $0xa0] sm:$0xff] }
0x11e1   :  { %2239 = vmatmul.msk.f32.vlgmr.msrb.gmra.mxu0 %vm179_vm5, %v1540_v28  ;;  %v2251_v28 = vld [vmem:[%s3427_s21 + $0x98] sm:$0xff] }
0x11e7   :  { %v1624_v23 = vpop.permute.xlu2 %1623 }
0x11ef   :  { %v1626_v19 = vpop.permute.xlu2 %1625 }
0x11f7   :  { %v1636_v31 = vpop.permute.xlu2 %1635 }
0x125e   :  { %v1561_v38 = vpop.f32.mrf.mxu0 }
0x125f   :  { %v1570_v41 = vadd.f32 %v3082_v30, %v1561_v38  ;;  %v1589_v30 = vpop.xlane.xlu1 %1588  ;;  %v2250_v38 = vld [vmem:[%s3427_s21 + $0x90] sm:$0xff] }
0x1261   :  { %v1572_v43 = vmul.f32 %v1570_v41, %v3129_v36  ;;  %v2249_v41 = vld [vmem:[%s3427_s21 + $0x88] sm:$0xff] }
0x1263   :  { %v3140_v25 = vadd.f32 %v1572_v43, %v3017_v53  ;;  %v1593_v53 = vmul.f32 %v1589_v30, %v2733_v46  ;;  %v2248_v43 = vld [vmem:[%s3427_s21 + $0x80] sm:$0xff] }
0x1265   :  { %v1578_v37 = vsel %vm179_vm5, %v3140_v25, 0.0  ;;  %v1595_v52 = vadd.f32 1e-06, %v1593_v53 }
0x1266   :  { %1579 = vadd.xlane.f32.xlu0 %v1578_v37  ;;  %v2303_v37 = vld [vmem:[%s3426_s20 + $0x1] ss:$0 sm:$0xff] }
0x1267   :  { %2372 = vrsqrt.f32 %v1595_v52  ;;  %vm1603_vm2 = vweird.f32 %v1595_v52 }
0x126d   :  { %v2373_v32 = vpop.eup %2372 }
0x126e   :  { %v1598_v58 = vmul.f32 %v2373_v32, %v1595_v52  ;;  %vm1604_vm0 = vweird.f32 %v2373_v32 }
0x126f   :  { %vm1605_vm4 = vmor %vm1603_vm2, %vm1604_vm0 }
0x1270   :  { %v1599_v62 = vmul.f32 %v2373_v32, %v1598_v58 }
0x1272   :  { %v1600_v6 = vmul.f32 0.5, %v1599_v62 }
0x1274   :  { %v1601_v7 = vsub.f32 1.5, %v1600_v6 }
0x1276   :  { %v1602_v12 = vmul.f32 %v2373_v32, %v1601_v7 }
0x1278   :  { %v1606_v0 = vsel %vm1605_vm4, %v2373_v32, %v1602_v12 }
0x1279   :  { %v1617_v18 = vmul.f32 %v1606_v0, %v3107_v60  ;;  %v2258_v60 = vld [vmem:[%s3427_s21 + $0xd0] sm:$0xff] }
0x127a   :  { %1725 = vmatpush.msrb.mxu3 %v2258_v60 }
0x127b   :  { %v1629_v20 = vmul.f32 %v1624_v23, %v1617_v18 }
0x127c   :  { %1726 = vmatpush.msrb.mxu3 %v2257_v3 }
0x127e   :  { %1727 = vmatpush.msrb.mxu3 %v2256_v33  ;;  %v1824_v33 = vld [vmem:[%s3429_s23 + $0x18] sm:$0xff] }
0x127f   :  { %1847 = vmatpush.msra.mxu2 %v1824_v33 }
0x1280   :  { %1728 = vmatpush.msrb.mxu3 %v2255_v35  ;;  %v1823_v35 = vld [vmem:[%s3429_s23 + $0x10] sm:$0xff] }
0x1281   :  { %1848 = vmatpush.msra.mxu2 %v1823_v35 }
0x1282   :  { %1729 = vmatpush.msrb.mxu3 %v2254_v15  ;;  %v1822_v15 = vld [vmem:[%s3429_s23 + $0x8] sm:$0xff] }
0x1283   :  { %1849 = vmatpush.msra.mxu2 %v1822_v15 }
0x1284   :  { %1730 = vmatpush.msrb.mxu3 %v2253_v21 }
0x1286   :  { %1731 = vmatpush.msrb.mxu3 %v2252_v1 }
0x1288   :  { %1732 = vmatpush.msrb.mxu3 %v2251_v28 }
0x128a   :  { %1733 = vmatpush.msrb.mxu3 %v2250_v38 }
0x128c   :  { %1734 = vmatpush.msrb.mxu3 %v2249_v41 }
0x128e   :  { %1735 = vmatpush.msrb.mxu3 %v2248_v43 }
0x12d9   :  { %v1580_v44 = vpop.xlane.xlu0 %1579 }
0x12da   :  { %v1582_v45 = vmul.f32 %v1580_v44, %v2733_v46 }
0x12dc   :  { %v1584_v48 = vsub.f32 %v3140_v25, %v1582_v45 }
0x12de   :  { %v1586_v49 = vmul.f32 %v1584_v48, %v1584_v48 }
0x12e0   :  { %v1590_v51 = vsel %vm179_vm5, %v1586_v49, 0.0 }
0x12e1   :  { %1591 = vadd.xlane.f32.xlu1 %v1590_v51 }
0x12fa   :  { %1633 = vrot.lane.b32.xlu1 %v3095_v42, %s2465_s7 }
0x1354   :  { %v1592_v5 = vpop.xlane.xlu1 %1591 }
0x1355   :  { %v1594_v59 = vmul.f32 %v1592_v5, %v2733_v46 }
0x1357   :  { %v1596_v63 = vadd.f32 1e-06, %v1594_v59 }
0x1359   :  { %2374 = vrsqrt.f32 %v1596_v63  ;;  %vm1613_vm7 = vweird.f32 %v1596_v63 }
0x135f   :  { %v2375_v8 = vpop.eup %2374 }
0x1360   :  { %v1608_v11 = vmul.f32 %v2375_v8, %v1596_v63  ;;  %vm1614_vm6 = vweird.f32 %v2375_v8 }
0x1361   :  { %vm1615_vm8 = vmor %vm1613_vm7, %vm1614_vm6 }
0x1362   :  { %v1609_v13 = vmul.f32 %v2375_v8, %v1608_v11 }
0x1364   :  { %v1610_v14 = vmul.f32 0.5, %v1609_v13 }
0x1366   :  { %v1611_v16 = vsub.f32 1.5, %v1610_v14 }
0x1368   :  { %v1612_v17 = vmul.f32 %v2375_v8, %v1611_v16 }
0x136a   :  { %v1616_v50 = vsel %vm1615_vm8, %v2375_v8, %v1612_v17 }
0x136b   :  { %v1618_v22 = vmul.f32 %v1616_v50, %v1584_v48 }
0x136c   :  { %v1634_v9 = vpop.permute.xlu1 %1633 }
0x136d   :  { %v1639_v61 = vadd.f32 %v1634_v9, %v1629_v20  ;;  %v1630_v26 = vmul.f32 %v1626_v19, %v1618_v22 }
0x136f   :  { %2246 = vmatmul.msk.f32.vlgmr.msrb.gmra.mxu1 %vm179_vm5, %v1639_v61  ;;  %v1640_v27 = vadd.f32 %v1636_v31, %v1630_v26 }
0x1377   :  { %2247 = vmatmul.msk.f32.gmra.mxu1 %vm179_vm5, %v1640_v27 }
0x13ec   :  { %v1674_v44 = vpop.f32.mrf.mxu1 }
0x13ed   :  { %v1675_v45 = vadd.f32 %v2303_v37, %v1674_v44 }
0x13ef   :  { %v1682_v48 = vmul.f32 0.044715, %v1675_v45  ;;  %v1680_v59 = vmul.f32 0.5, %v1675_v45 }
0x13f1   :  { %v1684_v49 = vmul.f32 %v1682_v48, %v1675_v45 }
0x13f3   :  { %v1686_v51 = vmul.f32 %v1684_v49, %v1675_v45 }
0x13f4   :  { %v1677_v30 = vpop.f32.mrf.mxu1 }
0x13f5   :  { %v1678_v53 = vadd.f32 %v2303_v37, %v1677_v30  ;;  %v1688_v52 = vadd.f32 %v1686_v51, %v1675_v45 }
0x13f7   :  { %v1690_v54 = vmul.f32 0.7978846, %v1688_v52  ;;  %v1683_v24 = vmul.f32 0.044715, %v1678_v53  ;;  %v1681_v57 = vmul.f32 0.5, %v1678_v53 }
0x13f9   :  { %2376 = vtanh.f32 %v1690_v54  ;;  %v1685_v55 = vmul.f32 %v1683_v24, %v1678_v53 }
0x13fb   :  { %v1687_v56 = vmul.f32 %v1685_v55, %v1678_v53 }
0x13fd   :  { %v1689_v32 = vadd.f32 %v1687_v56, %v1678_v53 }
0x13ff   :  { %v2377_v58 = vpop.eup %2376  ;;  %v1691_v5 = vmul.f32 0.7978846, %v1689_v32 }
0x1400   :  { %v1694_v62 = vadd.f32 1.0, %v2377_v58 }
0x1401   :  { %2378 = vtanh.f32 %v1691_v5 }
0x1402   :  { %v1696_v63 = vmul.f32 %v1694_v62, %v1680_v59 }
0x1404   :  { %1736 = vmatmul.f32.vlgmr.msrb.gmra.mxu3 %v1696_v63 }
0x1407   :  { %v2379_v2 = vpop.eup %2378 }
0x1408   :  { %v1695_v4 = vadd.f32 1.0, %v2379_v2 }
0x140a   :  { %v1697_v6 = vmul.f32 %v1695_v4, %v1681_v57  ;;  %v1908_v4 = vld [vmem:[%s3459_s15] sm:$0xff] }
0x140b   :  { %2267 = vmatpush.xpose.msk.msra.mxu0 %vm378_vm3, %v1908_v4 }
0x140c   :  { %1739 = vmatmul.f32.gmra.mxu3 %v1697_v6  ;;  %v3262_v6 = vld [vmem:[%s3460_s9] sm:$0xff] }
0x140d   :  { %vm91_vm15 = vcmp.gt.f32.partialorder %v3262_v6, 0.5 }
0x1487   :  { %v1737_v7 = vpop.f32.mrf.mxu3 }
0x1488   :  { %v1738_v8 = vadd.f32 %v2304_v34, %v1737_v7 }
0x148a   :  { %1745 = vrot.lane.b32.xlu2 %v1738_v8, %s2465_s7  ;;  %v2437_v8 = vld [vmem:[%s3458_s1] sm:$0xff] }
0x148b   :  { %2268 = vmatmul.msk.f32.vlgmr.msra.gmra.mxu0 %vm378_vm3, %v2437_v8 }
0x148f   :  { %v1740_v23 = vpop.f32.mrf.mxu3 }
0x1490   :  { %v1741_v11 = vadd.f32 %v2304_v34, %v1740_v23  ;;  %v2473_v34 = vmov 0   ;;  %v2305_v23 = vld [vmem:[%s3430_s24] ss:$0 sm:$0xff] }
0x1491   :  { %2292 = vset.pattern.permute.xlu1 %v2473_v34  ;;  %2293 = vset.pattern.permute.xlu0 %v2473_v34  ;;  %v2026_v7 = vsel %vm91_vm15, 1, %v2473_v34 }
0x1492   :  { %1747 = vrot.lane.b32.xlu0 %v1741_v11, %s2465_s7 }
0x14e4   :  { %v1746_v12 = vpop.permute.xlu2 %1745 }
0x14e5   :  { %v1751_v13 = vmul.f32 %v1746_v12, %v3095_v42  ;;  %v270_v42 = vperm.slane %v3087_v10, 3 }
0x14e7   :  { %1755 = vrot.lane.b32.xlu1 %v1751_v13, %s2472_s13  ;;  %v368_v9 = vadd.f32 %v2822_v39, %v270_v42  ;;  %v371_v39 = vadd.f32 %v2824_v40, %v270_v42  ;;  %v1821_v40 = vld [vmem:[%s3429_s23] sm:$0xff] }
0x14e8   :  { %1850 = vmatpush.msra.mxu2 %v1821_v40 }
0x14e9   :  { %v1807_v61 = vadd.f32 1.0, %v368_v9  ;;  %v1808_v3 = vadd.f32 1.0, %v371_v39 }
0x1504   :  { %v1748_v14 = vpop.permute.xlu0 %1747 }
0x1505   :  { %v1752_v0 = vmul.f32 %v1748_v14, %v3129_v36 }
0x1507   :  { %1757 = vrot.lane.b32.xlu2 %v1752_v0, %s2472_s13 }
0x1559   :  { %v1756_v16 = vpop.permute.xlu1 %1755 }
0x155a   :  { %v1761_v17 = vadd.f32 %v1756_v16, %v3100_v47 }
0x155c   :  { %v1763_v18 = vsel %vm179_vm5, %v1761_v17, 0.0 }
0x155d   :  { %1764 = vadd.xlane.f32.xlu1 %v1763_v18  ;;  %v2270_v18 = vld [vmem:[%s3459_s15 + $0x8] sm:$0xff]  ;;  %s2474_s15 = smov [#allocation2]  }
0x155e   :  { %2271 = vmatpush.xpose.msk.msra.mxu1 %vm378_vm3, %v2270_v18  ;;  %s2161_s0 = sshll.u32 %s2474_s15, 4  ;;  %s2162_s0 = int_to_ptr.vmem [resolvable:$true] %s2161_s0 }
0x1561   :  { %v1758_v19 = vpop.permute.xlu2 %1757 }
0x1562   :  { %v1762_v50 = vadd.f32 %v1758_v19, %v3140_v25  ;;  %v87_v19 = vld [vmem:[%s3462_s29] sm:$0xff] }
0x1564   :  { %v1766_v20 = vsel %vm179_vm5, %v1762_v50, 0.0 }
0x1565   :  { %1767 = vadd.xlane.f32.xlu2 %v1766_v20 }
0x157d   :  { %1811 = vrot.lane.b32.xlu2 %v1807_v61, %s2465_s7  ;;  %v2438_v61 = vld [vmem:[%s3458_s1 + $0x8] sm:$0xff] }
0x157e   :  { %2272 = vmatmul.msk.f32.vlgmr.msra.gmra.mxu1 %vm378_vm3, %v2438_v61 }
0x15d0   :  { %v1765_v36 = vpop.xlane.xlu1 %1764 }
0x15d1   :  { %v1769_v22 = vmul.f32 %v1765_v36, %v2733_v46 }
0x15d3   :  { %v1771_v47 = vsub.f32 %v1761_v17, %v1769_v22  ;;  %v3289_v17 = vld [vmem:[%s3461_s3] sm:$0xff] }
0x15d4   :  { %v2020_v20 = vadd.f32 1e-20, %v3289_v17 }
0x15d5   :  { %v1773_v26 = vmul.f32 %v1771_v47, %v1771_v47 }
0x15d7   :  { %v1775_v31 = vsel %vm179_vm5, %v1773_v26, 0.0 }
0x15d8   :  { %1776 = vadd.xlane.f32.xlu0 %v1775_v31  ;;  %v1768_v27 = vpop.xlane.xlu2 %1767 }
0x15d9   :  { %v1770_v25 = vmul.f32 %v1768_v27, %v2733_v46 }
0x15db   :  { %v1772_v29 = vsub.f32 %v1762_v50, %v1770_v25  ;;  %v1929_v50 = vpop.f32.mrf.mxu0 }
0x15dc   :  { %v2006_v42 = vadd.f32 1e-20, %v1929_v50 }
0x15dd   :  { %v1774_v60 = vmul.f32 %v1772_v29, %v1772_v29 }
0x15df   :  { %v1778_v10 = vsel %vm179_vm5, %v1774_v60, 0.0 }
0x15e0   :  { %1779 = vadd.xlane.f32.xlu1 %v1778_v10  ;;  %v1812_v55 = vpop.permute.xlu2 %1811 }
0x15f9   :  { %1813 = vrot.lane.b32.xlu1 %v1808_v3, %s2465_s7 }
0x1601   :  { %2029 = vperm.xlu1 %2292, %v2026_v7  }
0x164b   :  { %v1777_v21 = vpop.xlane.xlu0 %1776 }
0x164c   :  { %v1781_v1 = vmul.f32 %v1777_v21, %v2733_v46 }
0x164e   :  { %v1783_v28 = vadd.f32 1e-06, %v1781_v1 }
0x1650   :  { %2380 = vrsqrt.f32 %v1783_v28  ;;  %vm1791_vm10 = vweird.f32 %v1783_v28 }
0x1653   :  { %v1780_v38 = vpop.xlane.xlu1 %1779 }
0x1654   :  { %v1782_v41 = vmul.f32 %v1780_v38, %v2733_v46 }
0x1656   :  { %v2381_v43 = vpop.eup %2380  ;;  %v1784_v37 = vadd.f32 1e-06, %v1782_v41  ;;  %v3328_v41 = vld [vmem:[%s3460_s9 + $0x8] sm:$0xff] }
0x1657   :  { %v1786_v44 = vmul.f32 %v2381_v43, %v1783_v28  ;;  %vm1792_vm9 = vweird.f32 %v2381_v43  ;;  %vm92_vm1 = vcmp.gt.f32.partialorder %v3328_v41, 0.5 }
0x1658   :  { %2382 = vrsqrt.f32 %v1784_v37  ;;  %vm1793_vm11 = vmor %vm1791_vm10, %vm1792_vm9  ;;  %vm1801_vm13 = vweird.f32 %v1784_v37 }
0x1659   :  { %v1787_v45 = vmul.f32 %v2381_v43, %v1786_v44  ;;  %2384 = vlog2.f32 %v2020_v20  ;;  %v1932_v44 = vld [vmem:[%s3463_s18] sm:$0xff] }
0x165a   :  { %2386 = vlog2.f32 %v2006_v42  ;;  %1951 = vmatpush.msrb.mxu0 %v1932_v44 }
0x165b   :  { %v1788_v48 = vmul.f32 0.5, %v1787_v45 }
0x165d   :  { %v1789_v49 = vsub.f32 1.5, %v1788_v48 }
0x165e   :  { %v2383_v51 = vpop.eup %2382 }
0x165f   :  { %v1790_v30 = vmul.f32 %v2381_v43, %v1789_v49  ;;  %v1796_v53 = vmul.f32 %v2383_v51, %v1784_v37  ;;  %vm1802_vm12 = vweird.f32 %v2383_v51  ;;  %v2385_v36 = vpop.eup %2384  ;;  %v2273_v37 = vld [vmem:[%s3463_s18 + $0x8] sm:$0xff]  ;;  %v1978_v49 = vpop.f32.mrf.mxu1 }
0x1660   :  { %vm1803_vm14 = vmor %vm1801_vm13, %vm1802_vm12  ;;  %v2387_v22 = vpop.eup %2386  ;;  %2001 = vmatpush.msrb.mxu2 %v2273_v37  ;;  %vm2151_vm12 = vcmask 15360   ;;  %vm2154_vm13 = vcmask 23552  }
0x1661   :  { %v1794_v52 = vsel %vm1793_vm11, %v2381_v43, %v1790_v30  ;;  %v1797_v54 = vmul.f32 %v2383_v51, %v1796_v53  ;;  %v3305_v31 = vmul.f32 0.6931472, %v2387_v22  ;;  %v2027_v43 = vsel %vm92_vm1, 1, %v2473_v34  ;;  %v88_v30 = vld [vmem:[%s3462_s29 + $0x8] sm:$0xff] }
0x1662   :  { %v1805_v24 = vmul.f32 %v1794_v52, %v1771_v47  ;;  %v2007_v53 = vadd.f32 1e-20, %v1978_v49 }
0x1663   :  { %v1798_v56 = vmul.f32 0.5, %v1797_v54  ;;  %v2013_v54 = vadd.f32 1e-20, %v88_v30 }
0x1664   :  { %v1817_v32 = vmul.f32 %v1812_v55, %v1805_v24  ;;  %v3351_v24 = vld [vmem:[%s3461_s3 + $0x8] sm:$0xff] }
0x1665   :  { %v1799_v46 = vsub.f32 1.5, %v1798_v56  ;;  %v2021_v56 = vadd.f32 1e-20, %v3351_v24 }
0x1666   :  { %v1819_v58 = vadd.f32 %v1817_v32, %v368_v9  ;;  %v2012_v9 = vadd.f32 1e-20, %v87_v19 }
0x1667   :  { %v1800_v5 = vmul.f32 %v2383_v51, %v1799_v46 }
0x1668   :  { %2265 = vmatmul.msk.f32.vlgmr.msra.gmra.mxu2 %vm179_vm5, %v1819_v58  ;;  %2388 = vlog2.f32 %v2012_v9 }
0x1669   :  { %v1804_v59 = vsel %vm1803_vm14, %v2383_v51, %v1800_v5 }
0x166a   :  { %v1806_v62 = vmul.f32 %v1804_v59, %v1772_v29  ;;  %v2023_v29 = vmul.f32 0.6931472, %v2385_v36 }
0x166b   :  { %v1814_v63 = vpop.permute.xlu1 %1813 }
0x166c   :  { %v1818_v2 = vmul.f32 %v1814_v63, %v1806_v62 }
0x166e   :  { %v1820_v57 = vadd.f32 %v1818_v2, %v371_v39  ;;  %v2389_v26 = vpop.eup %2388 }
0x166f   :  { %v2015_v25 = vmul.f32 0.6931472, %v2389_v26 }
0x1670   :  { %2266 = vmatmul.msk.f32.gmra.mxu2 %vm179_vm5, %v1820_v57 }
0x1671   :  { %v2018_v10 = vadd.f32 %v2015_v25, %v3305_v31 }
0x1673   :  { %v3303_v47 = vpop.permute.xlu1 %2029 }
0x1674   :  { %vm2034_vm5 = vcmp.eq.s32.totalorder %v3303_v47, 1 }
0x1675   :  { %v2036_v3 = vsel %vm2034_vm5, %v2023_v29, %v2018_v10 }
0x1676   :  { %v2054_v33 = vsel %vm378_vm3, %v2036_v3, -inf }
0x1677   :  { %2055 = vmax.xlane.f32.xlu1 %v2054_v33 }
0x16ea   :  { %v2056_v45 = vpop.xlane.xlu1 %2055 }
0x16eb   :  { %v1852_v11 = vpop.f32.mrf.mxu2  ;;  %v3339_v48 = vsub.f32 %v2036_v3, %v2056_v45 }
0x16ec   :  { %v3274_v12 = vadd.f32 %v2305_v23, %v1852_v11 }
0x16ed   :  { %v2062_v51 = vmul.f32 1.442695, %v3339_v48 }
0x16ee   :  { %1858 = vst.msk [vmem:[#allocation2] sm:$0xff] %vm378_vm3, %v3274_v12  ;;  %v1860_v16 = vsel %vm378_vm3, %v3274_v12, -inf }
0x16f3   :  { %v1855_v13 = vpop.f32.mrf.mxu2 }
0x16f4   :  { %v3278_v14 = vadd.f32 %v2305_v23, %v1855_v13 }
0x16f6   :  { %1859 = vst.msk [vmem:[#allocation2 + $0x8] sm:$0xff] %vm378_vm3, %v3278_v14  ;;  %v1863_v0 = vsel %vm378_vm3, %v3278_v14, -inf }
0x16f7   :  { %1864 = vmax.xlane.f32.xlu0 %v1863_v0  ;;  %2169 = dma.vmem_to_hbm [thread:$0]  %s2162_s0, 256, %s2164_s30, [#allocation3], %s2475_s2, %s2475_s2, %s2476_s5  }
0x16ff   :  { %1861 = vmax.xlane.f32.xlu0 %v1860_v16 }
0x176a   :  { %v3307_v27 = vpop.xlane.xlu0 %1864 }
0x176b   :  { %v1867_v60 = vsub.f32 %v3278_v14, %v3307_v27 }
0x176d   :  { %v1870_v39 = vmul.f32 1.442695, %v1867_v60 }
0x176f   :  { %2390 = vpow2.f32 %v1870_v39 }
0x1772   :  { %v3316_v35 = vpop.xlane.xlu0 %1861 }
0x1773   :  { %v1866_v15 = vsub.f32 %v3274_v12, %v3316_v35 }
0x1775   :  { %v2391_v40 = vpop.eup %2390  ;;  %v1868_v21 = vmul.f32 1.442695, %v1866_v15 }
0x1776   :  { %v1875_v1 = vsel %vm378_vm3, %v2391_v40, 0.0 }
0x1777   :  { %2392 = vpow2.f32 %v1868_v21  ;;  %1876 = vadd.xlane.f32.xlu0 %v1875_v1 }
0x1778   :  { %2394 = vpow2.f32 %v2062_v51 }
0x177d   :  { %v3321_v28 = vpop.eup %2392 }
0x177e   :  { %v1872_v38 = vsel %vm378_vm3, %v3321_v28, 0.0  ;;  %v2395_v55 = vpop.eup %2394 }
0x177f   :  { %1873 = vadd.xlane.f32.xlu2 %v1872_v38  ;;  %v2066_v32 = vsel %vm378_vm3, %v2395_v55, 0.0 }
0x1780   :  { %2067 = vadd.xlane.f32.xlu1 %v2066_v32 }
0x178b   :  { %2032 = vperm.xlu0 %2293, %v2027_v43  }
0x17ea   :  { %v3345_v52 = vpop.xlane.xlu0 %1876 }
0x17eb   :  { %2396 = vrcp.f32 %v3345_v52  ;;  %v1904_v2 = vand.u32 2147483648, %v3345_v52  ;;  %v1902_v4 = vand.u32 2147483647, %v3345_v52  ;;  %vm1898_vm2 = vweird.f32 %v3345_v52 }
0x17ec   :  { %2398 = vlog2.f32 %v2007_v53 }
0x17ed   :  { %2400 = vlog2.f32 %v2013_v54  ;;  %v1905_v13 = vor.u32 1.1754944e-38, %v1904_v2  ;;  %vm1903_vm6 = vcmp.eq.f32.partialorder %v1902_v4, 8.507059e+37 }
0x17ee   :  { %2402 = vlog2.f32 %v2021_v56 }
0x17f1   :  { %v2397_v46 = vpop.eup %2396 }
0x17f2   :  { %v1894_v58 = vmul.f32 %v2397_v46, %v3345_v52  ;;  %v3356_v5 = vpop.xlane.xlu2 %1873  ;;  %v2399_v59 = vpop.eup %2398  ;;  %vm1899_vm0 = vweird.f32 %v2397_v46 }
0x17f3   :  { %2404 = vrcp.f32 %v3356_v5  ;;  %v2401_v62 = vpop.eup %2400  ;;  %v2011_v34 = vmul.f32 0.6931472, %v2399_v59  ;;  %vm1900_vm4 = vmor %vm1898_vm2, %vm1899_vm0  ;;  %v1889_v9 = vand.u32 2147483648, %v3356_v5  ;;  %v1887_v22 = vand.u32 2147483647, %v3356_v5 }
0x17f4   :  { %v1895_v63 = vsub.f32 1.0, %v1894_v58  ;;  %v2017_v7 = vmul.f32 0.6931472, %v2401_v62  ;;  %v2403_v8 = vpop.eup %2402  ;;  %vm1883_vm9 = vweird.f32 %v3356_v5 }
0x17f5   :  { %v2025_v50 = vmul.f32 0.6931472, %v2403_v8  ;;  %v1890_v60 = vor.u32 1.1754944e-38, %v1889_v9  ;;  %vm1888_vm11 = vcmp.eq.f32.partialorder %v1887_v22, 8.507059e+37 }
0x17f6   :  { %v1896_v57 = vmul.f32 %v2397_v46, %v1895_v63  ;;  %v2019_v19 = vadd.f32 %v2017_v7, %v2011_v34 }
0x17f8   :  { %v1897_v23 = vadd.f32 %v2397_v46, %v1896_v57 }
0x17f9   :  { %v2405_v11 = vpop.eup %2404 }
0x17fa   :  { %v1901_v0 = vsel %vm1900_vm4, %v2397_v46, %v1897_v23  ;;  %v1879_v16 = vmul.f32 %v2405_v11, %v3356_v5  ;;  %vm1884_vm7 = vweird.f32 %v2405_v11 }
0x17fb   :  { %v1906_v18 = vsel %vm1903_vm6, %v1905_v13, %v1901_v0  ;;  %vm1885_vm10 = vmor %vm1883_vm9, %vm1884_vm7  ;;  %v2125_v0 = vmul.f32 %v3278_v14, %v3351_v24 }
0x17fc   :  { %v1880_v20 = vsub.f32 1.0, %v1879_v16  ;;  %v1907_v42 = vmul.f32 %v2391_v40, %v1906_v18  ;;  %v2124_v16 = vmul.f32 %v3274_v12, %v3289_v17 }
0x17fd   :  { %v2033_v61 = vpop.permute.xlu0 %2032  ;;  %v2129_v18 = vsel %vm378_vm3, %v2125_v0, 0.0 }
0x17fe   :  { %v1881_v36 = vmul.f32 %v2405_v11, %v1880_v20  ;;  %2274 = vmatmul.msk.f32.vlgmr.msrb.gmra.mxu2 %vm378_vm3, %v1907_v42  ;;  %vm2035_vm8 = vcmp.eq.s32.totalorder %v2033_v61, 1  ;;  %v2047_v33 = vadd.f32 1e-20, %v1907_v42  ;;  %v2068_v20 = vpop.xlane.xlu1 %2067 }
0x17ff   :  { %v2037_v26 = vsel %vm2035_vm8, %v2025_v50, %v2019_v19  ;;  %v2126_v19 = vsel %vm378_vm3, %v2124_v16, 0.0 }
0x1800   :  { %v1882_v25 = vadd.f32 %v2405_v11, %v1881_v36  ;;  %v2057_v29 = vsel %vm378_vm3, %v2037_v26, -inf  ;;  %2406 = vlog2.f32 %v2047_v33 }
0x1801   :  { %2058 = vmax.xlane.f32.xlu2 %v2057_v29 }
0x1802   :  { %v1886_v10 = vsel %vm1885_vm10, %v2405_v11, %v1882_v25 }
0x1803   :  { %v1891_v39 = vsel %vm1888_vm11, %v1890_v60, %v1886_v10 }
0x1804   :  { %v1892_v3 = vmul.f32 %v3321_v28, %v1891_v39 }
0x1806   :  { %2269 = vmatmul.msk.f32.vlgmr.msrb.gmra.mxu0 %vm378_vm3, %v1892_v3  ;;  %v2046_v40 = vadd.f32 1e-20, %v1892_v3  ;;  %v2407_v44 = vpop.eup %2406 }
0x1807   :  { %v2051_v55 = vmul.f32 0.6931472, %v2407_v44 }
0x1874   :  { %v2059_v43 = vpop.xlane.xlu2 %2058 }
0x1875   :  { %v2061_v37 = vsub.f32 %v2037_v26, %v2059_v43 }
0x1877   :  { %v2064_v30 = vmul.f32 1.442695, %v2061_v37 }
0x1881   :  { %v2003_v15 = vpop.f32.mrf.mxu2 }
0x1882   :  { %v2039_v21 = vadd.f32 1e-20, %v2003_v15 }
0x1883   :  { %v1953_v1 = vpop.f32.mrf.mxu0 }
0x1884   :  { %2408 = vlog2.f32 %v2039_v21  ;;  %v2038_v38 = vadd.f32 1e-20, %v1953_v1 }
0x1885   :  { %2410 = vlog2.f32 %v2046_v40 }
0x1886   :  { %2412 = vlog2.f32 %v2038_v38 }
0x1887   :  { %2414 = vpow2.f32 %v2064_v30 }
0x188a   :  { %v2409_v45 = vpop.eup %2408 }
0x188b   :  { %v2411_v49 = vpop.eup %2410  ;;  %v2043_v51 = vmul.f32 0.6931472, %v2409_v45 }
0x188c   :  { %v2413_v28 = vpop.eup %2412  ;;  %v2049_v46 = vmul.f32 0.6931472, %v2411_v49 }
0x188d   :  { %v2045_v53 = vadd.f32 %v2043_v51, %v2011_v34  ;;  %v2041_v54 = vmul.f32 0.6931472, %v2413_v28  ;;  %v2415_v63 = vpop.eup %2414 }
0x188e   :  { %v2069_v2 = vsel %vm378_vm3, %v2415_v63, 0.0 }
0x188f   :  { %v2044_v56 = vadd.f32 %v2041_v54, %v3305_v31  ;;  %v2053_v32 = vsel %vm2035_vm8, %v2051_v55, %v2045_v53 }
0x1890   :  { %v2081_v58 = vsel %vm378_vm3, %v2053_v32, -inf }
0x1891   :  { %2082 = vmax.xlane.f32.xlu2 %v2081_v58  ;;  %v2052_v59 = vsel %vm2034_vm5, %v2049_v46, %v2044_v56 }
0x1892   :  { %v2078_v62 = vsel %vm378_vm3, %v2052_v59, -inf }
0x1893   :  { %2079 = vmax.xlane.f32.xlu0 %v2078_v62 }
0x1899   :  { %2070 = vadd.xlane.f32.xlu2 %v2069_v2 }
0x1904   :  { %v2083_v57 = vpop.xlane.xlu2 %2082 }
0x1905   :  { %v2085_v4 = vsub.f32 %v2053_v32, %v2083_v57 }
0x1906   :  { %v2080_v31 = vpop.xlane.xlu0 %2079 }
0x1907   :  { %v2088_v34 = vmul.f32 1.442695, %v2085_v4  ;;  %v2084_v7 = vsub.f32 %v2052_v59, %v2080_v31 }
0x1909   :  { %2416 = vpow2.f32 %v2088_v34  ;;  %v2086_v8 = vmul.f32 1.442695, %v2084_v7 }
0x190b   :  { %2418 = vpow2.f32 %v2086_v8 }
0x190c   :  { %v2071_v50 = vpop.xlane.xlu2 %2070 }
0x190d   :  { %2420 = vlog2.f32 %v2071_v50 }
0x190e   :  { %2422 = vlog2.f32 %v2068_v20 }
0x190f   :  { %v2417_v23 = vpop.eup %2416 }
0x1910   :  { %v2093_v11 = vsel %vm378_vm3, %v2417_v23, 0.0 }
0x1911   :  { %v2419_v47 = vpop.eup %2418  ;;  %2094 = vadd.xlane.f32.xlu2 %v2093_v11 }
0x1912   :  { %v2090_v13 = vsel %vm378_vm3, %v2419_v47, 0.0 }
0x1913   :  { %2091 = vadd.xlane.f32.xlu1 %v2090_v13  ;;  %v2421_v42 = vpop.eup %2420 }
0x1914   :  { %v2423_v9 = vpop.eup %2422  ;;  %v2075_v61 = vmul.f32 0.6931472, %v2421_v42 }
0x1915   :  { %v2073_v36 = vmul.f32 0.6931472, %v2423_v9 }
0x1916   :  { %v2077_v22 = vsub.f32 %v2061_v37, %v2075_v61 }
0x1917   :  { %v2076_v14 = vsub.f32 %v3339_v48, %v2073_v36 }
0x1918   :  { %v2104_v17 = vmul.f32 1.442695, %v2077_v22 }
0x1919   :  { %2130 = vadd.xlane.f32.xlu2 %v2129_v18  ;;  %v2102_v24 = vmul.f32 1.442695, %v2076_v14 }
0x191b   :  { %2127 = vadd.xlane.f32.xlu1 %v2126_v19 }
0x1984   :  { %v2095_v26 = vpop.xlane.xlu2 %2094 }
0x1985   :  { %2424 = vlog2.f32 %v2095_v26 }
0x1986   :  { %v2092_v12 = vpop.xlane.xlu1 %2091 }
0x1987   :  { %2426 = vlog2.f32 %v2092_v12 }
0x1988   :  { %2428 = vpow2.f32 %v2104_v17 }
0x1989   :  { %2430 = vpow2.f32 %v2102_v24 }
0x198a   :  { %2432 = vlog2.f32 %v3345_v52 }
0x198b   :  { %v2425_v25 = vpop.eup %2424  ;;  %2434 = vlog2.f32 %v3356_v5 }
0x198c   :  { %v2099_v29 = vmul.f32 0.6931472, %v2425_v25  ;;  %v2131_v49 = vpop.xlane.xlu2 %2130 }
0x198d   :  { %v2427_v60 = vpop.eup %2426 }
0x198e   :  { %v2101_v10 = vsub.f32 %v2085_v4, %v2099_v29  ;;  %v2097_v39 = vmul.f32 0.6931472, %v2427_v60  ;;  %v2429_v15 = vpop.eup %2428  ;;  %v2128_v30 = vpop.xlane.xlu1 %2127 }
0x198f   :  { %v2431_v1 = vpop.eup %2430 }
0x1990   :  { %v2100_v3 = vsub.f32 %v2084_v7, %v2097_v39  ;;  %v2107_v33 = vsub.f32 %v2077_v22, %v2101_v10  ;;  %v2433_v37 = vpop.eup %2432 }
0x1991   :  { %v2435_v44 = vpop.eup %2434  ;;  %v2121_v45 = vmul.f32 0.6931472, %v2433_v37 }
0x1992   :  { %v2109_v40 = vmul.f32 %v2429_v15, %v2107_v33  ;;  %v2106_v21 = vsub.f32 %v2076_v14, %v2100_v3  ;;  %v2119_v51 = vmul.f32 0.6931472, %v2435_v44 }
0x1993   :  { %v2123_v28 = vadd.f32 %v2121_v45, %v3307_v27 }
0x1994   :  { %v2113_v48 = vsel %vm378_vm3, %v2109_v40, 0.0  ;;  %v2108_v38 = vmul.f32 %v2431_v1, %v2106_v21  ;;  %v2122_v54 = vadd.f32 %v2119_v51, %v3316_v35 }
0x1995   :  { %2114 = vadd.xlane.f32.xlu2 %v2113_v48  ;;  %v2133_v53 = vsub.f32 %v2123_v28, %v2131_v49 }
0x1996   :  { %v2110_v43 = vsel %vm378_vm3, %v2108_v38, 0.0  ;;  %v2132_v52 = vsub.f32 %v2122_v54, %v2128_v30  ;;  %vm2148_vm3 = vcmask 7168  }
0x1997   :  { %2111 = vadd.xlane.f32.xlu1 %v2110_v43  ;;  %v2135_v55 = vmul.f32 0.1, %v2133_v53 }
0x1998   :  { %v2134_v46 = vmul.f32 0.1, %v2132_v52 }
0x1a08   :  { %v2115_v5 = vpop.xlane.xlu2 %2114 }
0x1a09   :  { %v2117_v56 = vmax.f32 %v2115_v5, 0.0 }
0x1a0a   :  { %v2112_v32 = vpop.xlane.xlu1 %2111 }
0x1a0b   :  { %v2137_v27 = vadd.f32 %v2135_v55, %v2117_v56  ;;  %v2116_v58 = vmax.f32 %v2112_v32, 0.0  ;;  %v2150_v63 = vsel %vm2148_vm3, %v2117_v56, %v2133_v53 }
0x1a0d   :  { %v2136_v59 = vadd.f32 %v2134_v46, %v2116_v58  ;;  %v2139_v62 = vsel %vm92_vm1, %v2133_v53, %v2137_v27  ;;  %v2149_v4 = vsel %vm2148_vm3, %v2116_v58, %v2132_v52 }
0x1a0e   :  { %2144 = vrot.lane.b32.xlu0 %v2139_v62, %s2477_s25 }
0x1a0f   :  { %v2138_v35 = vsel %vm91_vm15, %v2132_v52, %v2136_v59 }
0x1a10   :  { %2142 = vrot.lane.b32.xlu1 %v2138_v35, %s2477_s25 }
0x1a80   :  { %v2145_v2 = vpop.permute.xlu0 %2144 }
0x1a81   :  { %v2153_v57 = vsel %vm2151_vm12, %v2150_v63, %v2145_v2 }
0x1a82   :  { %2156 = vst.msk [vmem:[%s3432_s26 + $0x8] sm:$0xff] %vm2154_vm13, %v2153_v57  ;;  %v2143_v31 = vpop.permute.xlu1 %2142 }
0x1a83   :  { %v2152_v41 = vsel %vm2151_vm12, %v2149_v4, %v2143_v31 }
0x1a84   :  { %2155 = vst.msk [vmem:[%s3432_s26] sm:$0xff] %vm2154_vm13, %v2152_v41 }
0x1a85   :  { %2463 = dma.done.wait [#allocation3], 256  }
0x1a86   :  { %2464 = vsyncadd [#allocation3], 4294967040 }
0x1a87   :  { %2178 = vsyncpa [#allocation3], 1 }

</bundles_post_ra>
